<compile_context>
chip_gen: v7x
topology: tpu7x:2x2x1
jax: 0.10.0
libtpu: 0.0.40
codegen_flags: <defaults>
</compile_context>

<pallas_src>
import functools

import jax
import jax.numpy as jnp
from jax.experimental import pallas as pl
from jax.experimental.pallas import tpu as pltpu

EPS = 1e-5  # nn.BatchNorm2d default


# --------------------------------------------------------------------------- #
# Pass 1: 3x3 "same" conv (stride 1, no bias) + per-sample partial BN stats.   #
# --------------------------------------------------------------------------- #
def _conv3x3_stats_kernel(x_ref, w_ref, y_ref, stats_ref, xp_ref):
    """One batch sample per grid step.

    x_ref     : (H, W, Cin)       unpadded NHWC sample
    w_ref     : (9*Cin, Cout)     conv taps, row index = (dh*3 + dw)*Cin + ci
    y_ref     : (H*W, Cout)       pre-BN conv output for this sample
    stats_ref : (2, Cout)         row 0 = sum over H*W, row 1 = sum of squares
    xp_ref    : (H+2, W+2, Cin)   VMEM scratch holding the zero-padded sample
    """
    H, W, Cin = x_ref.shape

    # In-kernel zero padding (border re-zeroed every step so the kernel is safe
    # under megacore "parallel" sharding of the batch axis).
    xp_ref[...] = jnp.zeros(xp_ref.shape, xp_ref.dtype)
    xp_ref[1:H + 1, 1:W + 1, :] = x_ref[...]

    # im2col: one (H*W, 9*Cin) matrix -> a single MXU matmul with K = 9*Cin
    # (9x fewer MXU launches than per-tap dots; no Python-carried accumulator).
    taps = []
    for dh in range(3):
        for dw in range(3):
            taps.append(xp_ref[dh:dh + H, dw:dw + W, :].reshape(H * W, Cin))
    col = jnp.concatenate(taps, axis=-1)                        # (H*W, 9*Cin)
    y = jnp.dot(col, w_ref[...], preferred_element_type=jnp.float32)

    # Per-sample partial BN statistics; the tiny cross-sample reduction happens
    # in the wrapper, which is what lets this pass tile/pipeline freely.
    stats_ref[0:1, :] = jnp.sum(y, axis=0, keepdims=True)
    stats_ref[1:2, :] = jnp.sum(y * y, axis=0, keepdims=True)

    y_ref[...] = y


# --------------------------------------------------------------------------- #
# Pass 2: lane-dense per-channel scale/shift + ReLU.                           #
# --------------------------------------------------------------------------- #
def _scale_shift_relu_kernel(x_ref, scale_ref, shift_ref, o_ref):
    o_ref[...] = jnp.maximum(x_ref[...] * scale_ref[...] + shift_ref[...], 0.0)


def _row_tile(n_rows, max_rows=512):
    """Largest row tile <= max_rows that is a multiple of 8 and divides n_rows."""
    if n_rows <= max_rows:
        return n_rows
    best = n_rows
    for t in range(8, max_rows + 1, 8):
        if n_rows % t == 0:
            best = t
    return best


def conv3x3_bn_relu(x_nhwc, w_oihw, gamma, beta):
    """relu(batchnorm(conv3x3(x))) with training-mode (biased batch) statistics."""
    N, H, W, Cin = x_nhwc.shape
    Cout = w_oihw.shape[0]

    x32 = x_nhwc.astype(jnp.float32)
    # (Cout, Cin, 3, 3) -> (3, 3, Cin, Cout) -> (9*Cin, Cout); row = tap*Cin + ci.
    w = jnp.transpose(w_oihw.astype(jnp.float32), (2, 3, 1, 0)).reshape(9 * Cin, Cout)

    # ---- pass 1: conv + partial stats; grid over batch, pipelined / megacore ----
    y_pre, stats = pl.pallas_call(
        _conv3x3_stats_kernel,
        grid=(N,),
        in_specs=[
            pl.BlockSpec((None, H, W, Cin), lambda n: (n, 0, 0, 0)),
            pl.BlockSpec((9 * Cin, Cout), lambda n: (0, 0)),
        ],
        out_shape=(
            jax.ShapeDtypeStruct((N, H * W, Cout), jnp.float32),
            jax.ShapeDtypeStruct((N, 2, Cout), jnp.float32),
        ),
        out_specs=(
            pl.BlockSpec((None, H * W, Cout), lambda n: (n, 0, 0)),
            pl.BlockSpec((None, 2, Cout), lambda n: (n, 0, 0)),
        ),
        scratch_shapes=[pltpu.VMEM((H + 2, W + 2, Cin), jnp.float32)],
        compiler_params=pltpu.CompilerParams(dimension_semantics=("parallel",)),
    )(x32, w)

    # ---- tiny global reduction: fold BN (mean/var, gamma/beta) into scale/shift ----
    count = float(N * H * W)
    ssum = jnp.sum(stats[:, 0, :], axis=0)
    ssq = jnp.sum(stats[:, 1, :], axis=0)
    mean = ssum / count
    var = jnp.maximum(ssq / count - mean * mean, 0.0)
    inv = jax.lax.rsqrt(var + EPS)
    scale = gamma.astype(jnp.float32) * inv
    shift = beta.astype(jnp.float32) - mean * scale

    # ---- pass 2: lane-dense scale/shift + ReLU over an (N*H, W*Cout) view ----
    rows, wc = N * H, W * Cout
    tr = _row_tile(rows)
    y2d = y_pre.reshape(rows, wc)                 # free: same contiguous NHWC order
    scale_l = jnp.tile(scale, W).reshape(1, wc)   # channel = lane % Cout
    shift_l = jnp.tile(shift, W).reshape(1, wc)

    out2d = pl.pallas_call(
        _scale_shift_relu_kernel,
        grid=(rows // tr,),
        in_specs=[
            pl.BlockSpec((tr, wc), lambda r: (r, 0)),
            pl.BlockSpec((1, wc), lambda r: (0, 0)),
            pl.BlockSpec((1, wc), lambda r: (0, 0)),
        ],
        out_shape=jax.ShapeDtypeStruct((rows, wc), jnp.float32),
        out_specs=pl.BlockSpec((tr, wc), lambda r: (r, 0)),
        compiler_params=pltpu.CompilerParams(dimension_semantics=("parallel",)),
    )(y2d, scale_l, shift_l)

    return out2d.reshape(N, H, W, Cout)


@functools.partial(jax.jit, static_argnames=("stride",))
def residual_block_forward(x_nchw, params, stride=1):
    """Matches ResidualBlock.forward: relu(bn1(conv1(x))) -> relu(bn2(conv2(.)))."""
    # TODO(synk): stride > 1 downsampling path of conv1 not implemented (module
    # default stride=1 is what is reproduced here).
    assert stride == 1, "only stride=1 is implemented"
    w1, g1, b1, w2, g2, b2 = params
    x = jnp.transpose(x_nchw, (0, 2, 3, 1)).astype(jnp.float32)   # NCHW -> NHWC
    y = conv3x3_bn_relu(x, w1, g1, b1)
    y = conv3x3_bn_relu(y, w2, g2, b2)
    return jnp.transpose(y, (0, 3, 1, 2))                          # NHWC -> NCHW


def residual_block_reference(x_nchw, params):
    """Pure-JAX reference mirroring the PyTorch forward (for correctness check)."""
    w1, g1, b1, w2, g2, b2 = params

    def conv(x, w):
        return jax.lax.conv_general_dilated(
            x, w, window_strides=(1, 1), padding=((1, 1), (1, 1)),
            dimension_numbers=("NCHW", "OIHW", "NCHW"))

    def bn_relu(x, g, b):
        mean = jnp.mean(x, axis=(0, 2, 3), keepdims=True)
        var = jnp.mean((x - mean) ** 2, axis=(0, 2, 3), keepdims=True)
        y = (x - mean) * jax.lax.rsqrt(var + EPS)
        y = y * g.reshape(1, -1, 1, 1) + b.reshape(1, -1, 1, 1)
        return jnp.maximum(y, 0.0)

    y = bn_relu(conv(x_nchw, w1), g1, b1)
    return bn_relu(conv(y, w2), g2, b2)


if __name__ == "__main__":
    key = jax.random.PRNGKey(0)
    N, Cin, Cout, H, W = 2, 4, 8, 16, 16

    k_x, k_w1, k_w2 = jax.random.split(key, 3)
    x = jax.random.normal(k_x, (N, Cin, H, W), jnp.float32)
    # Conv2d weights (OIHW, bias=False) and BatchNorm2d default affine params.
    w1 = jax.random.normal(k_w1, (Cout, Cin, 3, 3), jnp.float32) * 0.1
    w2 = jax.random.normal(k_w2, (Cout, Cout, 3, 3), jnp.float32) * 0.1
    g1 = jnp.ones((Cout,), jnp.float32)
    b1 = jnp.zeros((Cout,), jnp.float32)
    g2 = jnp.ones((Cout,), jnp.float32)
    b2 = jnp.zeros((Cout,), jnp.float32)
    params = (w1, g1, b1, w2, g2, b2)

    out = jax.block_until_ready(residual_block_forward(x, params, stride=1))
    ref = residual_block_reference(x, params)

    assert out.shape == (N, Cout, H, W), out.shape
    assert jnp.allclose(out, ref, atol=1e-4, rtol=1e-4), float(
        jnp.max(jnp.abs(out - ref)))
    print("KERNEL_OK")
</pallas_src>

<mosaic_0001>
module attributes {stable_mosaic.version = 11 : i64} {
  func.func @_conv3x3_stats_kernel(%arg0: i32, %arg1: memref<1x16x16x4xf32, #tpu.memory_space<vmem>>, %arg2: memref<36x8xf32, #tpu.memory_space<vmem>>, %arg3: memref<1x256x8xf32, #tpu.memory_space<vmem>>, %arg4: memref<1x2x8xf32, #tpu.memory_space<vmem>>, %arg5: memref<18x18x4xf32, #tpu.memory_space<vmem>>) attributes {dimension_semantics = [#tpu.dimension_semantics<parallel>], iteration_bounds = array<i64: 2>, scalar_prefetch = 0 : i64, scratch_operands = 1 : i64, tpu.core_type = #tpu.core_type<tc>, window_params = [{transform_indices = @transform_0, window_bounds = array<i64: 1, 16, 16, 4>}, {pipeline_mode = #tpu.pipeline_mode<synchronous>, transform_indices = @transform_1, window_bounds = array<i64: 36, 8>}, {transform_indices = @transform_2, window_bounds = array<i64: 1, 256, 8>}, {transform_indices = @transform_3, window_bounds = array<i64: 1, 2, 8>}]} {
    %cst = arith.constant 0.000000e+00 : f32
    %0 = vector.broadcast %cst : f32 to vector<18x18x4xf32>
    %c0 = arith.constant 0 : index
    %c0_0 = arith.constant 0 : index
    %c0_1 = arith.constant 0 : index
    %1 = vector.load %arg5[%c0, %c0_0, %c0_1] : memref<18x18x4xf32, #tpu.memory_space<vmem>>, vector<18x18x4xf32>
    tpu.vector_store %arg5[%c0, %c0_0, %c0_1], %0 {strides = array<i32>} : memref<18x18x4xf32, #tpu.memory_space<vmem>>, vector<18x18x4xf32>,
    %c0_2 = arith.constant 0 : index
    %c0_3 = arith.constant 0 : index
    %c0_4 = arith.constant 0 : index
    %c0_5 = arith.constant 0 : index
    %2 = vector.load %arg1[%c0_2, %c0_3, %c0_4, %c0_5] : memref<1x16x16x4xf32, #tpu.memory_space<vmem>>, vector<1x16x16x4xf32>
    %3 = vector.shape_cast %2 : vector<1x16x16x4xf32> to vector<16x16x4xf32>
    %c1 = arith.constant 1 : index
    %c1_6 = arith.constant 1 : index
    %c0_7 = arith.constant 0 : index
    %4 = vector.load %arg5[%c1, %c1_6, %c0_7] : memref<18x18x4xf32, #tpu.memory_space<vmem>>, vector<16x16x4xf32>
    tpu.vector_store %arg5[%c1, %c1_6, %c0_7], %3 {strides = array<i32>} : memref<18x18x4xf32, #tpu.memory_space<vmem>>, vector<16x16x4xf32>,
    %c0_8 = arith.constant 0 : index
    %c0_9 = arith.constant 0 : index
    %c0_10 = arith.constant 0 : index
    %5 = vector.load %arg5[%c0_8, %c0_9, %c0_10] : memref<18x18x4xf32, #tpu.memory_space<vmem>>, vector<16x16x4xf32>
    %6 = vector.shape_cast %5 : vector<16x16x4xf32> to vector<256x4xf32>
    %c0_11 = arith.constant 0 : index
    %c1_12 = arith.constant 1 : index
    %c0_13 = arith.constant 0 : index
    %7 = vector.load %arg5[%c0_11, %c1_12, %c0_13] : memref<18x18x4xf32, #tpu.memory_space<vmem>>, vector<16x16x4xf32>
    %8 = vector.shape_cast %7 : vector<16x16x4xf32> to vector<256x4xf32>
    %c0_14 = arith.constant 0 : index
    %c2 = arith.constant 2 : index
    %c0_15 = arith.constant 0 : index
    %9 = vector.load %arg5[%c0_14, %c2, %c0_15] : memref<18x18x4xf32, #tpu.memory_space<vmem>>, vector<16x16x4xf32>
    %10 = vector.shape_cast %9 : vector<16x16x4xf32> to vector<256x4xf32>
    %c1_16 = arith.constant 1 : index
    %c0_17 = arith.constant 0 : index
    %c0_18 = arith.constant 0 : index
    %11 = vector.load %arg5[%c1_16, %c0_17, %c0_18] : memref<18x18x4xf32, #tpu.memory_space<vmem>>, vector<16x16x4xf32>
    %12 = vector.shape_cast %11 : vector<16x16x4xf32> to vector<256x4xf32>
    %c1_19 = arith.constant 1 : index
    %c1_20 = arith.constant 1 : index
    %c0_21 = arith.constant 0 : index
    %13 = vector.load %arg5[%c1_19, %c1_20, %c0_21] : memref<18x18x4xf32, #tpu.memory_space<vmem>>, vector<16x16x4xf32>
    %14 = vector.shape_cast %13 : vector<16x16x4xf32> to vector<256x4xf32>
    %c1_22 = arith.constant 1 : index
    %c2_23 = arith.constant 2 : index
    %c0_24 = arith.constant 0 : index
    %15 = vector.load %arg5[%c1_22, %c2_23, %c0_24] : memref<18x18x4xf32, #tpu.memory_space<vmem>>, vector<16x16x4xf32>
    %16 = vector.shape_cast %15 : vector<16x16x4xf32> to vector<256x4xf32>
    %c2_25 = arith.constant 2 : index
    %c0_26 = arith.constant 0 : index
    %c0_27 = arith.constant 0 : index
    %17 = vector.load %arg5[%c2_25, %c0_26, %c0_27] : memref<18x18x4xf32, #tpu.memory_space<vmem>>, vector<16x16x4xf32>
    %18 = vector.shape_cast %17 : vector<16x16x4xf32> to vector<256x4xf32>
    %c2_28 = arith.constant 2 : index
    %c1_29 = arith.constant 1 : index
    %c0_30 = arith.constant 0 : index
    %19 = vector.load %arg5[%c2_28, %c1_29, %c0_30] : memref<18x18x4xf32, #tpu.memory_space<vmem>>, vector<16x16x4xf32>
    %20 = vector.shape_cast %19 : vector<16x16x4xf32> to vector<256x4xf32>
    %c2_31 = arith.constant 2 : index
    %c2_32 = arith.constant 2 : index
    %c0_33 = arith.constant 0 : index
    %21 = vector.load %arg5[%c2_31, %c2_32, %c0_33] : memref<18x18x4xf32, #tpu.memory_space<vmem>>, vector<16x16x4xf32>
    %22 = vector.shape_cast %21 : vector<16x16x4xf32> to vector<256x4xf32>
    %23 = tpu.concatenate %6, %8, %10, %12, %14, %16, %18, %20, %22 in 1 : vector<256x4xf32>, vector<256x4xf32>, vector<256x4xf32>, vector<256x4xf32>, vector<256x4xf32>, vector<256x4xf32>, vector<256x4xf32>, vector<256x4xf32>, vector<256x4xf32> -> vector<256x36xf32>
    %c0_34 = arith.constant 0 : index
    %c0_35 = arith.constant 0 : index
    %24 = vector.load %arg2[%c0_34, %c0_35] : memref<36x8xf32, #tpu.memory_space<vmem>>, vector<36x8xf32>
    %cst_36 = arith.constant dense<0.000000e+00> : vector<256x8xf32>
    %25 = tpu.matmul %23, %24, %cst_36 {dimension_numbers = #tpu.dot_dimension_numbers<[1], [0], [0], [1], [0, 0, 1, 1], [], []>} : vector<256x36xf32>, vector<36x8xf32>, vector<256x8xf32> -> vector<256x8xf32>
    %cst_37 = arith.constant dense<0.000000e+00> : vector<8xf32>
    %26 = vector.multi_reduction <add>, %25, %cst_37 [0] : vector<256x8xf32> to vector<8xf32>
    %27 = vector.shape_cast %26 : vector<8xf32> to vector<1x8xf32>
    %c0_38 = arith.constant 0 : index
    %c0_39 = arith.constant 0 : index
    %c0_40 = arith.constant 0 : index
    %28 = vector.load %arg4[%c0_38, %c0_39, %c0_40] : memref<1x2x8xf32, #tpu.memory_space<vmem>>, vector<1x1x8xf32>
    %29 = vector.shape_cast %28 : vector<1x1x8xf32> to vector<1x8xf32>
    %30 = vector.shape_cast %27 : vector<1x8xf32> to vector<1x1x8xf32>
    tpu.vector_store %arg4[%c0_38, %c0_39, %c0_40], %30 {strides = array<i32>} : memref<1x2x8xf32, #tpu.memory_space<vmem>>, vector<1x1x8xf32>,
    %31 = arith.mulf %25, %25 : vector<256x8xf32>
    %cst_41 = arith.constant dense<0.000000e+00> : vector<8xf32>
    %32 = vector.multi_reduction <add>, %31, %cst_41 [0] : vector<256x8xf32> to vector<8xf32>
    %33 = vector.shape_cast %32 : vector<8xf32> to vector<1x8xf32>
    %c0_42 = arith.constant 0 : index
    %c1_43 = arith.constant 1 : index
    %c0_44 = arith.constant 0 : index
    %34 = vector.load %arg4[%c0_42, %c1_43, %c0_44] : memref<1x2x8xf32, #tpu.memory_space<vmem>>, vector<1x1x8xf32>
    %35 = vector.shape_cast %34 : vector<1x1x8xf32> to vector<1x8xf32>
    %36 = vector.shape_cast %33 : vector<1x8xf32> to vector<1x1x8xf32>
    tpu.vector_store %arg4[%c0_42, %c1_43, %c0_44], %36 {strides = array<i32>} : memref<1x2x8xf32, #tpu.memory_space<vmem>>, vector<1x1x8xf32>,
    %c0_45 = arith.constant 0 : index
    %c0_46 = arith.constant 0 : index
    %c0_47 = arith.constant 0 : index
    %37 = vector.load %arg3[%c0_45, %c0_46, %c0_47] : memref<1x256x8xf32, #tpu.memory_space<vmem>>, vector<1x256x8xf32>
    %38 = vector.shape_cast %37 : vector<1x256x8xf32> to vector<256x8xf32>
    %39 = vector.shape_cast %25 : vector<256x8xf32> to vector<1x256x8xf32>
    tpu.vector_store %arg3[%c0_45, %c0_46, %c0_47], %39 {strides = array<i32>} : memref<1x256x8xf32, #tpu.memory_space<vmem>>, vector<1x256x8xf32>,
    return
  }
  func.func @transform_0(%arg0: i32) -> (i32, i32, i32, i32) {
    %c0_i32 = arith.constant 0 : i32
    %c0_i32_0 = arith.constant 0 : i32
    %c0_i32_1 = arith.constant 0 : i32
    %c0_i32_2 = arith.constant 0 : i32
    return %arg0, %c0_i32, %c0_i32_0, %c0_i32_1 : i32, i32, i32, i32
  }
  func.func @transform_1(%arg0: i32) -> (i32, i32) {
    %c0_i32 = arith.constant 0 : i32
    %c0_i32_0 = arith.constant 0 : i32
    %c0_i32_1 = arith.constant 0 : i32
    return %c0_i32, %c0_i32_0 : i32, i32
  }
  func.func @transform_2(%arg0: i32) -> (i32, i32, i32) {
    %c0_i32 = arith.constant 0 : i32
    %c0_i32_0 = arith.constant 0 : i32
    %c0_i32_1 = arith.constant 0 : i32
    return %arg0, %c0_i32, %c0_i32_0 : i32, i32, i32
  }
  func.func @transform_3(%arg0: i32) -> (i32, i32, i32) {
    %c0_i32 = arith.constant 0 : i32
    %c0_i32_0 = arith.constant 0 : i32
    %c0_i32_1 = arith.constant 0 : i32
    return %arg0, %c0_i32, %c0_i32_0 : i32, i32, i32
  }
}

module attributes {stable_mosaic.version = 11 : i64} {
  func.func @_scale_shift_relu_kernel(%arg0: i32, %arg1: memref<32x128xf32, #tpu.memory_space<vmem>>, %arg2: memref<1x128xf32, #tpu.memory_space<vmem>>, %arg3: memref<1x128xf32, #tpu.memory_space<vmem>>, %arg4: memref<32x128xf32, #tpu.memory_space<vmem>>) attributes {dimension_semantics = [#tpu.dimension_semantics<parallel>], iteration_bounds = array<i64: 1>, scalar_prefetch = 0 : i64, scratch_operands = 0 : i64, tpu.core_type = #tpu.core_type<tc>, window_params = [{transform_indices = @transform_0, window_bounds = array<i64: 32, 128>}, {pipeline_mode = #tpu.pipeline_mode<synchronous>, transform_indices = @transform_1, window_bounds = array<i64: 1, 128>}, {pipeline_mode = #tpu.pipeline_mode<synchronous>, transform_indices = @transform_2, window_bounds = array<i64: 1, 128>}, {transform_indices = @transform_3, window_bounds = array<i64: 32, 128>}]} {
    %c0 = arith.constant 0 : index
    %c0_0 = arith.constant 0 : index
    %0 = vector.load %arg1[%c0, %c0_0] : memref<32x128xf32, #tpu.memory_space<vmem>>, vector<32x128xf32>
    %c0_1 = arith.constant 0 : index
    %c0_2 = arith.constant 0 : index
    %1 = vector.load %arg2[%c0_1, %c0_2] : memref<1x128xf32, #tpu.memory_space<vmem>>, vector<1x128xf32>
    %2 = vector.broadcast %1 : vector<1x128xf32> to vector<32x128xf32>
    %3 = arith.mulf %0, %2 : vector<32x128xf32>
    %c0_3 = arith.constant 0 : index
    %c0_4 = arith.constant 0 : index
    %4 = vector.load %arg3[%c0_3, %c0_4] : memref<1x128xf32, #tpu.memory_space<vmem>>, vector<1x128xf32>
    %5 = vector.broadcast %4 : vector<1x128xf32> to vector<32x128xf32>
    %6 = arith.addf %3, %5 : vector<32x128xf32>
    %cst = arith.constant 0.000000e+00 : f32
    %7 = vector.broadcast %cst : f32 to vector<32x128xf32>
    %8 = arith.maximumf %6, %7 : vector<32x128xf32>
    %c0_5 = arith.constant 0 : index
    %c0_6 = arith.constant 0 : index
    %9 = vector.load %arg4[%c0_5, %c0_6] : memref<32x128xf32, #tpu.memory_space<vmem>>, vector<32x128xf32>
    tpu.vector_store %arg4[%c0_5, %c0_6], %8 {strides = array<i32>} : memref<32x128xf32, #tpu.memory_space<vmem>>, vector<32x128xf32>,
    return
  }
  func.func @transform_0(%arg0: i32) -> (i32, i32) {
    %c0_i32 = arith.constant 0 : i32
    %c0_i32_0 = arith.constant 0 : i32
    return %arg0, %c0_i32 : i32, i32
  }
  func.func @transform_1(%arg0: i32) -> (i32, i32) {
    %c0_i32 = arith.constant 0 : i32
    %c0_i32_0 = arith.constant 0 : i32
    %c0_i32_1 = arith.constant 0 : i32
    return %c0_i32, %c0_i32_0 : i32, i32
  }
  func.func @transform_2(%arg0: i32) -> (i32, i32) {
    %c0_i32 = arith.constant 0 : i32
    %c0_i32_0 = arith.constant 0 : i32
    %c0_i32_1 = arith.constant 0 : i32
    return %c0_i32, %c0_i32_0 : i32, i32
  }
  func.func @transform_3(%arg0: i32) -> (i32, i32) {
    %c0_i32 = arith.constant 0 : i32
    %c0_i32_0 = arith.constant 0 : i32
    return %arg0, %c0_i32 : i32, i32
  }
}

module attributes {stable_mosaic.version = 11 : i64} {
  func.func @_conv3x3_stats_kernel(%arg0: i32, %arg1: memref<1x16x16x8xf32, #tpu.memory_space<vmem>>, %arg2: memref<72x8xf32, #tpu.memory_space<vmem>>, %arg3: memref<1x256x8xf32, #tpu.memory_space<vmem>>, %arg4: memref<1x2x8xf32, #tpu.memory_space<vmem>>, %arg5: memref<18x18x8xf32, #tpu.memory_space<vmem>>) attributes {dimension_semantics = [#tpu.dimension_semantics<parallel>], iteration_bounds = array<i64: 2>, scalar_prefetch = 0 : i64, scratch_operands = 1 : i64, tpu.core_type = #tpu.core_type<tc>, window_params = [{transform_indices = @transform_0, window_bounds = array<i64: 1, 16, 16, 8>}, {pipeline_mode = #tpu.pipeline_mode<synchronous>, transform_indices = @transform_1, window_bounds = array<i64: 72, 8>}, {transform_indices = @transform_2, window_bounds = array<i64: 1, 256, 8>}, {transform_indices = @transform_3, window_bounds = array<i64: 1, 2, 8>}]} {
    %cst = arith.constant 0.000000e+00 : f32
    %0 = vector.broadcast %cst : f32 to vector<18x18x8xf32>
    %c0 = arith.constant 0 : index
    %c0_0 = arith.constant 0 : index
    %c0_1 = arith.constant 0 : index
    %1 = vector.load %arg5[%c0, %c0_0, %c0_1] : memref<18x18x8xf32, #tpu.memory_space<vmem>>, vector<18x18x8xf32>
    tpu.vector_store %arg5[%c0, %c0_0, %c0_1], %0 {strides = array<i32>} : memref<18x18x8xf32, #tpu.memory_space<vmem>>, vector<18x18x8xf32>,
    %c0_2 = arith.constant 0 : index
    %c0_3 = arith.constant 0 : index
    %c0_4 = arith.constant 0 : index
    %c0_5 = arith.constant 0 : index
    %2 = vector.load %arg1[%c0_2, %c0_3, %c0_4, %c0_5] : memref<1x16x16x8xf32, #tpu.memory_space<vmem>>, vector<1x16x16x8xf32>
    %3 = vector.shape_cast %2 : vector<1x16x16x8xf32> to vector<16x16x8xf32>
    %c1 = arith.constant 1 : index
    %c1_6 = arith.constant 1 : index
    %c0_7 = arith.constant 0 : index
    %4 = vector.load %arg5[%c1, %c1_6, %c0_7] : memref<18x18x8xf32, #tpu.memory_space<vmem>>, vector<16x16x8xf32>
    tpu.vector_store %arg5[%c1, %c1_6, %c0_7], %3 {strides = array<i32>} : memref<18x18x8xf32, #tpu.memory_space<vmem>>, vector<16x16x8xf32>,
    %c0_8 = arith.constant 0 : index
    %c0_9 = arith.constant 0 : index
    %c0_10 = arith.constant 0 : index
    %5 = vector.load %arg5[%c0_8, %c0_9, %c0_10] : memref<18x18x8xf32, #tpu.memory_space<vmem>>, vector<16x16x8xf32>
    %6 = vector.shape_cast %5 : vector<16x16x8xf32> to vector<256x8xf32>
    %c0_11 = arith.constant 0 : index
    %c1_12 = arith.constant 1 : index
    %c0_13 = arith.constant 0 : index
    %7 = vector.load %arg5[%c0_11, %c1_12, %c0_13] : memref<18x18x8xf32, #tpu.memory_space<vmem>>, vector<16x16x8xf32>
    %8 = vector.shape_cast %7 : vector<16x16x8xf32> to vector<256x8xf32>
    %c0_14 = arith.constant 0 : index
    %c2 = arith.constant 2 : index
    %c0_15 = arith.constant 0 : index
    %9 = vector.load %arg5[%c0_14, %c2, %c0_15] : memref<18x18x8xf32, #tpu.memory_space<vmem>>, vector<16x16x8xf32>
    %10 = vector.shape_cast %9 : vector<16x16x8xf32> to vector<256x8xf32>
    %c1_16 = arith.constant 1 : index
    %c0_17 = arith.constant 0 : index
    %c0_18 = arith.constant 0 : index
    %11 = vector.load %arg5[%c1_16, %c0_17, %c0_18] : memref<18x18x8xf32, #tpu.memory_space<vmem>>, vector<16x16x8xf32>
    %12 = vector.shape_cast %11 : vector<16x16x8xf32> to vector<256x8xf32>
    %c1_19 = arith.constant 1 : index
    %c1_20 = arith.constant 1 : index
    %c0_21 = arith.constant 0 : index
    %13 = vector.load %arg5[%c1_19, %c1_20, %c0_21] : memref<18x18x8xf32, #tpu.memory_space<vmem>>, vector<16x16x8xf32>
    %14 = vector.shape_cast %13 : vector<16x16x8xf32> to vector<256x8xf32>
    %c1_22 = arith.constant 1 : index
    %c2_23 = arith.constant 2 : index
    %c0_24 = arith.constant 0 : index
    %15 = vector.load %arg5[%c1_22, %c2_23, %c0_24] : memref<18x18x8xf32, #tpu.memory_space<vmem>>, vector<16x16x8xf32>
    %16 = vector.shape_cast %15 : vector<16x16x8xf32> to vector<256x8xf32>
    %c2_25 = arith.constant 2 : index
    %c0_26 = arith.constant 0 : index
    %c0_27 = arith.constant 0 : index
    %17 = vector.load %arg5[%c2_25, %c0_26, %c0_27] : memref<18x18x8xf32, #tpu.memory_space<vmem>>, vector<16x16x8xf32>
    %18 = vector.shape_cast %17 : vector<16x16x8xf32> to vector<256x8xf32>
    %c2_28 = arith.constant 2 : index
    %c1_29 = arith.constant 1 : index
    %c0_30 = arith.constant 0 : index
    %19 = vector.load %arg5[%c2_28, %c1_29, %c0_30] : memref<18x18x8xf32, #tpu.memory_space<vmem>>, vector<16x16x8xf32>
    %20 = vector.shape_cast %19 : vector<16x16x8xf32> to vector<256x8xf32>
    %c2_31 = arith.constant 2 : index
    %c2_32 = arith.constant 2 : index
    %c0_33 = arith.constant 0 : index
    %21 = vector.load %arg5[%c2_31, %c2_32, %c0_33] : memref<18x18x8xf32, #tpu.memory_space<vmem>>, vector<16x16x8xf32>
    %22 = vector.shape_cast %21 : vector<16x16x8xf32> to vector<256x8xf32>
    %23 = tpu.concatenate %6, %8, %10, %12, %14, %16, %18, %20, %22 in 1 : vector<256x8xf32>, vector<256x8xf32>, vector<256x8xf32>, vector<256x8xf32>, vector<256x8xf32>, vector<256x8xf32>, vector<256x8xf32>, vector<256x8xf32>, vector<256x8xf32> -> vector<256x72xf32>
    %c0_34 = arith.constant 0 : index
    %c0_35 = arith.constant 0 : index
    %24 = vector.load %arg2[%c0_34, %c0_35] : memref<72x8xf32, #tpu.memory_space<vmem>>, vector<72x8xf32>
    %cst_36 = arith.constant dense<0.000000e+00> : vector<256x8xf32>
    %25 = tpu.matmul %23, %24, %cst_36 {dimension_numbers = #tpu.dot_dimension_numbers<[1], [0], [0], [1], [0, 0, 1, 1], [], []>} : vector<256x72xf32>, vector<72x8xf32>, vector<256x8xf32> -> vector<256x8xf32>
    %cst_37 = arith.constant dense<0.000000e+00> : vector<8xf32>
    %26 = vector.multi_reduction <add>, %25, %cst_37 [0] : vector<256x8xf32> to vector<8xf32>
    %27 = vector.shape_cast %26 : vector<8xf32> to vector<1x8xf32>
    %c0_38 = arith.constant 0 : index
    %c0_39 = arith.constant 0 : index
    %c0_40 = arith.constant 0 : index
    %28 = vector.load %arg4[%c0_38, %c0_39, %c0_40] : memref<1x2x8xf32, #tpu.memory_space<vmem>>, vector<1x1x8xf32>
    %29 = vector.shape_cast %28 : vector<1x1x8xf32> to vector<1x8xf32>
    %30 = vector.shape_cast %27 : vector<1x8xf32> to vector<1x1x8xf32>
    tpu.vector_store %arg4[%c0_38, %c0_39, %c0_40], %30 {strides = array<i32>} : memref<1x2x8xf32, #tpu.memory_space<vmem>>, vector<1x1x8xf32>,
    %31 = arith.mulf %25, %25 : vector<256x8xf32>
    %cst_41 = arith.constant dense<0.000000e+00> : vector<8xf32>
    %32 = vector.multi_reduction <add>, %31, %cst_41 [0] : vector<256x8xf32> to vector<8xf32>
    %33 = vector.shape_cast %32 : vector<8xf32> to vector<1x8xf32>
    %c0_42 = arith.constant 0 : index
    %c1_43 = arith.constant 1 : index
    %c0_44 = arith.constant 0 : index
    %34 = vector.load %arg4[%c0_42, %c1_43, %c0_44] : memref<1x2x8xf32, #tpu.memory_space<vmem>>, vector<1x1x8xf32>
    %35 = vector.shape_cast %34 : vector<1x1x8xf32> to vector<1x8xf32>
    %36 = vector.shape_cast %33 : vector<1x8xf32> to vector<1x1x8xf32>
    tpu.vector_store %arg4[%c0_42, %c1_43, %c0_44], %36 {strides = array<i32>} : memref<1x2x8xf32, #tpu.memory_space<vmem>>, vector<1x1x8xf32>,
    %c0_45 = arith.constant 0 : index
    %c0_46 = arith.constant 0 : index
    %c0_47 = arith.constant 0 : index
    %37 = vector.load %arg3[%c0_45, %c0_46, %c0_47] : memref<1x256x8xf32, #tpu.memory_space<vmem>>, vector<1x256x8xf32>
    %38 = vector.shape_cast %37 : vector<1x256x8xf32> to vector<256x8xf32>
    %39 = vector.shape_cast %25 : vector<256x8xf32> to vector<1x256x8xf32>
    tpu.vector_store %arg3[%c0_45, %c0_46, %c0_47], %39 {strides = array<i32>} : memref<1x256x8xf32, #tpu.memory_space<vmem>>, vector<1x256x8xf32>,
    return
  }
  func.func @transform_0(%arg0: i32) -> (i32, i32, i32, i32) {
    %c0_i32 = arith.constant 0 : i32
    %c0_i32_0 = arith.constant 0 : i32
    %c0_i32_1 = arith.constant 0 : i32
    %c0_i32_2 = arith.constant 0 : i32
    return %arg0, %c0_i32, %c0_i32_0, %c0_i32_1 : i32, i32, i32, i32
  }
  func.func @transform_1(%arg0: i32) -> (i32, i32) {
    %c0_i32 = arith.constant 0 : i32
    %c0_i32_0 = arith.constant 0 : i32
    %c0_i32_1 = arith.constant 0 : i32
    return %c0_i32, %c0_i32_0 : i32, i32
  }
  func.func @transform_2(%arg0: i32) -> (i32, i32, i32) {
    %c0_i32 = arith.constant 0 : i32
    %c0_i32_0 = arith.constant 0 : i32
    %c0_i32_1 = arith.constant 0 : i32
    return %arg0, %c0_i32, %c0_i32_0 : i32, i32, i32
  }
  func.func @transform_3(%arg0: i32) -> (i32, i32, i32) {
    %c0_i32 = arith.constant 0 : i32
    %c0_i32_0 = arith.constant 0 : i32
    %c0_i32_1 = arith.constant 0 : i32
    return %arg0, %c0_i32, %c0_i32_0 : i32, i32, i32
  }
}

</mosaic_0001>

<bundles_post_ra>
// kernel: tile.23
= control target key start
LH: loop header
LB: loop body
LE: loop exit
PB: predicated region body
PF: predicated region fallthrough
CT: control target
= control target key end

     0   :  { %s28_s0 = inlined_call_operand.vmem [shape: f32[8], index: 0, kind: input, shape index: {}]   ;;  %s29_s1 = inlined_call_operand.vmem [shape: f32[16,8], index: 1, kind: output, shape index: {}]  }
   0x1   :  { %v4_v0 = vld [vmem:[%s28_s0] ss:$0 sm:$0xff] }
   0x2   :  { %5 = vst [vmem:[%s29_s1] sm:$0xff] %v4_v0  ;;  %8 = vst [vmem:[%s29_s1 + $0x8] sm:$0xff] %v4_v0 }

// kernel: tile.24
= control target key start
LH: loop header
LB: loop body
LE: loop exit
PB: predicated region body
PF: predicated region fallthrough
CT: control target
= control target key end

     0   :  { %s131_s10 = smov 120   ;;  %s132_s11 = smov 104   ;;  %vm3_vm0 = vcmask 64512   ;;  %vm9_vm1 = vcmask 1048512   ;;  %vm15_vm2 = vcmask 982912   ;;  %vm21_vm3 = vcmask 917312   ;;  %s207_s0 = inlined_call_operand.vmem [shape: f32[16,8], index: 0, kind: input, shape index: {}]   ;;  %s208_s1 = inlined_call_operand.vmem [shape: f32[1,128], index: 1, kind: output, shape index: {}]  }
   0x1   :  { %v101_v0 = vld [vmem:[%s207_s0 + $0xf] sm:$0x1]   ;;  %v103_v1 = vld [vmem:[%s207_s0 + $0xd] sm:$0x1]   ;;  %v102_v2 = vld [vmem:[%s207_s0 + $0xe] sm:$0x1]  }
   0x2   :  { %7 = vrot.lane.b32.xlu0 %v101_v0, %s131_s10  ;;  %19 = vrot.lane.b32.xlu1 %v103_v1, %s132_s11  ;;  %v104_v3 = vld [vmem:[%s207_s0 + $0xc] sm:$0x1]   ;;  %s133_s16 = smov 112   ;;  %s134_s17 = smov 96   ;;  %v105_v4 = vld [vmem:[%s207_s0 + $0xb] sm:$0x1]  }
   0x3   :  { %v106_v5 = vld [vmem:[%s207_s0 + $0xa] sm:$0x1]   ;;  %v2_v6 = vld [vmem:[%s207_s0] sm:$0x1]   ;;  %s135_s24 = smov 88   ;;  %s136_s25 = smov 80  }
   0x4   :  { %4 = vst.msk [vmem:[#allocation0] sm:$0x1] %vm3_vm0, %v2_v6   ;;  %v107_v7 = vld [vmem:[%s207_s0 + $0x9] sm:$0x1]   ;;  %v108_v8 = vld [vmem:[%s207_s0 + $0x8] sm:$0x1]  }
   0x5   :  { %s137_s30 = smov 72   ;;  %s138_s2 = smov 64   ;;  %v109_v9 = vld [vmem:[%s207_s0 + $0x7] sm:$0x1]   ;;  %v110_v10 = vld [vmem:[%s207_s0 + $0x6] sm:$0x1]  }
   0x6   :  { %13 = vrot.lane.b32.xlu0 %v102_v2, %s133_s16  ;;  %25 = vrot.lane.b32.xlu1 %v104_v3, %s134_s17  ;;  %s139_s7 = smov 56   ;;  %s140_s8 = smov 48   ;;  %v111_v11 = vld [vmem:[%s207_s0 + $0x5] sm:$0x1]   ;;  %v112_v12 = vld [vmem:[%s207_s0 + $0x4] sm:$0x1]  }
   0x7   :  { %s141_s13 = smov 40   ;;  %s142_s14 = smov 32   ;;  %v113_v13 = vld [vmem:[%s207_s0 + $0x3] sm:$0x1]   ;;  %v114_v14 = vld [vmem:[%s207_s0 + $0x2] sm:$0x1]  }
   0x8   :  { %s143_s19 = smov 24   ;;  %s144_s20 = smov 16   ;;  %v115_v15 = vld [vmem:[%s207_s0 + $0x1] sm:$0x1]   ;;  %vm27_vm4 = vcmask 851712   ;;  %vm33_vm5 = vcmask 786112  }
   0x9   :  { %s145_s0 = smov 8   ;;  %vm39_vm6 = vcmask 720512   ;;  %vm45_vm7 = vcmask 654912   ;;  %vm51_vm8 = vcmask 589312   ;;  %vm57_vm9 = vcmask 523712  }
   0xa   :  { %31 = vrot.lane.b32.xlu0 %v105_v4, %s135_s24  ;;  %37 = vrot.lane.b32.xlu1 %v106_v5, %s136_s25  ;;  %vm63_vm10 = vcmask 458112   ;;  %vm69_vm11 = vcmask 392512   ;;  %vm75_vm12 = vcmask 326912   ;;  %vm81_vm13 = vcmask 261312  }
   0xb   :  { %vm87_vm14 = vcmask 195712   ;;  %vm93_vm15 = vcmask 130112  }
   0xe   :  { %43 = vrot.lane.b32.xlu0 %v107_v7, %s137_s30  ;;  %49 = vrot.lane.b32.xlu1 %v108_v8, %s138_s2 }
  0x12   :  { %55 = vrot.lane.b32.xlu0 %v109_v9, %s139_s7  ;;  %61 = vrot.lane.b32.xlu1 %v110_v10, %s140_s8 }
  0x16   :  { %67 = vrot.lane.b32.xlu0 %v111_v11, %s141_s13  ;;  %73 = vrot.lane.b32.xlu1 %v112_v12, %s142_s14 }
  0x1a   :  { %79 = vrot.lane.b32.xlu0 %v113_v13, %s143_s19  ;;  %85 = vrot.lane.b32.xlu1 %v114_v14, %s144_s20 }
  0x1e   :  { %91 = vrot.lane.b32.xlu0 %v115_v15, %s145_s0 }
  0x74   :  { %v8_v16 = vpop.permute.xlu0 %7   ;;  %v20_v17 = vpop.permute.xlu1 %19  }
  0x75   :  { %10 = vst.msk [vmem:[#allocation0] sm:$0x1] %vm9_vm1, %v8_v16  }
  0x78   :  { %v14_v18 = vpop.permute.xlu0 %13   ;;  %v26_v19 = vpop.permute.xlu1 %25  }
  0x79   :  { %16 = vst.msk [vmem:[#allocation0] sm:$0x1] %vm15_vm2, %v14_v18  }
  0x7a   :  { %22 = vst.msk [vmem:[#allocation0] sm:$0x1] %vm21_vm3, %v20_v17  }
  0x7b   :  { %28 = vst.msk [vmem:[#allocation0] sm:$0x1] %vm27_vm4, %v26_v19  }
  0x7c   :  { %v32_v20 = vpop.permute.xlu0 %31   ;;  %v38_v21 = vpop.permute.xlu1 %37  }
  0x7d   :  { %34 = vst.msk [vmem:[#allocation0] sm:$0x1] %vm33_vm5, %v32_v20  }
  0x7e   :  { %40 = vst.msk [vmem:[#allocation0] sm:$0x1] %vm39_vm6, %v38_v21  }
  0x80   :  { %v44_v22 = vpop.permute.xlu0 %43   ;;  %v50_v23 = vpop.permute.xlu1 %49  }
  0x81   :  { %46 = vst.msk [vmem:[#allocation0] sm:$0x1] %vm45_vm7, %v44_v22  }
  0x82   :  { %52 = vst.msk [vmem:[#allocation0] sm:$0x1] %vm51_vm8, %v50_v23  }
  0x84   :  { %v56_v24 = vpop.permute.xlu0 %55   ;;  %v62_v25 = vpop.permute.xlu1 %61  }
  0x85   :  { %58 = vst.msk [vmem:[#allocation0] sm:$0x1] %vm57_vm9, %v56_v24  }
  0x86   :  { %64 = vst.msk [vmem:[#allocation0] sm:$0x1] %vm63_vm10, %v62_v25  }
  0x88   :  { %v68_v26 = vpop.permute.xlu0 %67   ;;  %v74_v27 = vpop.permute.xlu1 %73  }
  0x89   :  { %70 = vst.msk [vmem:[#allocation0] sm:$0x1] %vm69_vm11, %v68_v26  }
  0x8a   :  { %76 = vst.msk [vmem:[#allocation0] sm:$0x1] %vm75_vm12, %v74_v27  }
  0x8c   :  { %v80_v28 = vpop.permute.xlu0 %79   ;;  %v86_v29 = vpop.permute.xlu1 %85  }
  0x8d   :  { %82 = vst.msk [vmem:[#allocation0] sm:$0x1] %vm81_vm13, %v80_v28  }
  0x8e   :  { %88 = vst.msk [vmem:[#allocation0] sm:$0x1] %vm87_vm14, %v86_v29  }
  0x90   :  { %v92_v30 = vpop.permute.xlu0 %91  }
  0x91   :  { %94 = vst.msk [vmem:[#allocation0] sm:$0x1] %vm93_vm15, %v92_v30  }
  0x98   :  { %v98_v31 = vld [vmem:[#allocation0] sm:$0x1] }
  0x99   :  { %100 = vst [vmem:[%s208_s1] sm:$0x1] %v98_v31 }

// kernel: residual_block_forward.5
= control target key start
LH: loop header
LB: loop body
LE: loop exit
PB: predicated region body
PF: predicated region fallthrough
CT: control target
= control target key end

     0   :  { %s104_s0 = inlined_call_operand.vmem [shape: f32[32,128], index: 0, kind: input, shape index: {}]   ;;  %s105_s1 = inlined_call_operand.vmem [shape: f32[1,128], index: 1, kind: input, shape index: {}]   ;;  %s106_s2 = inlined_call_operand.vmem [shape: f32[1,128], index: 2, kind: input, shape index: {}]   ;;  %s107_s3 = inlined_call_operand.vmem [shape: f32[32,128], index: 3, kind: output, shape index: {}]  }
   0x1   :  { %v14_v0 = vld [vmem:[%s104_s0] sm:$0xff]  ;;  %v15_v4 = vld [vmem:[%s104_s0 + $0x8] sm:$0xff]  ;;  %v16_v5 = vld [vmem:[%s104_s0 + $0x10] sm:$0xff] }
   0x2   :  { %v52_v1 = vld [vmem:[%s105_s1] ss:$0 sm:$0xff]  ;;  %v17_v6 = vld [vmem:[%s104_s0 + $0x18] sm:$0xff] }
   0x3   :  { %v53_v2 = vld [vmem:[%s106_s2] ss:$0 sm:$0xff]  ;;  %v25_v3 = vmul.f32 %v52_v1, %v14_v0  ;;  %v26_v7 = vmul.f32 %v52_v1, %v15_v4  ;;  %v27_v8 = vmul.f32 %v52_v1, %v16_v5  ;;  %v28_v9 = vmul.f32 %v52_v1, %v17_v6 }
   0x5   :  { %v36_v10 = vadd.f32 %v53_v2, %v25_v3  ;;  %v37_v11 = vadd.f32 %v53_v2, %v26_v7  ;;  %v38_v12 = vadd.f32 %v53_v2, %v27_v8  ;;  %v39_v13 = vadd.f32 %v53_v2, %v28_v9 }
   0x7   :  { %v40_v14 = vmax.f32 %v36_v10, 0.0  ;;  %v41_v15 = vmax.f32 %v37_v11, 0.0  ;;  %v42_v16 = vmax.f32 %v38_v12, 0.0  ;;  %v43_v17 = vmax.f32 %v39_v13, 0.0 }
   0x9   :  { %44 = vst [vmem:[%s107_s3] sm:$0xff] %v40_v14  ;;  %45 = vst [vmem:[%s107_s3 + $0x8] sm:$0xff] %v41_v15 }
   0xa   :  { %46 = vst [vmem:[%s107_s3 + $0x10] sm:$0xff] %v42_v16  ;;  %47 = vst [vmem:[%s107_s3 + $0x18] sm:$0xff] %v43_v17 }

// kernel: residual_block_forward.4
= control target key start
LH: loop header
LB: loop body
LE: loop exit
PB: predicated region body
PF: predicated region fallthrough
CT: control target
= control target key end

     0   :  { %s2711_s12 = smov 0   ;;  %s4085_s0 = inlined_call_operand.vmem [shape: f32[2,16,16,4], index: 0, kind: input, shape index: {}]   ;;  %s4086_s1 = inlined_call_operand.vmem [shape: f32[36,8], index: 1, kind: input, shape index: {}]   ;;  %s4087_s2 = inlined_call_operand.vmem [shape: f32[2,256,8], index: 2, kind: output, shape index: {0}]   ;;  %s4088_s3 = inlined_call_operand.vmem [shape: f32[2,2,8], index: 3, kind: output, shape index: {1}]  }
   0x1 LB: > { %s2501_s13 = sadd.s32 4294967295, %s2680_s12   ;;  %p2505_p0 = scmp.ge.s32.totalorder %s2680_s12, 1  ;;  %s2680_s12 = sphi %s2711_s12, %s14_s12  }
   0x2   : > { %p140_p1 = scmp.lt.s32.totalorder %s2680_s12, 3 }
   0x4   : > { %p141_p2 = pnand %p2505_p0, %p140_p1 }
   0x6   : > { %144 = sbr.rel (%p141_p2) target bundleno = 906 (0x38a), region = 28 }
   0xd   : > { %vm182_vm0 = vcmask 31744   ;;  %vm185_vm1 = vcmask 25600   ;;  %p2721_p3 = scmp.lt.s32.totalorder %s2501_s13, 1  ;;  %v2682_v0 = vmov 0.0   ;;  %s2683_s19 = smov 4   ;;  %vm1981_vm2 = vcmask 1043456  }
   0xe   : > { %183 = vst.msk [vmem:[#allocation2] sm:$0xff] %vm182_vm0, %v2682_v0  ;;  %184 = vst.msk [vmem:[#allocation2 + $0x8] sm:$0xff] %vm182_vm0, %v2682_v0  ;;  %s2684_s20 = smov 8   ;;  %s2685_s21 = smov 12   ;;  %vm1648_vm3 = vcmask 64512   ;;  %vm1681_vm4 = vcmask 97280  }
   0xf   : > { %187 = vst.msk [vmem:[#allocation2 + $0x18] sm:$0xff] %vm182_vm0, %v2682_v0  ;;  %188 = vst.msk [vmem:[#allocation2 + $0x20] sm:$0xff] %vm182_vm0, %v2682_v0  ;;  %s4196_s13 = smov (!%p2721_p3, %s2501_s13), 1  ;;  %s2686_s26 = smov 16   ;;  %vm1714_vm5 = vcmask 130048   ;;  %vm1747_vm6 = vcmask 162816  }
  0x10   : > { %190 = vst.msk [vmem:[#allocation2 + $0x30] sm:$0xff] %vm182_vm0, %v2682_v0  ;;  %191 = vst.msk [vmem:[#allocation2 + $0x38] sm:$0xff] %vm182_vm0, %v2682_v0  ;;  %s2546_s15 = sshll.u32 %s4196_s13, 8  ;;  %s2687_s4 = smov 20   ;;  %vm1780_vm7 = vcmask 195584   ;;  %vm1813_vm8 = vcmask 228352  }
  0x11   : > { %193 = vst.msk [vmem:[#allocation2 + $0x48] sm:$0xff] %vm182_vm0, %v2682_v0  ;;  %194 = vst.msk [vmem:[#allocation2 + $0x50] sm:$0xff] %vm182_vm0, %v2682_v0  ;;  %s2791_s18 = scalar_lea.vmem %s4085_s0, %s2546_s15  ;;  %s2688_s5 = smov 24   ;;  %vm1846_vm9 = vcmask 261120   ;;  %vm1884_vm10 = vcmask 293888   ;;  %vm2279_vm11 = vcmask 57344  }
  0x12   : > { %196 = vst.msk [vmem:[#allocation2 + $0x60] sm:$0xff] %vm182_vm0, %v2682_v0  ;;  %197 = vst.msk [vmem:[#allocation2 + $0x68] sm:$0xff] %vm182_vm0, %v2682_v0  ;;  %v238_v1 = vld [vmem:[%s2791_s18] sm:$0xff]  ;;  %v240_v2 = vld [vmem:[%s2791_s18 + $0x10] sm:$0xff]  ;;  %s2689_s8 = smov 28   ;;  %s2690_s9 = smov 32  }
  0x13   : > { %199 = vst.msk [vmem:[#allocation2 + $0x78] sm:$0xff] %vm182_vm0, %v2682_v0  ;;  %200 = vst.msk [vmem:[#allocation2 + $0x80] sm:$0xff] %vm182_vm0, %v2682_v0  ;;  %v239_v3 = vld [vmem:[%s2791_s18 + $0x8] sm:$0xff]  ;;  %v242_v4 = vld [vmem:[%s2791_s18 + $0x20] sm:$0xff]  ;;  %s3798_s14 = scalar_lea.vmem %s4087_s2, %s2546_s15  ;;  %s2510_s15 = sshll.u32 %s4196_s13, 1 }
  0x14   : > { %202 = vst.msk [vmem:[#allocation2 + $0x90] sm:$0xff] %vm182_vm0, %v2682_v0  ;;  %203 = vst.msk [vmem:[#allocation2 + $0x98] sm:$0xff] %vm182_vm0, %v2682_v0  ;;  %v241_v5 = vld [vmem:[%s2791_s18 + $0x18] sm:$0xff]  ;;  %v244_v6 = vld [vmem:[%s2791_s18 + $0x30] sm:$0xff] }
  0x15   : > { %205 = vst.msk [vmem:[#allocation2 + $0xa8] sm:$0xff] %vm182_vm0, %v2682_v0  ;;  %206 = vst.msk [vmem:[#allocation2 + $0xb0] sm:$0xff] %vm182_vm0, %v2682_v0  ;;  %v335_v7 = vld [vmem:[#allocation2 + $0x1] sm:$0xff]  ;;  %v245_v11 = vld [vmem:[%s2791_s18 + $0x38] sm:$0xff] }
  0x16   : > { %208 = vst.msk [vmem:[#allocation2 + $0xc0] sm:$0xff] %vm182_vm0, %v2682_v0  ;;  %209 = vst.msk [vmem:[#allocation2 + $0xc8] sm:$0xff] %vm182_vm0, %v2682_v0  ;;  %v243_v9 = vld [vmem:[%s2791_s18 + $0x28] sm:$0xff]  ;;  %624 = vrot.lane.b32.xlu0 %v335_v7, %s2683_s19  ;;  %v246_v10 = vld [vmem:[%s2791_s18 + $0x40] sm:$0xff] }
  0x17   : > { %211 = vst.msk [vmem:[#allocation2 + $0xd8] sm:$0xff] %vm182_vm0, %v2682_v0  ;;  %212 = vst.msk [vmem:[#allocation2 + $0xe0] sm:$0xff] %vm182_vm0, %v2682_v0  ;;  %v248_v12 = vld [vmem:[%s2791_s18 + $0x50] sm:$0xff]  ;;  %v247_v13 = vld [vmem:[%s2791_s18 + $0x48] sm:$0xff] }
  0x18   : > { %214 = vst.msk [vmem:[#allocation2 + $0xf0] sm:$0xff] %vm182_vm0, %v2682_v0  ;;  %215 = vst.msk [vmem:[#allocation2 + $0xf8] sm:$0xff] %vm182_vm0, %v2682_v0  ;;  %v250_v14 = vld [vmem:[%s2791_s18 + $0x60] sm:$0xff]  ;;  %v249_v15 = vld [vmem:[%s2791_s18 + $0x58] sm:$0xff] }
  0x19   : > { %217 = vst.msk [vmem:[#allocation2 + $0x108] sm:$0xff] %vm182_vm0, %v2682_v0  ;;  %218 = vst.msk [vmem:[#allocation2 + $0x110] sm:$0xff] %vm182_vm0, %v2682_v0  ;;  %v252_v16 = vld [vmem:[%s2791_s18 + $0x70] sm:$0xff]  ;;  %v251_v17 = vld [vmem:[%s2791_s18 + $0x68] sm:$0xff] }
  0x1a   : > { %220 = vst.msk [vmem:[#allocation2 + $0x120] sm:$0xff] %vm182_vm0, %v2682_v0  ;;  %221 = vst.msk [vmem:[#allocation2 + $0x128] sm:$0xff] %vm182_vm0, %v2682_v0  ;;  %v254_v18 = vld [vmem:[%s2791_s18 + $0x80] sm:$0xff]  ;;  %v253_v19 = vld [vmem:[%s2791_s18 + $0x78] sm:$0xff] }
  0x1b   : > { %223 = vst.msk [vmem:[#allocation2 + $0x138] sm:$0xff] %vm182_vm0, %v2682_v0  ;;  %224 = vst.msk [vmem:[#allocation2 + $0x140] sm:$0xff] %vm182_vm0, %v2682_v0  ;;  %v256_v20 = vld [vmem:[%s2791_s18 + $0x90] sm:$0xff]  ;;  %v255_v21 = vld [vmem:[%s2791_s18 + $0x88] sm:$0xff] }
  0x1c   : > { %226 = vst.msk [vmem:[#allocation2 + $0x150] sm:$0xff] %vm182_vm0, %v2682_v0  ;;  %227 = vst.msk [vmem:[#allocation2 + $0x158] sm:$0xff] %vm182_vm0, %v2682_v0  ;;  %v258_v22 = vld [vmem:[%s2791_s18 + $0xa0] sm:$0xff]  ;;  %v257_v23 = vld [vmem:[%s2791_s18 + $0x98] sm:$0xff] }
  0x1d   : > { %229 = vst.msk [vmem:[#allocation2 + $0x168] sm:$0xff] %vm182_vm0, %v2682_v0  ;;  %230 = vst.msk [vmem:[#allocation2 + $0x170] sm:$0xff] %vm182_vm0, %v2682_v0  ;;  %v260_v24 = vld [vmem:[%s2791_s18 + $0xb0] sm:$0xff]  ;;  %v259_v28 = vld [vmem:[%s2791_s18 + $0xa8] sm:$0xff] }
  0x1e   : > { %232 = vst.msk [vmem:[#allocation2 + $0x180] sm:$0xff] %vm182_vm0, %v2682_v0  ;;  %233 = vst.msk [vmem:[#allocation2 + $0x188] sm:$0xff] %vm182_vm0, %v2682_v0  ;;  %v262_v29 = vld [vmem:[%s2791_s18 + $0xc0] sm:$0xff]  ;;  %v261_v33 = vld [vmem:[%s2791_s18 + $0xb8] sm:$0xff] }
  0x1f   : > { %235 = vst.msk [vmem:[#allocation2 + $0x198] sm:$0xff] %vm182_vm0, %v2682_v0  ;;  %236 = vst.msk [vmem:[#allocation2 + $0x1a0] sm:$0xff] %vm182_vm0, %v2682_v0  ;;  %v264_v34 = vld [vmem:[%s2791_s18 + $0xd0] sm:$0xff]  ;;  %v263_v35 = vld [vmem:[%s2791_s18 + $0xc8] sm:$0xff] }
  0x20   : > { %186 = vst.msk [vmem:[#allocation2 + $0x10] sm:$0x3] %vm185_vm1, %v2682_v0  ;;  %189 = vst.msk [vmem:[#allocation2 + $0x28] sm:$0x3] %vm185_vm1, %v2682_v0  ;;  %v266_v36 = vld [vmem:[%s2791_s18 + $0xe0] sm:$0xff]  ;;  %v265_v37 = vld [vmem:[%s2791_s18 + $0xd8] sm:$0xff] }
  0x21   : > { %192 = vst.msk [vmem:[#allocation2 + $0x40] sm:$0x3] %vm185_vm1, %v2682_v0  ;;  %195 = vst.msk [vmem:[#allocation2 + $0x58] sm:$0x3] %vm185_vm1, %v2682_v0  ;;  %v267_v39 = vld [vmem:[%s2791_s18 + $0xe8] sm:$0xff] }
  0x22   : > { %198 = vst.msk [vmem:[#allocation2 + $0x70] sm:$0x3] %vm185_vm1, %v2682_v0  ;;  %201 = vst.msk [vmem:[#allocation2 + $0x88] sm:$0x3] %vm185_vm1, %v2682_v0  ;;  %v367_v62 = vld [vmem:[#allocation2 + $0x2] sm:$0xff] }
  0x23   : > { %204 = vst.msk [vmem:[#allocation2 + $0xa0] sm:$0x3] %vm185_vm1, %v2682_v0  ;;  %207 = vst.msk [vmem:[#allocation2 + $0xb8] sm:$0x3] %vm185_vm1, %v2682_v0 }
  0x24   : > { %210 = vst.msk [vmem:[#allocation2 + $0xd0] sm:$0x3] %vm185_vm1, %v2682_v0  ;;  %213 = vst.msk [vmem:[#allocation2 + $0xe8] sm:$0x3] %vm185_vm1, %v2682_v0 }
  0x25   : > { %216 = vst.msk [vmem:[#allocation2 + $0x100] sm:$0x3] %vm185_vm1, %v2682_v0  ;;  %219 = vst.msk [vmem:[#allocation2 + $0x118] sm:$0x3] %vm185_vm1, %v2682_v0 }
  0x26   : > { %222 = vst.msk [vmem:[#allocation2 + $0x130] sm:$0x3] %vm185_vm1, %v2682_v0  ;;  %225 = vst.msk [vmem:[#allocation2 + $0x148] sm:$0x3] %vm185_vm1, %v2682_v0 }
  0x27   : > { %228 = vst.msk [vmem:[#allocation2 + $0x160] sm:$0x3] %vm185_vm1, %v2682_v0  ;;  %231 = vst.msk [vmem:[#allocation2 + $0x178] sm:$0x3] %vm185_vm1, %v2682_v0  ;;  %v336_v8 = vld [vmem:[#allocation2 + $0x9] sm:$0xff] }
  0x28   : > { %234 = vst.msk [vmem:[#allocation2 + $0x190] sm:$0x3] %vm185_vm1, %v2682_v0  ;;  %237 = vst.msk [vmem:[#allocation2 + $0x1a8] sm:$0x3] %vm185_vm1, %v2682_v0  ;;  %626 = vrot.lane.b32.xlu0 %v336_v8, %s2683_s19 }
  0x29   : > { %271 = vst.msk [vmem:[#allocation2 + $0x19] sm:$0xff] %vm182_vm0, %v238_v1  ;;  %273 = vst.msk [vmem:[#allocation2 + $0x31] sm:$0xff] %vm182_vm0, %v240_v2  ;;  %v368_v1 = vld [vmem:[#allocation2 + $0xa] sm:$0xff] }
  0x2a   : > { %272 = vst.msk [vmem:[#allocation2 + $0x21] sm:$0xff] %vm182_vm0, %v239_v3  ;;  %275 = vst.msk [vmem:[#allocation2 + $0x49] sm:$0xff] %vm182_vm0, %v242_v4 }
  0x2b   : > { %274 = vst.msk [vmem:[#allocation2 + $0x39] sm:$0xff] %vm182_vm0, %v241_v5  ;;  %277 = vst.msk [vmem:[#allocation2 + $0x61] sm:$0xff] %vm182_vm0, %v244_v6 }
  0x2c   : > { %276 = vst.msk [vmem:[#allocation2 + $0x51] sm:$0xff] %vm182_vm0, %v243_v9  ;;  %279 = vst.msk [vmem:[#allocation2 + $0x79] sm:$0xff] %vm182_vm0, %v246_v10 }
  0x2d   : > { %278 = vst.msk [vmem:[#allocation2 + $0x69] sm:$0xff] %vm182_vm0, %v245_v11  ;;  %281 = vst.msk [vmem:[#allocation2 + $0x91] sm:$0xff] %vm182_vm0, %v248_v12 }
  0x2e   : > { %280 = vst.msk [vmem:[#allocation2 + $0x81] sm:$0xff] %vm182_vm0, %v247_v13  ;;  %283 = vst.msk [vmem:[#allocation2 + $0xa9] sm:$0xff] %vm182_vm0, %v250_v14 }
  0x2f   : > { %282 = vst.msk [vmem:[#allocation2 + $0x99] sm:$0xff] %vm182_vm0, %v249_v15  ;;  %285 = vst.msk [vmem:[#allocation2 + $0xc1] sm:$0xff] %vm182_vm0, %v252_v16 }
  0x30   : > { %284 = vst.msk [vmem:[#allocation2 + $0xb1] sm:$0xff] %vm182_vm0, %v251_v17  ;;  %287 = vst.msk [vmem:[#allocation2 + $0xd9] sm:$0xff] %vm182_vm0, %v254_v18  ;;  %v2836_v25 = vld [vmem:[#allocation2 + $0x19] sm:$0xff]  ;;  %v2838_v26 = vld [vmem:[#allocation2 + $0x31] sm:$0xff] }
  0x31   : > { %286 = vst.msk [vmem:[#allocation2 + $0xc9] sm:$0xff] %vm182_vm0, %v253_v19  ;;  %289 = vst.msk [vmem:[#allocation2 + $0xf1] sm:$0xff] %vm182_vm0, %v256_v20  ;;  %628 = vrot.lane.b32.xlu1 %v2836_v25, %s2683_s19  ;;  %v2845_v27 = vld [vmem:[#allocation2 + $0x21] sm:$0xff]  ;;  %632 = vrot.lane.b32.xlu0 %v2838_v26, %s2683_s19  ;;  %v2853_v30 = vld [vmem:[#allocation2 + $0x49] sm:$0xff] }
  0x32   : > { %288 = vst.msk [vmem:[#allocation2 + $0xe1] sm:$0xff] %vm182_vm0, %v255_v21  ;;  %291 = vst.msk [vmem:[#allocation2 + $0x109] sm:$0xff] %vm182_vm0, %v258_v22  ;;  %v2857_v31 = vld [vmem:[#allocation2 + $0x39] sm:$0xff]  ;;  %v2861_v32 = vld [vmem:[#allocation2 + $0x61] sm:$0xff] }
  0x33   : > { %290 = vst.msk [vmem:[#allocation2 + $0xf9] sm:$0xff] %vm182_vm0, %v257_v23  ;;  %293 = vst.msk [vmem:[#allocation2 + $0x121] sm:$0xff] %vm182_vm0, %v260_v24  ;;  %v2873_v38 = vld [vmem:[#allocation2 + $0x51] sm:$0xff]  ;;  %v2881_v40 = vld [vmem:[#allocation2 + $0x79] sm:$0xff] }
  0x34   : > { %292 = vst.msk [vmem:[#allocation2 + $0x111] sm:$0xff] %vm182_vm0, %v259_v28  ;;  %295 = vst.msk [vmem:[#allocation2 + $0x139] sm:$0xff] %vm182_vm0, %v262_v29  ;;  %v2885_v41 = vld [vmem:[#allocation2 + $0x69] sm:$0xff]  ;;  %v2889_v42 = vld [vmem:[#allocation2 + $0x91] sm:$0xff] }
  0x35   : > { %630 = vrot.lane.b32.xlu1 %v2845_v27, %s2683_s19  ;;  %636 = vrot.lane.b32.xlu0 %v2853_v30, %s2683_s19  ;;  %294 = vst.msk [vmem:[#allocation2 + $0x129] sm:$0xff] %vm182_vm0, %v261_v33  ;;  %297 = vst.msk [vmem:[#allocation2 + $0x151] sm:$0xff] %vm182_vm0, %v264_v34  ;;  %v2893_v43 = vld [vmem:[#allocation2 + $0x81] sm:$0xff]  ;;  %v2897_v44 = vld [vmem:[#allocation2 + $0xa9] sm:$0xff] }
  0x36   : > { %296 = vst.msk [vmem:[#allocation2 + $0x141] sm:$0xff] %vm182_vm0, %v263_v35  ;;  %299 = vst.msk [vmem:[#allocation2 + $0x169] sm:$0xff] %vm182_vm0, %v266_v36  ;;  %v2901_v45 = vld [vmem:[#allocation2 + $0x99] sm:$0xff]  ;;  %v351_v46 = vld [vmem:[#allocation2 + $0xc1] sm:$0xff] }
  0x37   : > { %298 = vst.msk [vmem:[#allocation2 + $0x159] sm:$0xff] %vm182_vm0, %v265_v37  ;;  %300 = vst.msk [vmem:[#allocation2 + $0x171] sm:$0xff] %vm182_vm0, %v267_v39  ;;  %v2907_v47 = vld [vmem:[#allocation2 + $0xb1] sm:$0xff]  ;;  %v353_v48 = vld [vmem:[#allocation2 + $0xd9] sm:$0xff] }
  0x38   : > { %v352_v49 = vld [vmem:[#allocation2 + $0xc9] sm:$0xff]  ;;  %v355_v50 = vld [vmem:[#allocation2 + $0xf1] sm:$0xff]  ;;  %v2927_v0 = vld [vmem:[#allocation2 + $0x1a] sm:$0xff] }
  0x39   : > { %634 = vrot.lane.b32.xlu1 %v2857_v31, %s2683_s19  ;;  %640 = vrot.lane.b32.xlu0 %v2861_v32, %s2683_s19  ;;  %v354_v51 = vld [vmem:[#allocation2 + $0xe1] sm:$0xff]  ;;  %v357_v52 = vld [vmem:[#allocation2 + $0x109] sm:$0xff]  ;;  %v2932_v2 = vld [vmem:[#allocation2 + $0x32] sm:$0xff] }
  0x3a   : > { %v356_v53 = vld [vmem:[#allocation2 + $0xf9] sm:$0xff]  ;;  %v359_v54 = vld [vmem:[#allocation2 + $0x121] sm:$0xff]  ;;  %v2939_v4 = vld [vmem:[#allocation2 + $0x4a] sm:$0xff] }
  0x3b   : > { %v358_v55 = vld [vmem:[#allocation2 + $0x111] sm:$0xff]  ;;  %v361_v56 = vld [vmem:[#allocation2 + $0x139] sm:$0xff]  ;;  %v2935_v3 = vld [vmem:[#allocation2 + $0x22] sm:$0xff] }
  0x3c   : > { %v360_v57 = vld [vmem:[#allocation2 + $0x129] sm:$0xff]  ;;  %v363_v58 = vld [vmem:[#allocation2 + $0x151] sm:$0xff]  ;;  %v2943_v5 = vld [vmem:[#allocation2 + $0x3a] sm:$0xff] }
  0x3d   : > { %638 = vrot.lane.b32.xlu1 %v2873_v38, %s2683_s19  ;;  %644 = vrot.lane.b32.xlu0 %v2881_v40, %s2683_s19  ;;  %v362_v59 = vld [vmem:[#allocation2 + $0x141] sm:$0xff]  ;;  %v365_v60 = vld [vmem:[#allocation2 + $0x169] sm:$0xff]  ;;  %v2951_v7 = vld [vmem:[#allocation2 + $0x52] sm:$0xff] }
  0x3e   : > { %v364_v61 = vld [vmem:[#allocation2 + $0x159] sm:$0xff]  ;;  %v366_v63 = vld [vmem:[#allocation2 + $0x171] sm:$0xff]  ;;  %v2947_v6 = vld [vmem:[#allocation2 + $0x62] sm:$0xff] }
  0x3f   : > { %v2955_v8 = vld [vmem:[#allocation2 + $0x7a] sm:$0xff]  ;;  %v2959_v9 = vld [vmem:[#allocation2 + $0x6a] sm:$0xff]  ;;  %v2963_v10 = vld [vmem:[#allocation2 + $0x92] sm:$0xff] }
  0x40   : > { %v2967_v11 = vld [vmem:[#allocation2 + $0x82] sm:$0xff]  ;;  %v2971_v12 = vld [vmem:[#allocation2 + $0xaa] sm:$0xff]  ;;  %v2975_v13 = vld [vmem:[#allocation2 + $0x9a] sm:$0xff] }
  0x41   : > { %642 = vrot.lane.b32.xlu1 %v2885_v41, %s2683_s19  ;;  %648 = vrot.lane.b32.xlu0 %v2889_v42, %s2683_s19  ;;  %v2979_v14 = vld [vmem:[#allocation2 + $0xc2] sm:$0xff]  ;;  %v2983_v15 = vld [vmem:[#allocation2 + $0xb2] sm:$0xff]  ;;  %v2987_v16 = vld [vmem:[#allocation2 + $0xda] sm:$0xff] }
  0x42   : > { %v2991_v17 = vld [vmem:[#allocation2 + $0xca] sm:$0xff]  ;;  %v387_v18 = vld [vmem:[#allocation2 + $0xf2] sm:$0xff]  ;;  %v2997_v19 = vld [vmem:[#allocation2 + $0xe2] sm:$0xff] }
  0x43   : > { %v389_v20 = vld [vmem:[#allocation2 + $0x10a] sm:$0xff]  ;;  %v388_v21 = vld [vmem:[#allocation2 + $0xfa] sm:$0xff]  ;;  %v391_v22 = vld [vmem:[#allocation2 + $0x122] sm:$0xff] }
  0x44   : > { %v390_v23 = vld [vmem:[#allocation2 + $0x112] sm:$0xff]  ;;  %v393_v24 = vld [vmem:[#allocation2 + $0x13a] sm:$0xff]  ;;  %v392_v29 = vld [vmem:[#allocation2 + $0x12a] sm:$0xff] }
  0x45   : > { %646 = vrot.lane.b32.xlu1 %v2893_v43, %s2683_s19  ;;  %652 = vrot.lane.b32.xlu0 %v2897_v44, %s2683_s19  ;;  %v395_v33 = vld [vmem:[#allocation2 + $0x152] sm:$0xff]  ;;  %v394_v35 = vld [vmem:[#allocation2 + $0x142] sm:$0xff]  ;;  %v397_v37 = vld [vmem:[#allocation2 + $0x16a] sm:$0xff] }
  0x49   : > { %650 = vrot.lane.b32.xlu1 %v2901_v45, %s2683_s19  ;;  %656 = vrot.lane.b32.xlu0 %v351_v46, %s2683_s19  ;;  %v396_v46 = vld [vmem:[#allocation2 + $0x15a] sm:$0xff] }
  0x4d   : > { %654 = vrot.lane.b32.xlu1 %v2907_v47, %s2683_s19  ;;  %660 = vrot.lane.b32.xlu0 %v353_v48, %s2683_s19 }
  0x51   : > { %658 = vrot.lane.b32.xlu1 %v352_v49, %s2683_s19  ;;  %664 = vrot.lane.b32.xlu0 %v355_v50, %s2683_s19  ;;  %v3024_v50 = vld [vmem:[#allocation2 + $0x18] sm:$0xff] }
  0x55   : > { %662 = vrot.lane.b32.xlu1 %v354_v51, %s2683_s19  ;;  %668 = vrot.lane.b32.xlu0 %v357_v52, %s2683_s19  ;;  %v398_v51 = vld [vmem:[#allocation2 + $0x172] sm:$0xff] }
  0x59   : > { %666 = vrot.lane.b32.xlu1 %v356_v53, %s2683_s19  ;;  %672 = vrot.lane.b32.xlu0 %v359_v54, %s2683_s19  ;;  %v3033_v54 = vld [vmem:[#allocation2 + $0x30] sm:$0xff] }
  0x5d   : > { %670 = vrot.lane.b32.xlu1 %v358_v55, %s2683_s19  ;;  %676 = vrot.lane.b32.xlu0 %v361_v56, %s2683_s19  ;;  %v3039_v56 = vld [vmem:[#allocation2 + $0x20] sm:$0xff] }
  0x61   : > { %674 = vrot.lane.b32.xlu1 %v360_v57, %s2683_s19  ;;  %680 = vrot.lane.b32.xlu0 %v363_v58, %s2683_s19  ;;  %v3045_v58 = vld [vmem:[#allocation2 + $0x48] sm:$0xff] }
  0x65   : > { %678 = vrot.lane.b32.xlu1 %v362_v59, %s2683_s19  ;;  %684 = vrot.lane.b32.xlu0 %v365_v60, %s2683_s19  ;;  %v3051_v60 = vld [vmem:[#allocation2 + $0x38] sm:$0xff] }
  0x69   : > { %682 = vrot.lane.b32.xlu1 %v364_v61, %s2683_s19  ;;  %752 = vrot.lane.b32.xlu0 %v367_v62, %s2684_s20  ;;  %v3057_v62 = vld [vmem:[#allocation2 + $0x60] sm:$0xff] }
  0x6d   : > { %686 = vrot.lane.b32.xlu1 %v366_v63, %s2683_s19  ;;  %756 = vrot.lane.b32.xlu0 %v2927_v0, %s2684_s20 }
  0x71   : > { %754 = vrot.lane.b32.xlu1 %v368_v1, %s2684_s20  ;;  %760 = vrot.lane.b32.xlu0 %v2932_v2, %s2684_s20  ;;  %v3063_v1 = vld [vmem:[#allocation2 + $0x50] sm:$0xff] }
  0x75   : > { %758 = vrot.lane.b32.xlu1 %v2935_v3, %s2684_s20  ;;  %764 = vrot.lane.b32.xlu0 %v2939_v4, %s2684_s20 }
  0x79   : > { %762 = vrot.lane.b32.xlu1 %v2943_v5, %s2684_s20  ;;  %768 = vrot.lane.b32.xlu0 %v2947_v6, %s2684_s20 }
  0x7d   : > { %766 = vrot.lane.b32.xlu1 %v2951_v7, %s2684_s20  ;;  %772 = vrot.lane.b32.xlu0 %v2955_v8, %s2684_s20 }
  0x81   : > { %770 = vrot.lane.b32.xlu1 %v2959_v9, %s2684_s20  ;;  %776 = vrot.lane.b32.xlu0 %v2963_v10, %s2684_s20 }
  0x85   : > { %774 = vrot.lane.b32.xlu1 %v2967_v11, %s2684_s20  ;;  %780 = vrot.lane.b32.xlu0 %v2971_v12, %s2684_s20 }
  0x88   : > { %v3005_v28 = vpop.permute.xlu0 %624 }
  0x89   : > { %778 = vrot.lane.b32.xlu1 %v2975_v13, %s2684_s20  ;;  %784 = vrot.lane.b32.xlu0 %v2979_v14, %s2684_s20 }
  0x8d   : > { %782 = vrot.lane.b32.xlu1 %v2983_v15, %s2684_s20  ;;  %788 = vrot.lane.b32.xlu0 %v2987_v16, %s2684_s20 }
  0x91   : > { %786 = vrot.lane.b32.xlu1 %v2991_v17, %s2684_s20  ;;  %792 = vrot.lane.b32.xlu0 %v387_v18, %s2684_s20 }
  0x95   : > { %790 = vrot.lane.b32.xlu1 %v2997_v19, %s2684_s20  ;;  %796 = vrot.lane.b32.xlu0 %v389_v20, %s2684_s20  ;;  %v3069_v20 = vld [vmem:[#allocation2 + $0x78] sm:$0xff] }
  0x99   : > { %794 = vrot.lane.b32.xlu1 %v388_v21, %s2684_s20  ;;  %800 = vrot.lane.b32.xlu0 %v391_v22, %s2684_s20  ;;  %v3075_v22 = vld [vmem:[#allocation2 + $0x68] sm:$0xff] }
  0x9a   : > { %v3009_v34 = vpop.permute.xlu0 %626 }
  0x9d   : > { %798 = vrot.lane.b32.xlu1 %v390_v23, %s2684_s20  ;;  %804 = vrot.lane.b32.xlu0 %v393_v24, %s2684_s20  ;;  %v3081_v24 = vld [vmem:[#allocation2 + $0x90] sm:$0xff] }
  0x9e   : > { %4099 = vst [vmem:[#allocation7_spill] sm:$0xff] %v3081_v24 }
  0xa1   : > { %802 = vrot.lane.b32.xlu1 %v392_v29, %s2684_s20  ;;  %808 = vrot.lane.b32.xlu0 %v395_v33, %s2684_s20  ;;  %v3087_v33 = vld [vmem:[#allocation2 + $0x80] sm:$0xff] }
  0xa2   : > { %4101 = vst [vmem:[#allocation9_spill] sm:$0xff] %v3087_v33 }
  0xa3   : > { %v3013_v36 = vpop.permute.xlu1 %628  ;;  %v3015_v39 = vpop.permute.xlu0 %632 }
  0xa5   : > { %806 = vrot.lane.b32.xlu1 %v394_v35, %s2684_s20  ;;  %812 = vrot.lane.b32.xlu0 %v397_v37, %s2684_s20  ;;  %v3093_v37 = vld [vmem:[#allocation2 + $0xa8] sm:$0xff] }
  0xa6   : > { %4103 = vst [vmem:[#allocation11_spill] sm:$0xff] %v3093_v37 }
  0xa7   : > { %v3019_v48 = vpop.permute.xlu1 %630  ;;  %v3021_v49 = vpop.permute.xlu0 %636 }
  0xa9   : > { %810 = vrot.lane.b32.xlu1 %v396_v46, %s2684_s20  ;;  %880 = vrot.lane.b32.xlu0 %v3024_v50, %s2685_s21 }
  0xab   : > { %v3028_v52 = vpop.permute.xlu1 %634  ;;  %v3030_v53 = vpop.permute.xlu0 %640 }
  0xad   : > { %814 = vrot.lane.b32.xlu1 %v398_v51, %s2684_s20  ;;  %884 = vrot.lane.b32.xlu0 %v3033_v54, %s2685_s21  ;;  %v3099_v51 = vld [vmem:[#allocation2 + $0x98] sm:$0xff] }
  0xae   : > { %4105 = vst [vmem:[#allocation13_spill] sm:$0xff] %v3099_v51 }
  0xaf   : > { %v3037_v55 = vpop.permute.xlu1 %638  ;;  %v3041_v57 = vpop.permute.xlu0 %644 }
  0xb1   : > { %882 = vrot.lane.b32.xlu1 %v3039_v56, %s2685_s21  ;;  %888 = vrot.lane.b32.xlu0 %v3045_v58, %s2685_s21 }
  0xb3   : > { %v3049_v59 = vpop.permute.xlu1 %642  ;;  %v3053_v61 = vpop.permute.xlu0 %648 }
  0xb4   : > { %4095 = vst [vmem:[#allocation3_spill] sm:$0xff] %v3053_v61  ;;  %v1881_v61 = vld [vmem:[%s4086_s1 + $0x10] sm:$0xff] }
  0xb5   : > { %886 = vrot.lane.b32.xlu1 %v3051_v60, %s2685_s21  ;;  %892 = vrot.lane.b32.xlu0 %v3057_v62, %s2685_s21 }
  0xb7   : > { %v3061_v63 = vpop.permute.xlu1 %646  ;;  %v3065_v18 = vpop.permute.xlu0 %652 }
  0xb8   : > { %4096 = vst [vmem:[#allocation4_spill] sm:$0xff] %v3065_v18 }
  0xb9   : > { %890 = vrot.lane.b32.xlu1 %v3063_v1, %s2685_s21  ;;  %896 = vrot.lane.b32.xlu0 %v3069_v20, %s2685_s21 }
  0xbb   : > { %v3073_v21 = vpop.permute.xlu1 %650  ;;  %v3077_v23 = vpop.permute.xlu0 %656 }
  0xbc   : > { %4097 = vst [vmem:[#allocation5_spill] sm:$0xff] %v3073_v21  ;;  %4098 = vst [vmem:[#allocation6_spill] sm:$0xff] %v3077_v23  ;;  %v3115_v21 = vld [vmem:[#allocation2 + $0xb0] sm:$0xff] }
  0xbd   : > { %894 = vrot.lane.b32.xlu1 %v3075_v22, %s2685_s21  ;;  %900 = vrot.lane.b32.xlu0 %v3081_v24, %s2685_s21  ;;  %4108 = vst [vmem:[#allocation16_spill] sm:$0xff] %v3115_v21 }
  0xbf   : > { %v3085_v29 = vpop.permute.xlu1 %654  ;;  %v3089_v35 = vpop.permute.xlu0 %660 }
  0xc0   : > { %4100 = vst [vmem:[#allocation8_spill] sm:$0xff] %v3085_v29  ;;  %4102 = vst [vmem:[#allocation10_spill] sm:$0xff] %v3089_v35  ;;  %v1879_v35 = vld [vmem:[%s4086_s1] sm:$0xff]  ;;  %v1880_v29 = vld [vmem:[%s4086_s1 + $0x8] sm:$0xff] }
  0xc1   : > { %898 = vrot.lane.b32.xlu1 %v3087_v33, %s2685_s21  ;;  %904 = vrot.lane.b32.xlu0 %v3093_v37, %s2685_s21  ;;  %v2643_v18 = vpack.c.bf16 %v1880_v29, %v1879_v35 }
  0xc3   : > { %v3097_v46 = vpop.permute.xlu1 %658  ;;  %v3101_v23 = vpop.permute.xlu0 %664  ;;  %2644 = vmatprep.subr.bf16.mxu0 %v2643_v18  ;;  %2651 = vmatprep.subr.bf16.mxu1 %v2643_v18 }
  0xc4   : > { %4104 = vst [vmem:[#allocation12_spill] sm:$0xff] %v3097_v46  ;;  %4106 = vst [vmem:[#allocation14_spill] sm:$0xff] %v3101_v23  ;;  %2646 = vmatpush3.bf16.msra.mxu0 %v2643_v18  ;;  %2654 = vmatpush3.bf16.msra.mxu1 %v2643_v18 }
  0xc5   : > { %902 = vrot.lane.b32.xlu1 %v3099_v51, %s2685_s21  ;;  %1008 = vrot.lane.b32.xlu0 %v2836_v25, %s2686_s26  ;;  %v1882_v25 = vld [vmem:[%s4086_s1 + $0x18] sm:$0xff] }
  0xc6   : > { %v2647_v35 = vpack.c.bf16 %v1882_v25, %v1881_v61 }
  0xc7   : > { %v3113_v46 = vpop.permute.xlu1 %662  ;;  %v3117_v23 = vpop.permute.xlu0 %668 }
  0xc8   : > { %4107 = vst [vmem:[#allocation15_spill] sm:$0xff] %v3113_v46  ;;  %4109 = vst [vmem:[#allocation17_spill] sm:$0xff] %v3117_v23  ;;  %2648 = vmatprep.subr.bf16.mxu0 %v2647_v35  ;;  %2652 = vmatprep.subr.bf16.mxu1 %v2647_v35 }
  0xc9   : > { %906 = vrot.lane.b32.xlu1 %v3115_v21, %s2685_s21  ;;  %1136 = vrot.lane.b32.xlu0 %v2927_v0, %s2687_s4  ;;  %v1883_v0 = vld [vmem:[%s4086_s1 + $0x20] sm:$0xf] }
  0xca   : > { %2650 = vmatpush3.bf16.msra.mxu0 %v2647_v35  ;;  %2655 = vmatpush3.bf16.msra.mxu1 %v2647_v35 }
  0xcb   : > { %v3129_v29 = vpop.permute.xlu1 %666  ;;  %v3131_v23 = vpop.permute.xlu0 %672  ;;  %2593 = vmatprep.subr.msk.mxu0 %vm1981_vm2, %v1883_v0  ;;  %2653 = vmatprep.subr.msk.mxu1 %vm1981_vm2, %v1883_v0 }
  0xcc   : > { %4110 = vst [vmem:[#allocation18_spill] sm:$0xff] %v3129_v29  ;;  %4111 = vst [vmem:[#allocation19_spill] sm:$0xff] %v3131_v23 }
  0xcd   : > { %1010 = vrot.lane.b32.xlu1 %v2845_v27, %s2686_s26  ;;  %1264 = vrot.lane.b32.xlu0 %v3033_v54, %s2688_s5 }
  0xce   : > { %2594 = vmatpush3.msk.msra.mxu0 %vm1981_vm2, %v1883_v0  ;;  %2656 = vmatpush3.msk.msra.mxu1 %vm1981_vm2, %v1883_v0 }
  0xcf   : > { %v3137_v46 = vpop.permute.xlu1 %670  ;;  %v3142_v61 = vpop.permute.xlu0 %676 }
  0xd0   : > { %4112 = vst [vmem:[#allocation20_spill] sm:$0xff] %v3137_v46  ;;  %4113 = vst [vmem:[#allocation21_spill] sm:$0xff] %v3142_v61 }
  0xd1   : > { %1138 = vrot.lane.b32.xlu1 %v2935_v3, %s2687_s4  ;;  %1392 = vrot.lane.b32.xlu0 %v2838_v26, %s2689_s8 }
  0xd3   : > { %v3148_v27 = vpop.permute.xlu1 %674  ;;  %v3150_v18 = vpop.permute.xlu0 %680 }
  0xd4   : > { %4114 = vst [vmem:[#allocation22_spill] sm:$0xff] %v3148_v27  ;;  %4115 = vst [vmem:[#allocation23_spill] sm:$0xff] %v3150_v18 }
  0xd5   : > { %1266 = vrot.lane.b32.xlu1 %v3051_v60, %s2688_s5  ;;  %1394 = vrot.lane.b32.xlu0 %v2857_v31, %s2689_s8 }
  0xd7   : > { %v3156_v25 = vpop.permute.xlu1 %678  ;;  %v3158_v35 = vpop.permute.xlu0 %684 }
  0xd8   : > { %4116 = vst [vmem:[#allocation24_spill] sm:$0xff] %v3156_v25  ;;  %4117 = vst [vmem:[#allocation25_spill] sm:$0xff] %v3158_v35 }
  0xd9   : > { %1012 = vrot.lane.b32.xlu1 %v2838_v26, %s2686_s26  ;;  %1014 = vrot.lane.b32.xlu0 %v2857_v31, %s2686_s26 }
  0xdb   : > { %v3164_v3 = vpop.permute.xlu1 %682  ;;  %v3166_v0 = vpop.permute.xlu0 %752 }
  0xdc   : > { %4118 = vst [vmem:[#allocation26_spill] sm:$0xff] %v3164_v3 }
  0xdd   : > { %1520 = vrot.lane.b32.xlu1 %v2932_v2, %s2690_s9  ;;  %1522 = vrot.lane.b32.xlu0 %v2943_v5, %s2690_s9 }
  0xdf   : > { %v3172_v18 = vpop.permute.xlu1 %686  ;;  %v3174_v35 = vpop.permute.xlu0 %756 }
  0xe0   : > { %4119 = vst [vmem:[#allocation27_spill] sm:$0xff] %v3172_v18 }
  0xe1   : > { %1140 = vrot.lane.b32.xlu1 %v2932_v2, %s2687_s4  ;;  %1268 = vrot.lane.b32.xlu0 %v3045_v58, %s2688_s5 }
  0xe3   : > { %v3180_v26 = vpop.permute.xlu1 %754  ;;  %v3182_v31 = vpop.permute.xlu0 %760 }
  0xe5   : > { %1142 = vrot.lane.b32.xlu1 %v2943_v5, %s2687_s4  ;;  %1396 = vrot.lane.b32.xlu0 %v2853_v30, %s2689_s8 }
  0xe7   : > { %v3188_v3 = vpop.permute.xlu1 %758  ;;  %v3190_v18 = vpop.permute.xlu0 %764 }
  0xe9   : > { %1270 = vrot.lane.b32.xlu1 %v3063_v1, %s2688_s5  ;;  %1398 = vrot.lane.b32.xlu0 %v2873_v38, %s2689_s8 }
  0xeb   : > { %v3196_v2 = vpop.permute.xlu1 %762  ;;  %v3198_v25 = vpop.permute.xlu0 %768 }
  0xed   : > { %1016 = vrot.lane.b32.xlu1 %v2853_v30, %s2686_s26  ;;  %1018 = vrot.lane.b32.xlu0 %v2873_v38, %s2686_s26 }
  0xef   : > { %v3204_v5 = vpop.permute.xlu1 %766  ;;  %v3206_v61 = vpop.permute.xlu0 %772 }
  0xf1   : > { %1524 = vrot.lane.b32.xlu1 %v2939_v4, %s2690_s9  ;;  %1526 = vrot.lane.b32.xlu0 %v2951_v7, %s2690_s9 }
  0xf3   : > { %v3212_v27 = vpop.permute.xlu1 %770  ;;  %v3214_v23 = vpop.permute.xlu0 %776 }
  0xf4   : > { %4120 = vst [vmem:[#allocation28_spill] sm:$0xff] %v3214_v23 }
  0xf5   : > { %1144 = vrot.lane.b32.xlu1 %v2939_v4, %s2687_s4  ;;  %1272 = vrot.lane.b32.xlu0 %v3057_v62, %s2688_s5 }
  0xf7   : > { %v3220_v30 = vpop.permute.xlu1 %774  ;;  %v3222_v38 = vpop.permute.xlu0 %780 }
  0xf8   : > { %4121 = vst [vmem:[#allocation29_spill] sm:$0xff] %v3220_v30  ;;  %4122 = vst [vmem:[#allocation30_spill] sm:$0xff] %v3222_v38 }
  0xf9   : > { %1146 = vrot.lane.b32.xlu1 %v2951_v7, %s2687_s4  ;;  %1400 = vrot.lane.b32.xlu0 %v2861_v32, %s2689_s8 }
  0xfb   : > { %v3228_v46 = vpop.permute.xlu1 %778  ;;  %v3230_v29 = vpop.permute.xlu0 %784 }
  0xfc   : > { %4123 = vst [vmem:[#allocation31_spill] sm:$0xff] %v3228_v46  ;;  %4124 = vst [vmem:[#allocation32_spill] sm:$0xff] %v3230_v29 }
  0xfd   : > { %1274 = vrot.lane.b32.xlu1 %v3075_v22, %s2688_s5  ;;  %1402 = vrot.lane.b32.xlu0 %v2885_v41, %s2689_s8 }
  0xff   : > { %v3236_v4 = vpop.permute.xlu1 %782  ;;  %v3238_v23 = vpop.permute.xlu0 %788 }
 0x100   : > { %4125 = vst [vmem:[#allocation33_spill] sm:$0xff] %v3236_v4  ;;  %4126 = vst [vmem:[#allocation34_spill] sm:$0xff] %v3238_v23 }
 0x101   : > { %1020 = vrot.lane.b32.xlu1 %v2861_v32, %s2686_s26  ;;  %1022 = vrot.lane.b32.xlu0 %v2885_v41, %s2686_s26 }
 0x103   : > { %v3244_v7 = vpop.permute.xlu1 %786  ;;  %v3246_v38 = vpop.permute.xlu0 %792 }
 0x104   : > { %4127 = vst [vmem:[#allocation35_spill] sm:$0xff] %v3244_v7  ;;  %4128 = vst [vmem:[#allocation36_spill] sm:$0xff] %v3246_v38 }
 0x105   : > { %1528 = vrot.lane.b32.xlu1 %v2947_v6, %s2690_s9  ;;  %1530 = vrot.lane.b32.xlu0 %v2959_v9, %s2690_s9 }
 0x107   : > { %v3252_v29 = vpop.permute.xlu1 %790  ;;  %v3254_v4 = vpop.permute.xlu0 %796 }
 0x108   : > { %4129 = vst [vmem:[#allocation37_spill] sm:$0xff] %v3252_v29  ;;  %4130 = vst [vmem:[#allocation38_spill] sm:$0xff] %v3254_v4 }
 0x109   : > { %1148 = vrot.lane.b32.xlu1 %v2947_v6, %s2687_s4  ;;  %1276 = vrot.lane.b32.xlu0 %v3069_v20, %s2688_s5 }
 0x10b   : > { %v3260_v32 = vpop.permute.xlu1 %794  ;;  %v3262_v41 = vpop.permute.xlu0 %800 }
 0x10c   : > { %4131 = vst [vmem:[#allocation39_spill] sm:$0xff] %v3260_v32  ;;  %4132 = vst [vmem:[#allocation40_spill] sm:$0xff] %v3262_v41 }
 0x10d   : > { %1150 = vrot.lane.b32.xlu1 %v2959_v9, %s2687_s4  ;;  %1404 = vrot.lane.b32.xlu0 %v2881_v40, %s2689_s8 }
 0x10f   : > { %v3268_v38 = vpop.permute.xlu1 %798  ;;  %v3270_v29 = vpop.permute.xlu0 %804 }
 0x110   : > { %4133 = vst [vmem:[#allocation41_spill] sm:$0xff] %v3268_v38  ;;  %4134 = vst [vmem:[#allocation42_spill] sm:$0xff] %v3270_v29 }
 0x111   : > { %1278 = vrot.lane.b32.xlu1 %v3087_v33, %s2688_s5  ;;  %1406 = vrot.lane.b32.xlu0 %v2893_v43, %s2689_s8 }
 0x113   : > { %v3276_v6 = vpop.permute.xlu1 %802  ;;  %v3278_v4 = vpop.permute.xlu0 %808 }
 0x114   : > { %4135 = vst [vmem:[#allocation43_spill] sm:$0xff] %v3276_v6  ;;  %4136 = vst [vmem:[#allocation44_spill] sm:$0xff] %v3278_v4 }
 0x115   : > { %1024 = vrot.lane.b32.xlu1 %v2881_v40, %s2686_s26  ;;  %1026 = vrot.lane.b32.xlu0 %v2893_v43, %s2686_s26 }
 0x117   : > { %v3284_v9 = vpop.permute.xlu1 %806  ;;  %v3286_v41 = vpop.permute.xlu0 %812 }
 0x118   : > { %4137 = vst [vmem:[#allocation45_spill] sm:$0xff] %v3284_v9  ;;  %4138 = vst [vmem:[#allocation46_spill] sm:$0xff] %v3286_v41 }
 0x119   : > { %1532 = vrot.lane.b32.xlu1 %v2955_v8, %s2690_s9  ;;  %1534 = vrot.lane.b32.xlu0 %v2967_v11, %s2690_s9 }
 0x11b   : > { %v3292_v29 = vpop.permute.xlu1 %810  ;;  %v881_v6 = vpop.permute.xlu0 %880 }
 0x11c   : > { %4139 = vst [vmem:[#allocation47_spill] sm:$0xff] %v3292_v29 }
 0x11d   : > { %1152 = vrot.lane.b32.xlu1 %v2955_v8, %s2687_s4  ;;  %1280 = vrot.lane.b32.xlu0 %v3081_v24, %s2688_s5 }
 0x11f   : > { %v3298_v40 = vpop.permute.xlu1 %814  ;;  %v3300_v43 = vpop.permute.xlu0 %884 }
 0x120   : > { %4140 = vst [vmem:[#allocation48_spill] sm:$0xff] %v3298_v40 }
 0x121   : > { %1154 = vrot.lane.b32.xlu1 %v2967_v11, %s2687_s4  ;;  %1408 = vrot.lane.b32.xlu0 %v2889_v42, %s2689_s8 }
 0x123   : > { %v883_v41 = vpop.permute.xlu1 %882  ;;  %v3306_v4 = vpop.permute.xlu0 %888 }
 0x125   : > { %1282 = vrot.lane.b32.xlu1 %v3099_v51, %s2688_s5  ;;  %1410 = vrot.lane.b32.xlu0 %v2901_v45, %s2689_s8  ;;  %v3362_v51 = vld [vmem:[#allocation2 + $0xc0] sm:$0xff] }
 0x127   : > { %v3312_v8 = vpop.permute.xlu1 %886  ;;  %v3314_v40 = vpop.permute.xlu0 %892 }
 0x129   : > { %1028 = vrot.lane.b32.xlu1 %v2889_v42, %s2686_s26  ;;  %1030 = vrot.lane.b32.xlu0 %v2901_v45, %s2686_s26 }
 0x12b   : > { %v3320_v11 = vpop.permute.xlu1 %890  ;;  %v3322_v29 = vpop.permute.xlu0 %896 }
 0x12d   : > { %1536 = vrot.lane.b32.xlu1 %v2963_v10, %s2690_s9  ;;  %1538 = vrot.lane.b32.xlu0 %v2975_v13, %s2690_s9 }
 0x12f   : > { %v3328_v9 = vpop.permute.xlu1 %894  ;;  %v3330_v38 = vpop.permute.xlu0 %900 }
 0x130   : > { %4141 = vst [vmem:[#allocation49_spill] sm:$0xff] %v3330_v38 }
 0x131   : > { %1156 = vrot.lane.b32.xlu1 %v2963_v10, %s2687_s4  ;;  %1284 = vrot.lane.b32.xlu0 %v3093_v37, %s2688_s5 }
 0x133   : > { %v3336_v42 = vpop.permute.xlu1 %898  ;;  %v3338_v45 = vpop.permute.xlu0 %904 }
 0x134   : > { %4142 = vst [vmem:[#allocation50_spill] sm:$0xff] %v3338_v45  ;;  %v304_v45 = vld [vmem:[#allocation2 + $0x8] sm:$0xff] }
 0x135   : > { %1158 = vrot.lane.b32.xlu1 %v2975_v13, %s2687_s4  ;;  %1412 = vrot.lane.b32.xlu0 %v2897_v44, %s2689_s8  ;;  %v1617_v24 = vsel %vm182_vm0, %v304_v45, %v3009_v34 }
 0x136   : > { %v1650_v38 = vsel %vm1648_vm3, %v1617_v24, %v3180_v26 }
 0x137   : > { %v3344_v32 = vpop.permute.xlu1 %902  ;;  %v1009_v23 = vpop.permute.xlu0 %1008 }
 0x138   : > { %4143 = vst [vmem:[#allocation51_spill] sm:$0xff] %v3344_v32 }
 0x139   : > { %1286 = vrot.lane.b32.xlu1 %v3115_v21, %s2688_s5  ;;  %1414 = vrot.lane.b32.xlu0 %v2907_v47, %s2689_s8 }
 0x13b   : > { %v3350_v10 = vpop.permute.xlu1 %906  ;;  %v1137_v7 = vpop.permute.xlu0 %1136 }
 0x13c   : > { %4144 = vst [vmem:[#allocation52_spill] sm:$0xff] %v3350_v10  ;;  %v303_v10 = vld [vmem:[#allocation2] sm:$0xff] }
 0x13d   : > { %1032 = vrot.lane.b32.xlu1 %v2897_v44, %s2686_s26  ;;  %1034 = vrot.lane.b32.xlu0 %v2907_v47, %s2686_s26  ;;  %v1616_v47 = vsel %vm182_vm0, %v303_v10, %v3005_v28  ;;  %v1683_v28 = vsel %vm1681_vm4, %v1650_v38, %v883_v41  ;;  %v540_v38 = vld [vmem:[#allocation2 + $0xc1] sm:$0xff] }
 0x13e   : > { %v1649_v30 = vsel %vm1648_vm3, %v1616_v47, %v3166_v0 }
 0x13f   : > { %v1011_v13 = vpop.permute.xlu1 %1010  ;;  %v1265_v37 = vpop.permute.xlu0 %1264  ;;  %v1682_v33 = vsel %vm1681_vm4, %v1649_v30, %v881_v6 }
 0x140   : > { %v1716_v45 = vsel %vm1714_vm5, %v1683_v28, %v1011_v13 }
 0x141   : > { %1540 = vrot.lane.b32.xlu1 %v2971_v12, %s2690_s9  ;;  %1542 = vrot.lane.b32.xlu0 %v2983_v15, %s2690_s9 }
 0x143   : > { %v1139_v21 = vpop.permute.xlu1 %1138  ;;  %v1393_v46 = vpop.permute.xlu0 %1392 }
 0x144   : > { %v1749_v10 = vsel %vm1747_vm6, %v1716_v45, %v1139_v21  ;;  %v541_v21 = vld [vmem:[#allocation2 + $0xc9] sm:$0xff]  ;;  %v1619_v45 = vsel %vm182_vm0, %v3039_v56, %v3019_v48 }
 0x145   : > { %1160 = vrot.lane.b32.xlu1 %v2971_v12, %s2687_s4  ;;  %1288 = vrot.lane.b32.xlu0 %v3362_v51, %s2688_s5  ;;  %v3372_v12 = vld [vmem:[#allocation2 + $0xc8] sm:$0xff] }
 0x147   : > { %v1267_v44 = vpop.permute.xlu1 %1266  ;;  %v1395_v32 = vpop.permute.xlu0 %1394 }
 0x148   : > { %v1782_v30 = vsel %vm1780_vm7, %v1749_v10, %v1267_v44 }
 0x149   : > { %1162 = vrot.lane.b32.xlu1 %v2983_v15, %s2687_s4  ;;  %1290 = vrot.lane.b32.xlu0 %v3372_v12, %s2688_s5  ;;  %v1715_v15 = vsel %vm1714_vm5, %v1682_v33, %v1009_v23  ;;  %v1815_v41 = vsel %vm1813_vm8, %v1782_v30, %v1395_v32  ;;  %v1618_v32 = vsel %vm182_vm0, %v3024_v50, %v3013_v36 }
 0x14a   : > { %v1748_v0 = vsel %vm1747_vm6, %v1715_v15, %v1137_v7  ;;  %v1651_v15 = vsel %vm1648_vm3, %v1618_v32, %v3174_v35  ;;  %v1652_v36 = vsel %vm1648_vm3, %v1619_v45, %v3188_v3  ;;  %v3432_v3 = vld [vmem:[#allocation2 + $0xe0] sm:$0xff] }
 0x14b   : > { %v1013_v34 = vpop.permute.xlu1 %1012  ;;  %v1015_v24 = vpop.permute.xlu0 %1014  ;;  %v1781_v26 = vsel %vm1780_vm7, %v1748_v0, %v1265_v37  ;;  %v1684_v0 = vsel %vm1681_vm4, %v1651_v15, %v3300_v43  ;;  %v1685_v35 = vsel %vm1681_vm4, %v1652_v36, %v3312_v8 }
 0x14c   : > { %v1814_v23 = vsel %vm1813_vm8, %v1781_v26, %v1393_v46  ;;  %v3418_v26 = vld [vmem:[#allocation2 + $0xd8] sm:$0xff]  ;;  %v1717_v50 = vsel %vm1714_vm5, %v1684_v0, %v1013_v34  ;;  %v1718_v56 = vsel %vm1714_vm5, %v1685_v35, %v1015_v24 }
 0x14d   : > { %908 = vrot.lane.b32.xlu1 %v3362_v51, %s2685_s21  ;;  %910 = vrot.lane.b32.xlu0 %v3372_v12, %s2685_s21 }
 0x14f   : > { %v1521_v33 = vpop.permute.xlu1 %1520  ;;  %v1523_v6 = vpop.permute.xlu0 %1522 }
 0x150   : > { %v1847_v7 = vsel %vm1846_vm9, %v1814_v23, %v1521_v33  ;;  %v1848_v37 = vsel %vm1846_vm9, %v1815_v41, %v1523_v6  ;;  %v543_v6 = vld [vmem:[#allocation2 + $0xe1] sm:$0xff] }
 0x151   : > { %1416 = vrot.lane.b32.xlu1 %v540_v38, %s2689_s8  ;;  %2595 = vmatprep.mubr.msk.f32.mxu0 %vm1884_vm10, %v1847_v7 }
 0x152   : > { %1418 = vrot.lane.b32.xlu0 %v541_v21, %s2689_s8  ;;  %2596 = vmatmul.mubr.msk.f32.vlgmr.msra.gmra.mrb[0].mxu0 %vm1884_vm10, %v1848_v37 }
 0x153   : > { %v1141_v46 = vpop.permute.xlu1 %1140  ;;  %v1269_v13 = vpop.permute.xlu0 %1268 }
 0x154   : > { %v1750_v30 = vsel %vm1747_vm6, %v1717_v50, %v1141_v46 }
 0x155   : > { %1036 = vrot.lane.b32.xlu1 %v540_v38, %s2686_s26  ;;  %v1783_v34 = vsel %vm1780_vm7, %v1750_v30, %v1269_v13 }
 0x156   : > { %1038 = vrot.lane.b32.xlu0 %v541_v21, %s2686_s26  ;;  %v542_v21 = vld [vmem:[#allocation2 + $0xd9] sm:$0xff] }
 0x157   : > { %v1143_v44 = vpop.permute.xlu1 %1142  ;;  %v1397_v47 = vpop.permute.xlu0 %1396 }
 0x158   : > { %v1816_v38 = vsel %vm1813_vm8, %v1783_v34, %v1397_v47 }
 0x159   : > { %1544 = vrot.lane.b32.xlu1 %v2979_v14, %s2690_s9 }
 0x15a   : > { %1546 = vrot.lane.b32.xlu0 %v2991_v17, %s2690_s9 }
 0x15b   : > { %v1271_v28 = vpop.permute.xlu1 %1270  ;;  %v1399_v10 = vpop.permute.xlu0 %1398 }
 0x15d   : > { %1164 = vrot.lane.b32.xlu1 %v2979_v14, %s2687_s4  ;;  %v1751_v14 = vsel %vm1747_vm6, %v1718_v56, %v1143_v44  ;;  %v1620_v44 = vsel %vm182_vm0, %v3033_v54, %v3015_v39 }
 0x15e   : > { %1292 = vrot.lane.b32.xlu0 %v3418_v26, %s2688_s5  ;;  %v1784_v8 = vsel %vm1780_vm7, %v1751_v14, %v1271_v28  ;;  %v1653_v32 = vsel %vm1648_vm3, %v1620_v44, %v3182_v31  ;;  %v1621_v28 = vsel %vm182_vm0, %v3051_v60, %v3028_v52 }
 0x15f   : > { %v1017_v48 = vpop.permute.xlu1 %1016  ;;  %v1019_v43 = vpop.permute.xlu0 %1018  ;;  %v1817_v33 = vsel %vm1813_vm8, %v1784_v8, %v1399_v10  ;;  %v1686_v15 = vsel %vm1681_vm4, %v1653_v32, %v3306_v4  ;;  %v1654_v39 = vsel %vm1648_vm3, %v1621_v28, %v3196_v2  ;;  %v3476_v2 = vld [vmem:[#allocation2 + $0xf0] sm:$0xff] }
 0x160   : > { %v1719_v54 = vsel %vm1714_vm5, %v1686_v15, %v1017_v48  ;;  %v1687_v0 = vsel %vm1681_vm4, %v1654_v39, %v3320_v11  ;;  %v544_v8 = vld [vmem:[#allocation2 + $0xf1] sm:$0xff] }
 0x161   : > { %1166 = vrot.lane.b32.xlu1 %v2991_v17, %s2687_s4  ;;  %v1720_v60 = vsel %vm1714_vm5, %v1687_v0, %v1019_v43 }
 0x162   : > { %1294 = vrot.lane.b32.xlu0 %v3432_v3, %s2688_s5 }
 0x163   : > { %v1525_v23 = vpop.permute.xlu1 %1524  ;;  %v1527_v7 = vpop.permute.xlu0 %1526 }
 0x164   : > { %v1849_v24 = vsel %vm1846_vm9, %v1816_v38, %v1525_v23  ;;  %v1850_v17 = vsel %vm1846_vm9, %v1817_v33, %v1527_v7  ;;  %v268_v38 = vld [vmem:[%s2791_s18 + $0xf0] sm:$0xff]  ;;  %v545_v23 = vld [vmem:[#allocation2 + $0xf9] sm:$0xff]  ;;  %v1622_v7 = vsel %vm182_vm0, %v3045_v58, %v3021_v49 }
 0x165   : > { %912 = vrot.lane.b32.xlu1 %v3418_v26, %s2685_s21  ;;  %2598 = vmatprep.mubr.msk.f32.mxu0 %vm1884_vm10, %v1849_v24  ;;  %301 = vst.msk [vmem:[#allocation2 + $0x181] sm:$0xff] %vm182_vm0, %v268_v38  ;;  %v269_v33 = vld [vmem:[%s2791_s18 + $0xf8] sm:$0xff]  ;;  %v578_v38 = vld [vmem:[#allocation2 + $0x10a] sm:$0xff]  ;;  %s181_s18 = scalar_lea.vmem %s4088_s3, %s2510_s15 }
 0x166   : > { %914 = vrot.lane.b32.xlu0 %v3432_v3, %s2685_s21  ;;  %2599 = vmatmul.mubr.msk.f32.gmra.mrb[2].mxu0 %vm1884_vm10, %v1850_v17  ;;  %302 = vst.msk [vmem:[#allocation2 + $0x189] sm:$0xff] %vm182_vm0, %v269_v33 }
 0x167   : > { %v1145_v41 = vpop.permute.xlu1 %1144  ;;  %v1273_v37 = vpop.permute.xlu0 %1272 }
 0x168   : > { %v1752_v31 = vsel %vm1747_vm6, %v1719_v54, %v1145_v41  ;;  %v1623_v41 = vsel %vm182_vm0, %v3063_v1, %v3037_v55  ;;  %v3533_v54 = vld [vmem:[#allocation2 + $0x108] sm:$0xff] }
 0x169   : > { %1420 = vrot.lane.b32.xlu1 %v542_v21, %s2689_s8  ;;  %v1785_v36 = vsel %vm1780_vm7, %v1752_v31, %v1273_v37  ;;  %v1656_v49 = vsel %vm1648_vm3, %v1623_v41, %v3204_v5 }
 0x16a   : > { %1422 = vrot.lane.b32.xlu0 %v543_v6, %s2689_s8 }
 0x16b   : > { %v1147_v46 = vpop.permute.xlu1 %1146  ;;  %v1401_v13 = vpop.permute.xlu0 %1400 }
 0x16c   : > { %v1753_v4 = vsel %vm1747_vm6, %v1720_v60, %v1147_v46  ;;  %v1818_v50 = vsel %vm1813_vm8, %v1785_v36, %v1401_v13  ;;  %v576_v46 = vld [vmem:[#allocation2 + $0xf2] sm:$0xff]  ;;  %v1689_v13 = vsel %vm1681_vm4, %v1656_v49, %v3328_v9  ;;  %v546_v36 = vld [vmem:[#allocation2 + $0x109] sm:$0xff] }
 0x16d   : > { %1040 = vrot.lane.b32.xlu1 %v542_v21, %s2686_s26  ;;  %v1655_v21 = vsel %vm1648_vm3, %v1622_v7, %v3190_v18  ;;  %v3540_v60 = vld [vmem:[#allocation2 + $0x110] sm:$0xff] }
 0x16e   : > { %1042 = vrot.lane.b32.xlu0 %v543_v6, %s2686_s26  ;;  %v1688_v6 = vsel %vm1681_vm4, %v1655_v21, %v3314_v40  ;;  %v577_v40 = vld [vmem:[#allocation2 + $0xfa] sm:$0xff] }
 0x16f   : > { %v1275_v47 = vpop.permute.xlu1 %1274  ;;  %v1403_v45 = vpop.permute.xlu0 %1402 }
 0x170   : > { %v1786_v11 = vsel %vm1780_vm7, %v1753_v4, %v1275_v47 }
 0x171   : > { %1548 = vrot.lane.b32.xlu1 %v2987_v16, %s2690_s9  ;;  %v1819_v48 = vsel %vm1813_vm8, %v1786_v11, %v1403_v45  ;;  %v1624_v11 = vsel %vm182_vm0, %v3057_v62, %v3030_v53 }
 0x172   : > { %1550 = vrot.lane.b32.xlu0 %v2997_v19, %s2690_s9 }
 0x173   : > { %v1021_v52 = vpop.permute.xlu1 %1020  ;;  %v1023_v10 = vpop.permute.xlu0 %1022 }
 0x174   : > { %v1721_v58 = vsel %vm1714_vm5, %v1688_v6, %v1021_v52  ;;  %v1722_v1 = vsel %vm1714_vm5, %v1689_v13, %v1023_v10  ;;  %v3581_v6 = vld [vmem:[#allocation2 + $0x120] sm:$0xff] }
 0x175   : > { %1168 = vrot.lane.b32.xlu1 %v2987_v16, %s2687_s4  ;;  %v3488_v16 = vld [vmem:[#allocation2 + $0xf8] sm:$0xff] }
 0x176   : > { %1296 = vrot.lane.b32.xlu0 %v3476_v2, %s2688_s5 }
 0x177   : > { %v1529_v35 = vpop.permute.xlu1 %1528  ;;  %v1531_v56 = vpop.permute.xlu0 %1530 }
 0x178   : > { %v1851_v30 = vsel %vm1846_vm9, %v1818_v50, %v1529_v35  ;;  %v1852_v14 = vsel %vm1846_vm9, %v1819_v48, %v1531_v56  ;;  %v1657_v35 = vsel %vm1648_vm3, %v1624_v11, %v3198_v25  ;;  %v1625_v48 = vsel %vm182_vm0, %v3075_v22, %v3049_v59 }
 0x179   : > { %1170 = vrot.lane.b32.xlu1 %v2997_v19, %s2687_s4  ;;  %2601 = vmatprep.mubr.msk.f32.mxu0 %vm1884_vm10, %v1851_v30  ;;  %v547_v30 = vld [vmem:[#allocation2 + $0x111] sm:$0xff]  ;;  %v1690_v56 = vsel %vm1681_vm4, %v1657_v35, %v3322_v29  ;;  %v1658_v53 = vsel %vm1648_vm3, %v1625_v48, %v3212_v27 }
 0x17a   : > { %1298 = vrot.lane.b32.xlu0 %v3488_v16, %s2688_s5  ;;  %2602 = vmatmul.mubr.msk.f32.gmra.mrb[4].mxu0 %vm1884_vm10, %v1852_v14 }
 0x17b   : > { %v1149_v43 = vpop.permute.xlu1 %1148  ;;  %v1277_v34 = vpop.permute.xlu0 %1276 }
 0x17c   : > { %v1754_v18 = vsel %vm1747_vm6, %v1721_v58, %v1149_v43  ;;  %v1691_v43 = vsel %vm1681_vm4, %v1658_v53, %v3336_v42  ;;  %v3586_v58 = vld [vmem:[#allocation2 + $0x128] sm:$0xff] }
 0x17d   : > { %916 = vrot.lane.b32.xlu1 %v3476_v2, %s2685_s21  ;;  %v1787_v5 = vsel %vm1780_vm7, %v1754_v18, %v1277_v34 }
 0x17e   : > { %918 = vrot.lane.b32.xlu0 %v3488_v16, %s2685_s21 }
 0x17f   : > { %v1151_v19 = vpop.permute.xlu1 %1150  ;;  %v1405_v24 = vpop.permute.xlu0 %1404 }
 0x180   : > { %v1755_v44 = vsel %vm1747_vm6, %v1722_v1, %v1151_v19  ;;  %v1820_v28 = vsel %vm1813_vm8, %v1787_v5, %v1405_v24  ;;  %v579_v24 = vld [vmem:[#allocation2 + $0x112] sm:$0xff]  ;;  %v4147_v5 = vld [vmem:[#allocation29_spill] sm:$0xff] }
 0x181   : > { %1424 = vrot.lane.b32.xlu1 %v544_v8, %s2689_s8 }
 0x182   : > { %1426 = vrot.lane.b32.xlu0 %v545_v23, %s2689_s8 }
 0x183   : > { %v1279_v17 = vpop.permute.xlu1 %1278  ;;  %v1407_v37 = vpop.permute.xlu0 %1406 }
 0x184   : > { %v1788_v32 = vsel %vm1780_vm7, %v1755_v44, %v1279_v17 }
 0x185   : > { %1044 = vrot.lane.b32.xlu1 %v544_v8, %s2686_s26  ;;  %v1821_v45 = vsel %vm1813_vm8, %v1788_v32, %v1407_v37  ;;  %v548_v32 = vld [vmem:[#allocation2 + $0x121] sm:$0xff] }
 0x186   : > { %1046 = vrot.lane.b32.xlu0 %v545_v23, %s2686_s26 }
 0x187   : > { %v1025_v55 = vpop.permute.xlu1 %1024  ;;  %v1027_v47 = vpop.permute.xlu0 %1026 }
 0x188   : > { %v1723_v62 = vsel %vm1714_vm5, %v1690_v56, %v1025_v55  ;;  %v1724_v59 = vsel %vm1714_vm5, %v1691_v43, %v1027_v47  ;;  %v4145_v55 = vld [vmem:[#allocation9_spill] sm:$0xff]  ;;  %v581_v56 = vld [vmem:[#allocation2 + $0x12a] sm:$0xff] }
 0x189   : > { %1552 = vrot.lane.b32.xlu1 %v576_v46, %s2690_s9  ;;  %v1627_v1 = vsel %vm182_vm0, %v4145_v55, %v3061_v63 }
 0x18a   : > { %1554 = vrot.lane.b32.xlu0 %v577_v40, %s2690_s9 }
 0x18b   : > { %v1533_v9 = vpop.permute.xlu1 %1532  ;;  %v1535_v39 = vpop.permute.xlu0 %1534 }
 0x18c   : > { %v1853_v15 = vsel %vm1846_vm9, %v1820_v28, %v1533_v9  ;;  %v1854_v0 = vsel %vm1846_vm9, %v1821_v45, %v1535_v39  ;;  %v4148_v28 = vld [vmem:[#allocation51_spill] sm:$0xff] }
 0x18d   : > { %1172 = vrot.lane.b32.xlu1 %v576_v46, %s2687_s4  ;;  %2604 = vmatprep.mubr.msk.f32.mxu0 %vm1884_vm10, %v1853_v15  ;;  %v1626_v46 = vsel %vm182_vm0, %v3069_v20, %v3041_v57  ;;  %v1660_v57 = vsel %vm1648_vm3, %v1627_v1, %v4147_v5  ;;  %v549_v45 = vld [vmem:[#allocation2 + $0x129] sm:$0xff] }
 0x18e   : > { %1300 = vrot.lane.b32.xlu0 %v3533_v54, %s2688_s5  ;;  %2605 = vmatmul.mubr.msk.f32.gmra.mrb[6].mxu0 %vm1884_vm10, %v1854_v0  ;;  %v1659_v18 = vsel %vm1648_vm3, %v1626_v46, %v3206_v61  ;;  %v1693_v61 = vsel %vm1681_vm4, %v1660_v57, %v4148_v28  ;;  %v550_v46 = vld [vmem:[#allocation2 + $0x139] sm:$0xff] }
 0x18f   : > { %v1153_v31 = vpop.permute.xlu1 %1152  ;;  %v1281_v52 = vpop.permute.xlu0 %1280 }
 0x190   : > { %v1756_v25 = vsel %vm1747_vm6, %v1723_v62, %v1153_v31  ;;  %v518_v62 = vld [vmem:[#allocation2 + $0x138] sm:$0xff] }
 0x191   : > { %1174 = vrot.lane.b32.xlu1 %v577_v40, %s2687_s4  ;;  %v1789_v8 = vsel %vm1780_vm7, %v1756_v25, %v1281_v52  ;;  %v4146_v40 = vld [vmem:[#allocation49_spill] sm:$0xff] }
 0x192   : > { %1302 = vrot.lane.b32.xlu0 %v3540_v60, %s2688_s5  ;;  %v1692_v44 = vsel %vm1681_vm4, %v1659_v18, %v4146_v40 }
 0x193   : > { %v1155_v4 = vpop.permute.xlu1 %1154  ;;  %v1409_v10 = vpop.permute.xlu0 %1408 }
 0x194   : > { %v1757_v22 = vsel %vm1747_vm6, %v1724_v59, %v1155_v4  ;;  %v1822_v19 = vsel %vm1813_vm8, %v1789_v8, %v1409_v10  ;;  %v3631_v59 = vld [vmem:[#allocation2 + $0x140] sm:$0xff] }
 0x195   : > { %920 = vrot.lane.b32.xlu1 %v3533_v54, %s2685_s21 }
 0x196   : > { %922 = vrot.lane.b32.xlu0 %v3540_v60, %s2685_s21 }
 0x197   : > { %v1283_v50 = vpop.permute.xlu1 %1282  ;;  %v1411_v14 = vpop.permute.xlu0 %1410 }
 0x198   : > { %v1790_v27 = vsel %vm1780_vm7, %v1757_v22, %v1283_v50  ;;  %v4149_v22 = vld [vmem:[#allocation3_spill] sm:$0xff] }
 0x199   : > { %1428 = vrot.lane.b32.xlu1 %v546_v36, %s2689_s8  ;;  %v1823_v33 = vsel %vm1813_vm8, %v1790_v27, %v1411_v14 }
 0x19a   : > { %1430 = vrot.lane.b32.xlu0 %v547_v30, %s2689_s8 }
 0x19b   : > { %v1029_v34 = vpop.permute.xlu1 %1028  ;;  %v1031_v29 = vpop.permute.xlu0 %1030 }
 0x19c   : > { %v1725_v20 = vsel %vm1714_vm5, %v1692_v44, %v1029_v34  ;;  %v1726_v15 = vsel %vm1714_vm5, %v1693_v61, %v1031_v29  ;;  %v4150_v29 = vld [vmem:[#allocation7_spill] sm:$0xff]  ;;  %v551_v44 = vld [vmem:[#allocation2 + $0x141] sm:$0xff] }
 0x19d   : > { %1048 = vrot.lane.b32.xlu1 %v546_v36, %s2686_s26  ;;  %v1628_v8 = vsel %vm182_vm0, %v4150_v29, %v4149_v22 }
 0x19e   : > { %1050 = vrot.lane.b32.xlu0 %v547_v30, %s2686_s26  ;;  %v580_v30 = vld [vmem:[#allocation2 + $0x122] sm:$0xff] }
 0x19f   : > { %v1537_v42 = vpop.permute.xlu1 %1536  ;;  %v1539_v7 = vpop.permute.xlu0 %1538 }
 0x1a0   : > { %v1855_v23 = vsel %vm1846_vm9, %v1822_v19, %v1537_v42  ;;  %v1856_v17 = vsel %vm1846_vm9, %v1823_v33, %v1539_v7  ;;  %v424_v42 = vld [vmem:[#allocation2 + $0x140] sm:$0xff]  ;;  %v4154_v7 = vld [vmem:[#allocation50_spill] sm:$0xff] }
 0x1a1   : > { %1556 = vrot.lane.b32.xlu1 %v578_v38, %s2690_s9  ;;  %2607 = vmatprep.mubr.msk.f32.mxu0 %vm1884_vm10, %v1855_v23  ;;  %v4152_v23 = vld [vmem:[#allocation5_spill] sm:$0xff] }
 0x1a2   : > { %1558 = vrot.lane.b32.xlu0 %v579_v24, %s2690_s9  ;;  %2608 = vmatmul.mubr.msk.f32.gmra.mrb[8].mxu0 %vm1884_vm10, %v1856_v17 }
 0x1a3   : > { %v1157_v21 = vpop.permute.xlu1 %1156  ;;  %v1285_v41 = vpop.permute.xlu0 %1284 }
 0x1a4   : > { %v1758_v9 = vsel %vm1747_vm6, %v1725_v20, %v1157_v21 }
 0x1a5   : > { %1176 = vrot.lane.b32.xlu1 %v578_v38, %s2687_s4  ;;  %v1791_v31 = vsel %vm1780_vm7, %v1758_v9, %v1285_v41  ;;  %v4151_v38 = vld [vmem:[#allocation28_spill] sm:$0xff]  ;;  %v4155_v41 = vld [vmem:[#allocation31_spill] sm:$0xff] }
 0x1a6   : > { %1304 = vrot.lane.b32.xlu0 %v3581_v6, %s2688_s5  ;;  %v1661_v19 = vsel %vm1648_vm3, %v1628_v8, %v4151_v38 }
 0x1a7   : > { %v1159_v37 = vpop.permute.xlu1 %1158  ;;  %v1413_v49 = vpop.permute.xlu0 %1412  ;;  %v1694_v17 = vsel %vm1681_vm4, %v1661_v19, %v4154_v7 }
 0x1a8   : > { %v1759_v39 = vsel %vm1747_vm6, %v1726_v15, %v1159_v37  ;;  %v1824_v4 = vsel %vm1813_vm8, %v1791_v31, %v1413_v49 }
 0x1a9   : > { %1178 = vrot.lane.b32.xlu1 %v579_v24, %s2687_s4  ;;  %v4153_v24 = vld [vmem:[#allocation13_spill] sm:$0xff] }
 0x1aa   : > { %1306 = vrot.lane.b32.xlu0 %v3586_v58, %s2688_s5  ;;  %v1629_v33 = vsel %vm182_vm0, %v4153_v24, %v4152_v23 }
 0x1ab   : > { %v1287_v13 = vpop.permute.xlu1 %1286  ;;  %v1415_v47 = vpop.permute.xlu0 %1414  ;;  %v1662_v37 = vsel %vm1648_vm3, %v1629_v33, %v4155_v41 }
 0x1ac   : > { %v1792_v52 = vsel %vm1780_vm7, %v1759_v39, %v1287_v13  ;;  %v4156_v13 = vld [vmem:[#allocation52_spill] sm:$0xff] }
 0x1ad   : > { %924 = vrot.lane.b32.xlu1 %v3581_v6, %s2685_s21  ;;  %v1825_v11 = vsel %vm1813_vm8, %v1792_v52, %v1415_v47  ;;  %v1695_v18 = vsel %vm1681_vm4, %v1662_v37, %v4156_v13 }
 0x1ae   : > { %926 = vrot.lane.b32.xlu0 %v3586_v58, %s2685_s21 }
 0x1af   : > { %v1033_v63 = vpop.permute.xlu1 %1032  ;;  %v1035_v0 = vpop.permute.xlu0 %1034 }
 0x1b0   : > { %v1727_v49 = vsel %vm1714_vm5, %v1694_v17, %v1033_v63  ;;  %v1728_v40 = vsel %vm1714_vm5, %v1695_v18, %v1035_v0  ;;  %v583_v0 = vld [vmem:[#allocation2 + $0x142] sm:$0xff] }
 0x1b1   : > { %1432 = vrot.lane.b32.xlu1 %v548_v32, %s2689_s8 }
 0x1b2   : > { %1434 = vrot.lane.b32.xlu0 %v549_v45, %s2689_s8 }
 0x1b3   : > { %v1541_v10 = vpop.permute.xlu1 %1540  ;;  %v1543_v50 = vpop.permute.xlu0 %1542 }
 0x1b4   : > { %v1857_v36 = vsel %vm1846_vm9, %v1824_v4, %v1541_v10  ;;  %v1858_v35 = vsel %vm1846_vm9, %v1825_v11, %v1543_v50  ;;  %v520_v4 = vld [vmem:[#allocation2 + $0x150] sm:$0xff]  ;;  %v521_v11 = vld [vmem:[#allocation2 + $0x158] sm:$0xff] }
 0x1b5   : > { %1052 = vrot.lane.b32.xlu1 %v548_v32, %s2686_s26  ;;  %2610 = vmatprep.mubr.msk.f32.mxu0 %vm1884_vm10, %v1857_v36 }
 0x1b6   : > { %1054 = vrot.lane.b32.xlu0 %v549_v45, %s2686_s26  ;;  %2611 = vmatmul.mubr.msk.f32.gmra.mrb[10].mxu0 %vm1884_vm10, %v1858_v35  ;;  %v582_v45 = vld [vmem:[#allocation2 + $0x13a] sm:$0xff] }
 0x1b7   : > { %v1161_v48 = vpop.permute.xlu1 %1160  ;;  %v1289_v14 = vpop.permute.xlu0 %1288  ;;  %v4157_v35 = vld [vmem:[#allocation4_spill] sm:$0xff] }
 0x1b8   : > { %v1760_v55 = vsel %vm1747_vm6, %v1727_v49, %v1161_v48 }
 0x1b9   : > { %1560 = vrot.lane.b32.xlu1 %v580_v30, %s2690_s9  ;;  %v1793_v57 = vsel %vm1780_vm7, %v1760_v55, %v1289_v14  ;;  %v4159_v14 = vld [vmem:[#allocation30_spill] sm:$0xff] }
 0x1ba   : > { %1562 = vrot.lane.b32.xlu0 %v581_v56, %s2690_s9 }
 0x1bb   : > { %v1163_v53 = vpop.permute.xlu1 %1162  ;;  %v1291_v43 = vpop.permute.xlu0 %1290 }
 0x1bc   : > { %v1761_v47 = vsel %vm1747_vm6, %v1728_v40, %v1163_v53 }
 0x1bd   : > { %1180 = vrot.lane.b32.xlu1 %v580_v30, %s2687_s4  ;;  %v1794_v28 = vsel %vm1780_vm7, %v1761_v47, %v1291_v43  ;;  %v4158_v30 = vld [vmem:[#allocation11_spill] sm:$0xff]  ;;  %v4161_v43 = vld [vmem:[#allocation16_spill] sm:$0xff] }
 0x1be   : > { %1308 = vrot.lane.b32.xlu0 %v518_v62, %s2688_s5  ;;  %v1630_v48 = vsel %vm182_vm0, %v4158_v30, %v4157_v35  ;;  %v554_v35 = vld [vmem:[#allocation2 + $0x169] sm:$0xff] }
 0x1bf   : > { %v909_v25 = vpop.permute.xlu1 %908  ;;  %v3628_v34 = vpop.permute.xlu0 %910  ;;  %v1663_v53 = vsel %vm1648_vm3, %v1630_v48, %v4159_v14  ;;  %v555_v14 = vld [vmem:[#allocation2 + $0x171] sm:$0xff] }
 0x1c0   : > { %v1696_v29 = vsel %vm1681_vm4, %v1663_v53, %v909_v25  ;;  %v553_v25 = vld [vmem:[#allocation2 + $0x159] sm:$0xff] }
 0x1c1   : > { %1182 = vrot.lane.b32.xlu1 %v581_v56, %s2687_s4 }
 0x1c2   : > { %1310 = vrot.lane.b32.xlu0 %v3631_v59, %s2688_s5 }
 0x1c3   : > { %v1417_v27 = vpop.permute.xlu1 %1416 }
 0x1c4   : > { %v1419_v21 = vpop.permute.xlu0 %1418  ;;  %v1826_v20 = vsel %vm1813_vm8, %v1793_v57, %v1417_v27  ;;  %v4162_v27 = vld [vmem:[#allocation33_spill] sm:$0xff]  ;;  %v522_v57 = vld [vmem:[#allocation2 + $0x168] sm:$0xff] }
 0x1c5   : > { %928 = vrot.lane.b32.xlu1 %v518_v62, %s2685_s21  ;;  %v1827_v9 = vsel %vm1813_vm8, %v1794_v28, %v1419_v21  ;;  %v4160_v62 = vld [vmem:[#allocation8_spill] sm:$0xff]  ;;  %v523_v28 = vld [vmem:[#allocation2 + $0x170] sm:$0xff] }
 0x1c6   : > { %930 = vrot.lane.b32.xlu0 %v424_v42, %s2685_s21  ;;  %v1631_v22 = vsel %vm182_vm0, %v4161_v43, %v4160_v62  ;;  %v552_v42 = vld [vmem:[#allocation2 + $0x151] sm:$0xff] }
 0x1c7   : > { %v1037_v1 = vpop.permute.xlu1 %1036  ;;  %v1664_v38 = vsel %vm1648_vm3, %v1631_v22, %v4162_v27 }
 0x1c8   : > { %v1039_v5 = vpop.permute.xlu0 %1038  ;;  %v1729_v19 = vsel %vm1714_vm5, %v1696_v29, %v1037_v1  ;;  %v1697_v23 = vsel %vm1681_vm4, %v1664_v38, %v3628_v34  ;;  %v584_v1 = vld [vmem:[#allocation2 + $0x152] sm:$0xff] }
 0x1c9   : > { %1436 = vrot.lane.b32.xlu1 %v550_v46, %s2689_s8  ;;  %v1730_v7 = vsel %vm1714_vm5, %v1697_v23, %v1039_v5  ;;  %v587_v23 = vld [vmem:[#allocation2 + $0x172] sm:$0xff] }
 0x1ca   : > { %1438 = vrot.lane.b32.xlu0 %v551_v44, %s2689_s8 }
 0x1cb   : > { %v1545_v32 = vpop.permute.xlu1 %1544 }
 0x1cc   : > { %v1859_v61 = vsel %vm1846_vm9, %v1826_v20, %v1545_v32  ;;  %v1547_v63 = vpop.permute.xlu0 %1546 }
 0x1cd   : > { %1056 = vrot.lane.b32.xlu1 %v550_v46, %s2686_s26  ;;  %2613 = vmatprep.mubr.msk.f32.mxu0 %vm1884_vm10, %v1859_v61  ;;  %v1860_v15 = vsel %vm1846_vm9, %v1827_v9, %v1547_v63  ;;  %v4163_v9 = vld [vmem:[#allocation6_spill] sm:$0xff] }
 0x1ce   : > { %1058 = vrot.lane.b32.xlu0 %v551_v44, %s2686_s26  ;;  %2614 = vmatmul.mubr.msk.f32.gmra.mrb[12].mxu0 %vm1884_vm10, %v1860_v15  ;;  %v585_v44 = vld [vmem:[#allocation2 + $0x15a] sm:$0xff]  ;;  %v1632_v63 = vsel %vm182_vm0, %v3362_v51, %v4163_v9  ;;  %v557_v9 = vld [vmem:[#allocation2 + $0x189] sm:$0xff] }
 0x1cf   : > { %v1165_v39 = vpop.permute.xlu1 %1164 }
 0x1d0   : > { %v1293_v31 = vpop.permute.xlu0 %1292  ;;  %v1762_v24 = vsel %vm1747_vm6, %v1729_v19, %v1165_v39  ;;  %v586_v19 = vld [vmem:[#allocation2 + $0x16a] sm:$0xff] }
 0x1d1   : > { %1564 = vrot.lane.b32.xlu1 %v582_v45, %s2690_s9  ;;  %v1795_v41 = vsel %vm1780_vm7, %v1762_v24, %v1293_v31 }
 0x1d2   : > { %1566 = vrot.lane.b32.xlu0 %v583_v0, %s2690_s9 }
 0x1d3   : > { %v1167_v52 = vpop.permute.xlu1 %1166 }
 0x1d4   : > { %v1295_v10 = vpop.permute.xlu0 %1294  ;;  %v1763_v17 = vsel %vm1747_vm6, %v1730_v7, %v1167_v52  ;;  %v524_v7 = vld [vmem:[#allocation2 + $0x180] sm:$0xff] }
 0x1d5   : > { %1184 = vrot.lane.b32.xlu1 %v582_v45, %s2687_s4  ;;  %v1796_v49 = vsel %vm1780_vm7, %v1763_v17, %v1295_v10  ;;  %v4164_v45 = vld [vmem:[#allocation32_spill] sm:$0xff]  ;;  %v4166_v10 = vld [vmem:[#allocation35_spill] sm:$0xff] }
 0x1d6   : > { %1312 = vrot.lane.b32.xlu0 %v520_v4, %s2688_s5  ;;  %v1665_v39 = vsel %vm1648_vm3, %v1632_v63, %v4164_v45 }
 0x1d7   : > { %v913_v36 = vpop.permute.xlu1 %912 }
 0x1d8   : > { %v915_v50 = vpop.permute.xlu0 %914  ;;  %v1698_v52 = vsel %vm1681_vm4, %v1665_v39, %v913_v36 }
 0x1d9   : > { %1186 = vrot.lane.b32.xlu1 %v583_v0, %s2687_s4  ;;  %v4165_v0 = vld [vmem:[#allocation12_spill] sm:$0xff] }
 0x1da   : > { %1314 = vrot.lane.b32.xlu0 %v521_v11, %s2688_s5  ;;  %v1633_v31 = vsel %vm182_vm0, %v3372_v12, %v4165_v0 }
 0x1db   : > { %v1421_v56 = vpop.permute.xlu1 %1420 }
 0x1dc   : > { %v1423_v8 = vpop.permute.xlu0 %1422  ;;  %v1828_v37 = vsel %vm1813_vm8, %v1795_v41, %v1421_v56 }
 0x1dd   : > { %932 = vrot.lane.b32.xlu1 %v520_v4, %s2685_s21  ;;  %v1829_v13 = vsel %vm1813_vm8, %v1796_v49, %v1423_v8 }
 0x1de   : > { %934 = vrot.lane.b32.xlu0 %v521_v11, %s2685_s21  ;;  %v1666_v11 = vsel %vm1648_vm3, %v1633_v31, %v4166_v10  ;;  %v588_v10 = vld [vmem:[#allocation2 + $0x182] sm:$0xff] }
 0x1df   : > { %v1041_v33 = vpop.permute.xlu1 %1040  ;;  %v1699_v30 = vsel %vm1681_vm4, %v1666_v11, %v915_v50 }
 0x1e0   : > { %v1043_v21 = vpop.permute.xlu0 %1042  ;;  %v1731_v51 = vsel %vm1714_vm5, %v1698_v52, %v1041_v33 }
 0x1e1   : > { %1440 = vrot.lane.b32.xlu1 %v552_v42, %s2689_s8  ;;  %v1732_v12 = vsel %vm1714_vm5, %v1699_v30, %v1043_v21  ;;  %v525_v21 = vld [vmem:[#allocation2 + $0x188] sm:$0xff] }
 0x1e2   : > { %1442 = vrot.lane.b32.xlu0 %v553_v25, %s2689_s8 }
 0x1e3   : > { %v1549_v34 = vpop.permute.xlu1 %1548 }
 0x1e4   : > { %v1861_v46 = vsel %vm1846_vm9, %v1828_v37, %v1549_v34  ;;  %v1551_v18 = vpop.permute.xlu0 %1550  ;;  %v4167_v37 = vld [vmem:[#allocation10_spill] sm:$0xff] }
 0x1e5   : > { %1060 = vrot.lane.b32.xlu1 %v552_v42, %s2686_s26  ;;  %2616 = vmatprep.mubr.msk.f32.mxu0 %vm1884_vm10, %v1861_v46  ;;  %v1862_v55 = vsel %vm1846_vm9, %v1829_v13, %v1551_v18  ;;  %v1634_v34 = vsel %vm182_vm0, %v3418_v26, %v4167_v37  ;;  %v4168_v46 = vld [vmem:[#allocation34_spill] sm:$0xff]  ;;  %v4169_v18 = vld [vmem:[#allocation15_spill] sm:$0xff] }
 0x1e6   : > { %1062 = vrot.lane.b32.xlu0 %v553_v25, %s2686_s26  ;;  %2617 = vmatmul.mubr.msk.f32.gmra.mrb[14].mxu0 %vm1884_vm10, %v1862_v55  ;;  %v1667_v13 = vsel %vm1648_vm3, %v1634_v34, %v4168_v46  ;;  %v1635_v55 = vsel %vm182_vm0, %v3432_v3, %v4169_v18 }
 0x1e7   : > { %v1169_v40 = vpop.permute.xlu1 %1168 }
 0x1e8   : > { %v1297_v47 = vpop.permute.xlu0 %1296  ;;  %v1764_v48 = vsel %vm1747_vm6, %v1731_v51, %v1169_v40  ;;  %v589_v51 = vld [vmem:[#allocation2 + $0x18a] sm:$0xff] }
 0x1e9   : > { %1568 = vrot.lane.b32.xlu1 %v584_v1, %s2690_s9  ;;  %v1797_v62 = vsel %vm1780_vm7, %v1764_v48, %v1297_v47  ;;  %v526_v48 = vld [vmem:[#allocation2 + $0x198] sm:$0xff] }
 0x1ea   : > { %1570 = vrot.lane.b32.xlu0 %v585_v44, %s2690_s9 }
 0x1eb   : > { %v1171_v5 = vpop.permute.xlu1 %1170 }
 0x1ec   : > { %v1299_v20 = vpop.permute.xlu0 %1298  ;;  %v1765_v36 = vsel %vm1747_vm6, %v1732_v12, %v1171_v5  ;;  %v556_v5 = vld [vmem:[#allocation2 + $0x181] sm:$0xff] }
 0x1ed   : > { %1188 = vrot.lane.b32.xlu1 %v584_v1, %s2687_s4  ;;  %v1798_v22 = vsel %vm1780_vm7, %v1765_v36, %v1299_v20 }
 0x1ee   : > { %1316 = vrot.lane.b32.xlu0 %v522_v57, %s2688_s5 }
 0x1ef   : > { %v917_v32 = vpop.permute.xlu1 %916 }
 0x1f0   : > { %v919_v61 = vpop.permute.xlu0 %918  ;;  %v1700_v1 = vsel %vm1681_vm4, %v1667_v13, %v917_v32 }
 0x1f1   : > { %1190 = vrot.lane.b32.xlu1 %v585_v44, %s2687_s4  ;;  %v4170_v44 = vld [vmem:[#allocation37_spill] sm:$0xff] }
 0x1f2   : > { %1318 = vrot.lane.b32.xlu0 %v523_v28, %s2688_s5  ;;  %v1668_v47 = vsel %vm1648_vm3, %v1635_v55, %v4170_v44 }
 0x1f3   : > { %v1425_v15 = vpop.permute.xlu1 %1424 }
 0x1f4   : > { %v1427_v4 = vpop.permute.xlu0 %1426  ;;  %v1830_v43 = vsel %vm1813_vm8, %v1797_v62, %v1425_v15  ;;  %v4171_v62 = vld [vmem:[#allocation14_spill] sm:$0xff] }
 0x1f5   : > { %936 = vrot.lane.b32.xlu1 %v522_v57, %s2685_s21  ;;  %v1831_v8 = vsel %vm1813_vm8, %v1798_v22, %v1427_v4  ;;  %v1701_v57 = vsel %vm1681_vm4, %v1668_v47, %v919_v61  ;;  %v4172_v22 = vld [vmem:[#allocation36_spill] sm:$0xff]  ;;  %v591_v47 = vld [vmem:[#allocation2 + $0x1a2] sm:$0xff] }
 0x1f6   : > { %938 = vrot.lane.b32.xlu0 %v523_v28, %s2685_s21 }
 0x1f7   : > { %v1045_v56 = vpop.permute.xlu1 %1044 }
 0x1f8   : > { %v1047_v53 = vpop.permute.xlu0 %1046  ;;  %v1733_v26 = vsel %vm1714_vm5, %v1700_v1, %v1045_v56 }
 0x1f9   : > { %1444 = vrot.lane.b32.xlu1 %v554_v35, %s2689_s8  ;;  %v1734_v3 = vsel %vm1714_vm5, %v1701_v57, %v1047_v53  ;;  %v527_v53 = vld [vmem:[#allocation2 + $0x1a0] sm:$0xff] }
 0x1fa   : > { %1446 = vrot.lane.b32.xlu0 %v555_v14, %s2689_s8 }
 0x1fb   : > { %v1553_v50 = vpop.permute.xlu1 %1552 }
 0x1fc   : > { %v1863_v29 = vsel %vm1846_vm9, %v1830_v43, %v1553_v50  ;;  %v1555_v27 = vpop.permute.xlu0 %1554  ;;  %v1636_v43 = vsel %vm182_vm0, %v3476_v2, %v4171_v62 }
 0x1fd   : > { %1064 = vrot.lane.b32.xlu1 %v554_v35, %s2686_s26  ;;  %2619 = vmatprep.mubr.msk.f32.mxu1 %vm1884_vm10, %v1863_v29  ;;  %v1864_v38 = vsel %vm1846_vm9, %v1831_v8, %v1555_v27  ;;  %v1669_v29 = vsel %vm1648_vm3, %v1636_v43, %v4172_v22  ;;  %v590_v8 = vld [vmem:[#allocation2 + $0x19a] sm:$0xff]  ;;  %v4173_v27 = vld [vmem:[#allocation18_spill] sm:$0xff] }
 0x1fe   : > { %1066 = vrot.lane.b32.xlu0 %v555_v14, %s2686_s26  ;;  %2620 = vmatmul.mubr.msk.f32.vlgmr.msra.gmra.mrb[0].mxu1 %vm1884_vm10, %v1864_v38  ;;  %v558_v14 = vld [vmem:[#allocation2 + $0x199] sm:$0xff]  ;;  %v1637_v38 = vsel %vm182_vm0, %v3488_v16, %v4173_v27 }
 0x1ff   : > { %v1173_v42 = vpop.permute.xlu1 %1172 }
 0x200   : > { %v1301_v24 = vpop.permute.xlu0 %1300  ;;  %v1766_v20 = vsel %vm1747_vm6, %v1733_v26, %v1173_v42  ;;  %v4174_v42 = vld [vmem:[#allocation39_spill] sm:$0xff] }
 0x201   : > { %1572 = vrot.lane.b32.xlu1 %v586_v19, %s2690_s9  ;;  %v1799_v15 = vsel %vm1780_vm7, %v1766_v20, %v1301_v24 }
 0x202   : > { %1574 = vrot.lane.b32.xlu0 %v587_v23, %s2690_s9 }
 0x203   : > { %v1175_v33 = vpop.permute.xlu1 %1174 }
 0x204   : > { %v1303_v25 = vpop.permute.xlu0 %1302  ;;  %v1767_v32 = vsel %vm1747_vm6, %v1734_v3, %v1175_v33 }
 0x205   : > { %1192 = vrot.lane.b32.xlu1 %v586_v19, %s2687_s4  ;;  %v1800_v39 = vsel %vm1780_vm7, %v1767_v32, %v1303_v25 }
 0x206   : > { %1320 = vrot.lane.b32.xlu0 %v524_v7, %s2688_s5 }
 0x207   : > { %v921_v17 = vpop.permute.xlu1 %920 }
 0x208   : > { %v3744_v41 = vpop.permute.xlu0 %922  ;;  %v1702_v2 = vsel %vm1681_vm4, %v1669_v29, %v921_v17 }
 0x209   : > { %1194 = vrot.lane.b32.xlu1 %v587_v23, %s2687_s4  ;;  %v1670_v23 = vsel %vm1648_vm3, %v1637_v38, %v4174_v42 }
 0x20a   : > { %1322 = vrot.lane.b32.xlu0 %v525_v21, %s2688_s5  ;;  %v1703_v25 = vsel %vm1681_vm4, %v1670_v23, %v3744_v41 }
 0x20b   : > { %v1429_v49 = vpop.permute.xlu1 %1428 }
 0x20c   : > { %v1431_v40 = vpop.permute.xlu0 %1430  ;;  %v1832_v45 = vsel %vm1813_vm8, %v1799_v15, %v1429_v49 }
 0x20d   : > { %940 = vrot.lane.b32.xlu1 %v524_v7, %s2685_s21  ;;  %v1833_v31 = vsel %vm1813_vm8, %v1800_v39, %v1431_v40  ;;  %v559_v7 = vld [vmem:[#allocation2 + $0x1a1] sm:$0xff] }
 0x20e   : > { %942 = vrot.lane.b32.xlu0 %v525_v21, %s2685_s21 }
 0x20f   : > { %v1049_v28 = vpop.permute.xlu1 %1048 }
 0x210   : > { %v1051_v63 = vpop.permute.xlu0 %1050  ;;  %v1735_v24 = vsel %vm1714_vm5, %v1702_v2, %v1049_v28 }
 0x211   : > { %1448 = vrot.lane.b32.xlu1 %v556_v5, %s2689_s8  ;;  %v1736_v49 = vsel %vm1714_vm5, %v1703_v25, %v1051_v63 }
 0x212   : > { %1450 = vrot.lane.b32.xlu0 %v557_v9, %s2689_s8 }
 0x213   : > { %v1557_v61 = vpop.permute.xlu1 %1556 }
 0x214   : > { %v1865_v0 = vsel %vm1846_vm9, %v1832_v45, %v1557_v61  ;;  %v1559_v52 = vpop.permute.xlu0 %1558 }
 0x215   : > { %1068 = vrot.lane.b32.xlu1 %v556_v5, %s2686_s26  ;;  %2622 = vmatprep.mubr.msk.f32.mxu1 %vm1884_vm10, %v1865_v0  ;;  %v1866_v4 = vsel %vm1846_vm9, %v1833_v31, %v1559_v52  ;;  %v4175_v52 = vld [vmem:[#allocation17_spill] sm:$0xff] }
 0x216   : > { %1070 = vrot.lane.b32.xlu0 %v557_v9, %s2686_s26  ;;  %2623 = vmatmul.mubr.msk.f32.gmra.mrb[2].mxu1 %vm1884_vm10, %v1866_v4  ;;  %v1638_v4 = vsel %vm182_vm0, %v3533_v54, %v4175_v52  ;;  %v4181_v52 = vld [vmem:[#allocation22_spill] sm:$0xff] }
 0x217   : > { %v1177_v11 = vpop.permute.xlu1 %1176 }
 0x218   : > { %v1305_v35 = vpop.permute.xlu0 %1304  ;;  %v1768_v21 = vsel %vm1747_vm6, %v1735_v24, %v1177_v11 }
 0x219   : > { %1576 = vrot.lane.b32.xlu1 %v588_v10, %s2690_s9  ;;  %v1801_v40 = vsel %vm1780_vm7, %v1768_v21, %v1305_v35 }
 0x21a   : > { %1578 = vrot.lane.b32.xlu0 %v589_v51, %s2690_s9 }
 0x21b   : > { %v1179_v30 = vpop.permute.xlu1 %1178 }
 0x21c   : > { %v1307_v56 = vpop.permute.xlu0 %1306  ;;  %v1769_v41 = vsel %vm1747_vm6, %v1736_v49, %v1179_v30 }
 0x21d   : > { %1196 = vrot.lane.b32.xlu1 %v588_v10, %s2687_s4  ;;  %v1802_v20 = vsel %vm1780_vm7, %v1769_v41, %v1307_v56 }
 0x21e   : > { %1324 = vrot.lane.b32.xlu0 %v526_v48, %s2688_s5 }
 0x21f   : > { %v3782_v12 = vpop.permute.xlu1 %924 }
 0x220   : > { %v3784_v36 = vpop.permute.xlu0 %926 }
 0x221   : > { %1198 = vrot.lane.b32.xlu1 %v589_v51, %s2687_s4  ;;  %v4176_v51 = vld [vmem:[#allocation38_spill] sm:$0xff] }
 0x222   : > { %1452 = vrot.lane.b32.xlu0 %v558_v14, %s2689_s8  ;;  %v1671_v35 = vsel %vm1648_vm3, %v1638_v4, %v4176_v51  ;;  %v4177_v14 = vld [vmem:[#allocation20_spill] sm:$0xff]  ;;  %v1641_v4 = vsel %vm182_vm0, %v3586_v58, %v4181_v52 }
 0x223   : > { %v1433_v50 = vpop.permute.xlu1 %1432  ;;  %v1704_v54 = vsel %vm1681_vm4, %v1671_v35, %v3782_v12  ;;  %v4182_v35 = vld [vmem:[#allocation43_spill] sm:$0xff] }
 0x224   : > { %v1435_v19 = vpop.permute.xlu0 %1434  ;;  %v1834_v26 = vsel %vm1813_vm8, %v1801_v40, %v1433_v50  ;;  %v4178_v50 = vld [vmem:[#allocation41_spill] sm:$0xff] }
 0x225   : > { %1326 = vrot.lane.b32.xlu1 %v527_v53, %s2688_s5  ;;  %v2597_v33 = vpop.f32.mrb[0].mxu0  ;;  %v1835_v3 = vsel %vm1813_vm8, %v1802_v20, %v1435_v19  ;;  %v1639_v53 = vsel %vm182_vm0, %v3540_v60, %v4177_v14 }
 0x226   : > { %v2211_v16 = vsel %vm1648_vm3, %v2597_v33, 0.0  ;;  %v2282_v37 = vmul.f32 %v2597_v33, %v2597_v33  ;;  %2384 = vst.msk [vmem:[%s3798_s14 + $0x8] sm:$0xff] %vm1648_vm3, %v2597_v33  ;;  %1580 = vrot.lane.b32.xlu0 %v590_v8, %s2690_s9  ;;  %v2051_v17 = vpop.f32.mrb[1].mxu0  ;;  %v1672_v22 = vsel %vm1648_vm3, %v1639_v53, %v4178_v50 }
 0x227   : > { %v1053_v34 = vpop.permute.xlu1 %1052  ;;  %v2210_v46 = vsel %vm1648_vm3, %v2051_v17, 0.0  ;;  %v2281_v13 = vmul.f32 %v2051_v17, %v2051_v17  ;;  %2383 = vst.msk [vmem:[%s3798_s14] sm:$0xff] %vm1648_vm3, %v2051_v17  ;;  %v1705_v38 = vsel %vm1681_vm4, %v1672_v22, %v3784_v36 }
 0x228   : > { %v2314_v18 = vsel %vm1648_vm3, %v2282_v37, 0.0  ;;  %v2212_v55 = vadd.f32 %v2211_v16, %v2210_v46  ;;  %v1055_v1 = vpop.permute.xlu0 %1054  ;;  %v1737_v29 = vsel %vm1714_vm5, %v1704_v54, %v1053_v34 }
 0x229   : > { %1454 = vrot.lane.b32.xlu1 %v559_v7, %s2689_s8  ;;  %v2313_v44 = vsel %vm1648_vm3, %v2281_v13, 0.0  ;;  %v1738_v12 = vsel %vm1714_vm5, %v1705_v38, %v1055_v1 }
 0x22a   : > { %v2315_v5 = vadd.f32 %v2314_v18, %v2313_v44 }
 0x22b   : > { %v1561_v57 = vpop.permute.xlu1 %1560 }
 0x22c   : > { %v1867_v28 = vsel %vm1846_vm9, %v1834_v26, %v1561_v57  ;;  %v1563_v9 = vpop.permute.xlu0 %1562 }
 0x22d   : > { %1582 = vrot.lane.b32.xlu1 %v591_v47, %s2690_s9  ;;  %2625 = vmatprep.mubr.msk.f32.mxu1 %vm1884_vm10, %v1867_v28  ;;  %v1868_v32 = vsel %vm1846_vm9, %v1835_v3, %v1563_v9  ;;  %v4179_v3 = vld [vmem:[#allocation19_spill] sm:$0xff] }
 0x22e   : > { %2626 = vmatmul.mubr.msk.f32.gmra.mrb[4].mxu1 %vm1884_vm10, %v1868_v32  ;;  %v1640_v9 = vsel %vm182_vm0, %v3581_v6, %v4179_v3  ;;  %v1674_v6 = vsel %vm1648_vm3, %v1641_v4, %v4182_v35 }
 0x22f   : > { %v1181_v63 = vpop.permute.xlu1 %1180 }
 0x230   : > { %v1309_v15 = vpop.permute.xlu0 %1308  ;;  %v1770_v2 = vsel %vm1747_vm6, %v1737_v29, %v1181_v63 }
 0x231   : > { %v1803_v25 = vsel %vm1780_vm7, %v1770_v2, %v1309_v15 }
 0x233   : > { %v1183_v45 = vpop.permute.xlu1 %1182 }
 0x234   : > { %v1311_v61 = vpop.permute.xlu0 %1310  ;;  %v1771_v24 = vsel %vm1747_vm6, %v1738_v12, %v1183_v45  ;;  %v4180_v45 = vld [vmem:[#allocation40_spill] sm:$0xff] }
 0x235   : > { %v1804_v36 = vsel %vm1780_vm7, %v1771_v24, %v1311_v61  ;;  %v1673_v61 = vsel %vm1648_vm3, %v1640_v9, %v4180_v45 }
 0x237   : > { %v3832_v39 = vpop.permute.xlu1 %928 }
 0x238   : > { %v3834_v0 = vpop.permute.xlu0 %930 }
 0x239   : > { %v2600_v31 = vpop.f32.mrb[2].mxu0 }
 0x23a   : > { %2386 = vst.msk [vmem:[%s3798_s14 + $0x18] sm:$0xff] %vm1648_vm3, %v2600_v31  ;;  %v2061_v11 = vpop.f32.mrb[3].mxu0  ;;  %v2284_v30 = vmul.f32 %v2600_v31, %v2600_v31  ;;  %v2215_v8 = vsel %vm1648_vm3, %v2600_v31, 0.0 }
 0x23b   : > { %v1437_v10 = vpop.permute.xlu1 %1436  ;;  %v2213_v48 = vsel %vm1648_vm3, %v2061_v11, 0.0  ;;  %v2283_v56 = vmul.f32 %v2061_v11, %v2061_v11  ;;  %2385 = vst.msk [vmem:[%s3798_s14 + $0x10] sm:$0xff] %vm1648_vm3, %v2061_v11 }
 0x23c   : > { %v2214_v62 = vadd.f32 %v2213_v48, %v2212_v55  ;;  %v1439_v43 = vpop.permute.xlu0 %1438  ;;  %v2318_v23 = vsel %vm1648_vm3, %v2284_v30, 0.0  ;;  %v1836_v21 = vsel %vm1813_vm8, %v1803_v25, %v1437_v10  ;;  %v1706_v10 = vsel %vm1681_vm4, %v1673_v61, %v3832_v39 }
 0x23d   : > { %v2316_v27 = vsel %vm1648_vm3, %v2283_v56, 0.0  ;;  %v1837_v17 = vsel %vm1813_vm8, %v1804_v36, %v1439_v43  ;;  %v1707_v48 = vsel %vm1681_vm4, %v1674_v6, %v3834_v0 }
 0x23e   : > { %v2317_v60 = vadd.f32 %v2316_v27, %v2315_v5  ;;  %v2216_v42 = vadd.f32 %v2215_v8, %v2214_v62 }
 0x23f   : > { %v1057_v19 = vpop.permute.xlu1 %1056 }
 0x240   : > { %v1059_v33 = vpop.permute.xlu0 %1058  ;;  %v2319_v7 = vadd.f32 %v2318_v23, %v2317_v60  ;;  %v1739_v30 = vsel %vm1714_vm5, %v1706_v10, %v1057_v19 }
 0x241   : > { %v1740_v53 = vsel %vm1714_vm5, %v1707_v48, %v1059_v33 }
 0x243   : > { %v1565_v16 = vpop.permute.xlu1 %1564 }
 0x244   : > { %v1869_v37 = vsel %vm1846_vm9, %v1836_v21, %v1565_v16  ;;  %v1567_v34 = vpop.permute.xlu0 %1566 }
 0x245   : > { %2628 = vmatprep.mubr.msk.f32.mxu1 %vm1884_vm10, %v1869_v37  ;;  %v1870_v49 = vsel %vm1846_vm9, %v1837_v17, %v1567_v34  ;;  %v329_v37 = vld [vmem:[#allocation2 + $0x138] sm:$0xff] }
 0x246   : > { %2629 = vmatmul.mubr.msk.f32.gmra.mrb[6].mxu1 %vm1884_vm10, %v1870_v49 }
 0x247   : > { %v1185_v46 = vpop.permute.xlu1 %1184 }
 0x248   : > { %v1313_v13 = vpop.permute.xlu0 %1312  ;;  %v1772_v56 = vsel %vm1747_vm6, %v1739_v30, %v1185_v46  ;;  %v4183_v46 = vld [vmem:[#allocation21_spill] sm:$0xff] }
 0x249   : > { %v1805_v39 = vsel %vm1780_vm7, %v1772_v56, %v1313_v13  ;;  %v1642_v13 = vsel %vm182_vm0, %v329_v37, %v4183_v46 }
 0x24b   : > { %v1187_v41 = vpop.permute.xlu1 %1186 }
 0x24c   : > { %v1315_v18 = vpop.permute.xlu0 %1314  ;;  %v1773_v58 = vsel %vm1747_vm6, %v1740_v53, %v1187_v41 }
 0x24d   : > { %v2603_v55 = vpop.f32.mrb[4].mxu0  ;;  %v1806_v50 = vsel %vm1780_vm7, %v1773_v58, %v1315_v18  ;;  %v4184_v18 = vld [vmem:[#allocation42_spill] sm:$0xff] }
 0x24e   : > { %2388 = vst.msk [vmem:[%s3798_s14 + $0x28] sm:$0xff] %vm1648_vm3, %v2603_v55  ;;  %v2071_v40 = vpop.f32.mrb[5].mxu0  ;;  %v2286_v44 = vmul.f32 %v2603_v55, %v2603_v55  ;;  %v2219_v20 = vsel %vm1648_vm3, %v2603_v55, 0.0  ;;  %v1675_v55 = vsel %vm1648_vm3, %v1642_v13, %v4184_v18 }
 0x24f   : > { %v3872_v1 = vpop.permute.xlu1 %932  ;;  %v2217_v47 = vsel %vm1648_vm3, %v2071_v40, 0.0  ;;  %v2285_v26 = vmul.f32 %v2071_v40, %v2071_v40  ;;  %2387 = vst.msk [vmem:[%s3798_s14 + $0x20] sm:$0xff] %vm1648_vm3, %v2071_v40  ;;  %v4185_v40 = vld [vmem:[#allocation24_spill] sm:$0xff] }
 0x250   : > { %v2218_v5 = vadd.f32 %v2217_v47, %v2216_v42  ;;  %v935_v57 = vpop.permute.xlu0 %934  ;;  %v2322_v31 = vsel %vm1648_vm3, %v2286_v44, 0.0  ;;  %v1643_v44 = vsel %vm182_vm0, %v3631_v59, %v4185_v40  ;;  %v1708_v47 = vsel %vm1681_vm4, %v1675_v55, %v3872_v1 }
 0x251   : > { %v2320_v28 = vsel %vm1648_vm3, %v2285_v26, 0.0 }
 0x252   : > { %v2321_v32 = vadd.f32 %v2320_v28, %v2319_v7  ;;  %v2220_v15 = vadd.f32 %v2219_v20, %v2218_v5  ;;  %v4186_v5 = vld [vmem:[#allocation45_spill] sm:$0xff] }
 0x253   : > { %v1441_v63 = vpop.permute.xlu1 %1440  ;;  %v1676_v20 = vsel %vm1648_vm3, %v1643_v44, %v4186_v5 }
 0x254   : > { %v1443_v11 = vpop.permute.xlu0 %1442  ;;  %v2323_v51 = vadd.f32 %v2322_v31, %v2321_v32  ;;  %v1838_v62 = vsel %vm1813_vm8, %v1805_v39, %v1441_v63  ;;  %v1709_v3 = vsel %vm1681_vm4, %v1676_v20, %v935_v57 }
 0x255   : > { %v1839_v0 = vsel %vm1813_vm8, %v1806_v50, %v1443_v11 }
 0x257   : > { %v1061_v14 = vpop.permute.xlu1 %1060 }
 0x258   : > { %v1063_v54 = vpop.permute.xlu0 %1062  ;;  %v1741_v28 = vsel %vm1714_vm5, %v1708_v47, %v1061_v14 }
 0x259   : > { %v1742_v63 = vsel %vm1714_vm5, %v1709_v3, %v1063_v54 }
 0x25b   : > { %v1569_v43 = vpop.permute.xlu1 %1568 }
 0x25c   : > { %v1871_v22 = vsel %vm1846_vm9, %v1838_v62, %v1569_v43  ;;  %v1571_v29 = vpop.permute.xlu0 %1570 }
 0x25d   : > { %2631 = vmatprep.mubr.msk.f32.mxu1 %vm1884_vm10, %v1871_v22  ;;  %v1872_v8 = vsel %vm1846_vm9, %v1839_v0, %v1571_v29  ;;  %v331_v29 = vld [vmem:[#allocation2 + $0x150] sm:$0xff] }
 0x25e   : > { %2632 = vmatmul.mubr.msk.f32.gmra.mrb[8].mxu1 %vm1884_vm10, %v1872_v8  ;;  %v332_v8 = vld [vmem:[#allocation2 + $0x158] sm:$0xff] }
 0x25f   : > { %v1189_v27 = vpop.permute.xlu1 %1188 }
 0x260   : > { %v1317_v38 = vpop.permute.xlu0 %1316  ;;  %v1774_v9 = vsel %vm1747_vm6, %v1741_v28, %v1189_v27 }
 0x261   : > { %v2606_v2 = vpop.f32.mrb[6].mxu0  ;;  %v1807_v45 = vsel %vm1780_vm7, %v1774_v9, %v1317_v38  ;;  %v4187_v38 = vld [vmem:[#allocation23_spill] sm:$0xff]  ;;  %v333_v9 = vld [vmem:[#allocation2 + $0x168] sm:$0xff] }
 0x262   : > { %2390 = vst.msk [vmem:[%s3798_s14 + $0x38] sm:$0xff] %vm1648_vm3, %v2606_v2  ;;  %v2081_v19 = vpop.f32.mrb[7].mxu0  ;;  %v2288_v42 = vmul.f32 %v2606_v2, %v2606_v2  ;;  %v2223_v7 = vsel %vm1648_vm3, %v2606_v2, 0.0  ;;  %v1644_v2 = vsel %vm182_vm0, %v331_v29, %v4187_v38 }
 0x263   : > { %v1191_v60 = vpop.permute.xlu1 %1190  ;;  %v2221_v12 = vsel %vm1648_vm3, %v2081_v19, 0.0  ;;  %v2287_v23 = vmul.f32 %v2081_v19, %v2081_v19  ;;  %2389 = vst.msk [vmem:[%s3798_s14 + $0x30] sm:$0xff] %vm1648_vm3, %v2081_v19  ;;  %v4188_v19 = vld [vmem:[#allocation26_spill] sm:$0xff] }
 0x264   : > { %v2222_v24 = vadd.f32 %v2221_v12, %v2220_v15  ;;  %v1319_v33 = vpop.permute.xlu0 %1318  ;;  %v2326_v17 = vsel %vm1648_vm3, %v2288_v42, 0.0  ;;  %v1775_v15 = vsel %vm1747_vm6, %v1742_v63, %v1191_v60  ;;  %v1645_v42 = vsel %vm182_vm0, %v332_v8, %v4188_v19  ;;  %v4189_v12 = vld [vmem:[#allocation44_spill] sm:$0xff] }
 0x265   : > { %v2324_v25 = vsel %vm1648_vm3, %v2287_v23, 0.0  ;;  %v1808_v31 = vsel %vm1780_vm7, %v1775_v15, %v1319_v33  ;;  %v1677_v23 = vsel %vm1648_vm3, %v1644_v2, %v4189_v12 }
 0x266   : > { %v2325_v21 = vadd.f32 %v2324_v25, %v2323_v51  ;;  %v2224_v36 = vadd.f32 %v2223_v7, %v2222_v24  ;;  %v4190_v24 = vld [vmem:[#allocation47_spill] sm:$0xff] }
 0x267   : > { %v937_v16 = vpop.permute.xlu1 %936  ;;  %v1678_v33 = vsel %vm1648_vm3, %v1645_v42, %v4190_v24 }
 0x268   : > { %v939_v34 = vpop.permute.xlu0 %938  ;;  %v2327_v49 = vadd.f32 %v2326_v17, %v2325_v21  ;;  %v1710_v7 = vsel %vm1681_vm4, %v1677_v23, %v937_v16 }
 0x269   : > { %v1711_v21 = vsel %vm1681_vm4, %v1678_v33, %v939_v34 }
 0x26b   : > { %v1445_v41 = vpop.permute.xlu1 %1444 }
 0x26c   : > { %v1447_v26 = vpop.permute.xlu0 %1446  ;;  %v1840_v1 = vsel %vm1813_vm8, %v1807_v45, %v1445_v41 }
 0x26d   : > { %v1841_v57 = vsel %vm1813_vm8, %v1808_v31, %v1447_v26  ;;  %v4191_v31 = vld [vmem:[#allocation25_spill] sm:$0xff] }
 0x26f   : > { %v1065_v32 = vpop.permute.xlu1 %1064 }
 0x270   : > { %v1067_v59 = vpop.permute.xlu0 %1066 }
 0x271   : > { %v1744_v37 = vsel %vm1714_vm5, %v1711_v21, %v1067_v59 }
 0x273   : > { %v1573_v61 = vpop.permute.xlu1 %1572 }
 0x274   : > { %v1873_v52 = vsel %vm1846_vm9, %v1840_v1, %v1573_v61  ;;  %v1575_v4 = vpop.permute.xlu0 %1574 }
 0x275   : > { %2634 = vmatprep.mubr.msk.f32.mxu1 %vm1884_vm10, %v1873_v52  ;;  %v1874_v10 = vsel %vm1846_vm9, %v1841_v57, %v1575_v4  ;;  %v2609_v11 = vpop.f32.mrb[8].mxu0  ;;  %v1646_v52 = vsel %vm182_vm0, %v333_v9, %v4191_v31 }
 0x276   : > { %2392 = vst.msk [vmem:[%s3798_s14 + $0x48] sm:$0xff] %vm1648_vm3, %v2609_v11  ;;  %2635 = vmatmul.mubr.msk.f32.gmra.mrb[10].mxu1 %vm1884_vm10, %v1874_v10  ;;  %v2091_v35 = vpop.f32.mrb[9].mxu0  ;;  %v2290_v6 = vmul.f32 %v2609_v11, %v2609_v11  ;;  %v2227_v53 = vsel %vm1648_vm3, %v2609_v11, 0.0  ;;  %v4192_v10 = vld [vmem:[#allocation46_spill] sm:$0xff] }
 0x277   : > { %v1193_v51 = vpop.permute.xlu1 %1192  ;;  %v2225_v30 = vsel %vm1648_vm3, %v2091_v35, 0.0  ;;  %v2289_v48 = vmul.f32 %v2091_v35, %v2091_v35  ;;  %2391 = vst.msk [vmem:[%s3798_s14 + $0x40] sm:$0xff] %vm1648_vm3, %v2091_v35  ;;  %v1679_v11 = vsel %vm1648_vm3, %v1646_v52, %v4192_v10 }
 0x278   : > { %v2226_v56 = vadd.f32 %v2225_v30, %v2224_v36  ;;  %v1321_v14 = vpop.permute.xlu0 %1320  ;;  %v2330_v43 = vsel %vm1648_vm3, %v2290_v6, 0.0  ;;  %v1743_v36 = vsel %vm1714_vm5, %v1710_v7, %v1065_v32 }
 0x279   : > { %v2328_v58 = vsel %vm1648_vm3, %v2289_v48, 0.0  ;;  %v1776_v17 = vsel %vm1747_vm6, %v1743_v36, %v1193_v51 }
 0x27a   : > { %v2329_v54 = vadd.f32 %v2328_v58, %v2327_v49  ;;  %v2228_v62 = vadd.f32 %v2227_v53, %v2226_v56  ;;  %v1809_v41 = vsel %vm1780_vm7, %v1776_v17, %v1321_v14  ;;  %v334_v56 = vld [vmem:[#allocation2 + $0x170] sm:$0xff] }
 0x27b   : > { %v1195_v39 = vpop.permute.xlu1 %1194  ;;  %v4193_v58 = vld [vmem:[#allocation27_spill] sm:$0xff] }
 0x27c   : > { %v1323_v50 = vpop.permute.xlu0 %1322  ;;  %v2331_v22 = vadd.f32 %v2330_v43, %v2329_v54  ;;  %v1777_v46 = vsel %vm1747_vm6, %v1744_v37, %v1195_v39  ;;  %v1647_v54 = vsel %vm182_vm0, %v334_v56, %v4193_v58  ;;  %v4194_v43 = vld [vmem:[#allocation48_spill] sm:$0xff] }
 0x27d   : > { %v1810_v55 = vsel %vm1780_vm7, %v1777_v46, %v1323_v50  ;;  %v1680_v50 = vsel %vm1648_vm3, %v1647_v54, %v4194_v43 }
 0x27f   : > { %v941_v0 = vpop.permute.xlu1 %940 }
 0x280   : > { %v943_v27 = vpop.permute.xlu0 %942  ;;  %v1712_v51 = vsel %vm1681_vm4, %v1679_v11, %v941_v0 }
 0x281   : > { %v1713_v0 = vsel %vm1681_vm4, %v1680_v50, %v943_v27 }
 0x283   : > { %v1449_v60 = vpop.permute.xlu1 %1448 }
 0x284   : > { %v1451_v25 = vpop.permute.xlu0 %1450  ;;  %v1842_v16 = vsel %vm1813_vm8, %v1809_v41, %v1449_v60 }
 0x285   : > { %v1843_v20 = vsel %vm1813_vm8, %v1810_v55, %v1451_v25 }
 0x287   : > { %v1069_v49 = vpop.permute.xlu1 %1068 }
 0x288   : > { %v1071_v13 = vpop.permute.xlu0 %1070  ;;  %v1745_v6 = vsel %vm1714_vm5, %v1712_v51, %v1069_v49 }
 0x289   : > { %v2612_v18 = vpop.f32.mrb[10].mxu0  ;;  %v1746_v8 = vsel %vm1714_vm5, %v1713_v0, %v1071_v13 }
 0x28a   : > { %2394 = vst.msk [vmem:[%s3798_s14 + $0x58] sm:$0xff] %vm1648_vm3, %v2612_v18  ;;  %v2101_v40 = vpop.f32.mrb[11].mxu0  ;;  %v2292_v44 = vmul.f32 %v2612_v18, %v2612_v18  ;;  %v2231_v32 = vsel %vm1648_vm3, %v2612_v18, 0.0 }
 0x28b   : > { %v1577_v34 = vpop.permute.xlu1 %1576  ;;  %v2229_v26 = vsel %vm1648_vm3, %v2101_v40, 0.0  ;;  %v2291_v5 = vmul.f32 %v2101_v40, %v2101_v40  ;;  %2393 = vst.msk [vmem:[%s3798_s14 + $0x50] sm:$0xff] %vm1648_vm3, %v2101_v40 }
 0x28c   : > { %v1875_v47 = vsel %vm1846_vm9, %v1842_v16, %v1577_v34  ;;  %v2230_v28 = vadd.f32 %v2229_v26, %v2228_v62  ;;  %v1579_v3 = vpop.permute.xlu0 %1578  ;;  %v2334_v61 = vsel %vm1648_vm3, %v2292_v44, 0.0 }
 0x28d   : > { %2637 = vmatprep.mubr.msk.f32.mxu1 %vm1884_vm10, %v1875_v47  ;;  %v2332_v63 = vsel %vm1648_vm3, %v2291_v5, 0.0  ;;  %v1876_v15 = vsel %vm1846_vm9, %v1843_v20, %v1579_v3 }
 0x28e   : > { %v2333_v59 = vadd.f32 %v2332_v63, %v2331_v22  ;;  %2638 = vmatmul.mubr.msk.f32.gmra.mrb[12].mxu1 %vm1884_vm10, %v1876_v15  ;;  %v2232_v1 = vadd.f32 %v2231_v32, %v2230_v28 }
 0x28f   : > { %v1197_v45 = vpop.permute.xlu1 %1196 }
 0x290   : > { %v1325_v57 = vpop.permute.xlu0 %1324  ;;  %v2335_v4 = vadd.f32 %v2334_v61, %v2333_v59  ;;  %v1778_v30 = vsel %vm1747_vm6, %v1745_v6, %v1197_v45 }
 0x291   : > { %v1811_v53 = vsel %vm1780_vm7, %v1778_v30, %v1325_v57 }
 0x293   : > { %v1199_v35 = vpop.permute.xlu1 %1198 }
 0x294   : > { %v1453_v48 = vpop.permute.xlu0 %1452  ;;  %v1779_v38 = vsel %vm1747_vm6, %v1746_v8, %v1199_v35 }
 0x295   : > { %v1844_v39 = vsel %vm1813_vm8, %v1811_v53, %v1453_v48 }
 0x297   : > { %v1327_v14 = vpop.permute.xlu1 %1326 }
 0x298   : > { %v1581_v62 = vpop.permute.xlu0 %1580  ;;  %v1812_v2 = vsel %vm1780_vm7, %v1779_v38, %v1327_v14 }
 0x299   : > { %v1877_v22 = vsel %vm1846_vm9, %v1844_v39, %v1581_v62 }
 0x29a   : > { %2640 = vmatprep.mubr.msk.f32.mxu1 %vm1884_vm10, %v1877_v22 }
 0x29b   : > { %v1455_v29 = vpop.permute.xlu1 %1454 }
 0x29c   : > { %v1845_v60 = vsel %vm1813_vm8, %v1812_v2, %v1455_v29 }
 0x29f   : > { %v1583_v19 = vpop.permute.xlu1 %1582 }
 0x2a0   : > { %v1878_v42 = vsel %vm1846_vm9, %v1845_v60, %v1583_v19 }
 0x2a1   : > { %2641 = vmatmul.mubr.msk.f32.gmra.mrb[14].mxu1 %vm1884_vm10, %v1878_v42  ;;  %v2615_v12 = vpop.f32.mrb[12].mxu0 }
 0x2a2   : > { %2396 = vst.msk [vmem:[%s3798_s14 + $0x68] sm:$0xff] %vm1648_vm3, %v2615_v12  ;;  %v2111_v27 = vpop.f32.mrb[13].mxu0  ;;  %v2294_v23 = vmul.f32 %v2615_v12, %v2615_v12  ;;  %v2235_v25 = vsel %vm1648_vm3, %v2615_v12, 0.0 }
 0x2a3   : > { %v2233_v24 = vsel %vm1648_vm3, %v2111_v27, 0.0  ;;  %v2293_v33 = vmul.f32 %v2111_v27, %v2111_v27  ;;  %2395 = vst.msk [vmem:[%s3798_s14 + $0x60] sm:$0xff] %vm1648_vm3, %v2111_v27 }
 0x2a4   : > { %v2234_v7 = vadd.f32 %v2233_v24, %v2232_v1  ;;  %v2338_v17 = vsel %vm1648_vm3, %v2294_v23, 0.0 }
 0x2a5   : > { %v2336_v21 = vsel %vm1648_vm3, %v2293_v33, 0.0 }
 0x2a6   : > { %v2337_v36 = vadd.f32 %v2336_v21, %v2335_v4  ;;  %v2236_v37 = vadd.f32 %v2235_v25, %v2234_v7 }
 0x2a8   : > { %v2339_v49 = vadd.f32 %v2338_v17, %v2337_v36 }
 0x2b9   : > { %v2618_v46 = vpop.f32.mrb[14].mxu0 }
 0x2ba   : > { %2398 = vst.msk [vmem:[%s3798_s14 + $0x78] sm:$0xff] %vm1648_vm3, %v2618_v46  ;;  %v2121_v13 = vpop.f32.mrb[15].mxu0  ;;  %v2296_v41 = vmul.f32 %v2618_v46, %v2618_v46  ;;  %v2239_v34 = vsel %vm1648_vm3, %v2618_v46, 0.0 }
 0x2bb   : > { %v2237_v18 = vsel %vm1648_vm3, %v2121_v13, 0.0  ;;  %v2295_v55 = vmul.f32 %v2121_v13, %v2121_v13  ;;  %2397 = vst.msk [vmem:[%s3798_s14 + $0x70] sm:$0xff] %vm1648_vm3, %v2121_v13 }
 0x2bc   : > { %v2238_v16 = vadd.f32 %v2237_v18, %v2236_v37  ;;  %v2342_v26 = vsel %vm1648_vm3, %v2296_v41, 0.0 }
 0x2bd   : > { %v2340_v40 = vsel %vm1648_vm3, %v2295_v55, 0.0 }
 0x2be   : > { %v2240_v44 = vadd.f32 %v2239_v34, %v2238_v16  ;;  %v2341_v47 = vadd.f32 %v2340_v40, %v2339_v49 }
 0x2c0   : > { %v2343_v5 = vadd.f32 %v2342_v26, %v2341_v47 }
 0x2d1   : > { %v2621_v20 = vpop.f32.mrb[0].mxu1 }
 0x2d2   : > { %2400 = vst.msk [vmem:[%s3798_s14 + $0x88] sm:$0xff] %vm1648_vm3, %v2621_v20  ;;  %v2131_v28 = vpop.f32.mrb[1].mxu1  ;;  %v2298_v3 = vmul.f32 %v2621_v20, %v2621_v20  ;;  %v2243_v15 = vsel %vm1648_vm3, %v2621_v20, 0.0 }
 0x2d3   : > { %v2241_v9 = vsel %vm1648_vm3, %v2131_v28, 0.0  ;;  %v2297_v32 = vmul.f32 %v2131_v28, %v2131_v28  ;;  %2399 = vst.msk [vmem:[%s3798_s14 + $0x80] sm:$0xff] %vm1648_vm3, %v2131_v28 }
 0x2d4   : > { %v2242_v63 = vadd.f32 %v2241_v9, %v2240_v44  ;;  %v2346_v61 = vsel %vm1648_vm3, %v2298_v3, 0.0 }
 0x2d5   : > { %v2344_v59 = vsel %vm1648_vm3, %v2297_v32, 0.0 }
 0x2d6   : > { %v2345_v45 = vadd.f32 %v2344_v59, %v2343_v5  ;;  %v2244_v1 = vadd.f32 %v2243_v15, %v2242_v63 }
 0x2d8   : > { %v2347_v31 = vadd.f32 %v2346_v61, %v2345_v45 }
 0x2e9   : > { %v2624_v52 = vpop.f32.mrb[2].mxu1 }
 0x2ea   : > { %2402 = vst.msk [vmem:[%s3798_s14 + $0x98] sm:$0xff] %vm1648_vm3, %v2624_v52  ;;  %v2141_v57 = vpop.f32.mrb[3].mxu1  ;;  %v2300_v4 = vmul.f32 %v2624_v52, %v2624_v52  ;;  %v2247_v35 = vsel %vm1648_vm3, %v2624_v52, 0.0 }
 0x2eb   : > { %v2245_v10 = vsel %vm1648_vm3, %v2141_v57, 0.0  ;;  %v2299_v11 = vmul.f32 %v2141_v57, %v2141_v57  ;;  %2401 = vst.msk [vmem:[%s3798_s14 + $0x90] sm:$0xff] %vm1648_vm3, %v2141_v57 }
 0x2ec   : > { %v2246_v51 = vadd.f32 %v2245_v10, %v2244_v1  ;;  %v2350_v56 = vsel %vm1648_vm3, %v2300_v4, 0.0 }
 0x2ed   : > { %v2348_v6 = vsel %vm1648_vm3, %v2299_v11, 0.0 }
 0x2ee   : > { %v2349_v30 = vadd.f32 %v2348_v6, %v2347_v31  ;;  %v2248_v48 = vadd.f32 %v2247_v35, %v2246_v51 }
 0x2f0   : > { %v2351_v14 = vadd.f32 %v2350_v56, %v2349_v30 }
 0x301   : > { %v2627_v53 = vpop.f32.mrb[4].mxu1 }
 0x302   : > { %2404 = vst.msk [vmem:[%s3798_s14 + $0xa8] sm:$0xff] %vm1648_vm3, %v2627_v53  ;;  %v2151_v58 = vpop.f32.mrb[5].mxu1  ;;  %v2302_v54 = vmul.f32 %v2627_v53, %v2627_v53  ;;  %v2251_v50 = vsel %vm1648_vm3, %v2627_v53, 0.0 }
 0x303   : > { %v2249_v39 = vsel %vm1648_vm3, %v2151_v58, 0.0  ;;  %v2301_v62 = vmul.f32 %v2151_v58, %v2151_v58  ;;  %2403 = vst.msk [vmem:[%s3798_s14 + $0xa0] sm:$0xff] %vm1648_vm3, %v2151_v58 }
 0x304   : > { %v2250_v43 = vadd.f32 %v2249_v39, %v2248_v48  ;;  %v2354_v8 = vsel %vm1648_vm3, %v2302_v54, 0.0 }
 0x305   : > { %v2352_v22 = vsel %vm1648_vm3, %v2301_v62, 0.0 }
 0x306   : > { %v2353_v0 = vadd.f32 %v2352_v22, %v2351_v14  ;;  %v2252_v29 = vadd.f32 %v2251_v50, %v2250_v43 }
 0x308   : > { %v2355_v38 = vadd.f32 %v2354_v8, %v2353_v0 }
 0x319   : > { %v2630_v2 = vpop.f32.mrb[6].mxu1 }
 0x31a   : > { %2406 = vst.msk [vmem:[%s3798_s14 + $0xb8] sm:$0xff] %vm1648_vm3, %v2630_v2  ;;  %v2161_v60 = vpop.f32.mrb[7].mxu1  ;;  %v2304_v19 = vmul.f32 %v2630_v2, %v2630_v2  ;;  %v2255_v23 = vsel %vm1648_vm3, %v2630_v2, 0.0 }
 0x31b   : > { %v2253_v42 = vsel %vm1648_vm3, %v2161_v60, 0.0  ;;  %v2303_v12 = vmul.f32 %v2161_v60, %v2161_v60  ;;  %2405 = vst.msk [vmem:[%s3798_s14 + $0xb0] sm:$0xff] %vm1648_vm3, %v2161_v60 }
 0x31c   : > { %v2254_v27 = vadd.f32 %v2253_v42, %v2252_v29  ;;  %v2358_v25 = vsel %vm1648_vm3, %v2304_v19, 0.0 }
 0x31d   : > { %v2356_v24 = vsel %vm1648_vm3, %v2303_v12, 0.0 }
 0x31e   : > { %v2357_v33 = vadd.f32 %v2356_v24, %v2355_v38  ;;  %v2256_v7 = vadd.f32 %v2255_v23, %v2254_v27 }
 0x320   : > { %v2359_v21 = vadd.f32 %v2358_v25, %v2357_v33 }
 0x331   : > { %v2633_v36 = vpop.f32.mrb[8].mxu1 }
 0x332   : > { %2408 = vst.msk [vmem:[%s3798_s14 + $0xc8] sm:$0xff] %vm1648_vm3, %v2633_v36  ;;  %v2171_v37 = vpop.f32.mrb[9].mxu1  ;;  %v2306_v17 = vmul.f32 %v2633_v36, %v2633_v36  ;;  %v2259_v41 = vsel %vm1648_vm3, %v2633_v36, 0.0 }
 0x333   : > { %v2257_v49 = vsel %vm1648_vm3, %v2171_v37, 0.0  ;;  %v2305_v46 = vmul.f32 %v2171_v37, %v2171_v37  ;;  %2407 = vst.msk [vmem:[%s3798_s14 + $0xc0] sm:$0xff] %vm1648_vm3, %v2171_v37 }
 0x334   : > { %v2258_v13 = vadd.f32 %v2257_v49, %v2256_v7  ;;  %v2362_v34 = vsel %vm1648_vm3, %v2306_v17, 0.0 }
 0x335   : > { %v2360_v18 = vsel %vm1648_vm3, %v2305_v46, 0.0 }
 0x336   : > { %v2361_v55 = vadd.f32 %v2360_v18, %v2359_v21  ;;  %v2260_v16 = vadd.f32 %v2259_v41, %v2258_v13 }
 0x338   : > { %v2363_v40 = vadd.f32 %v2362_v34, %v2361_v55 }
 0x349   : > { %v2636_v44 = vpop.f32.mrb[10].mxu1 }
 0x34a   : > { %2410 = vst.msk [vmem:[%s3798_s14 + $0xd8] sm:$0xff] %vm1648_vm3, %v2636_v44  ;;  %v2181_v47 = vpop.f32.mrb[11].mxu1  ;;  %v2308_v26 = vmul.f32 %v2636_v44, %v2636_v44  ;;  %v2263_v3 = vsel %vm1648_vm3, %v2636_v44, 0.0 }
 0x34b   : > { %v2261_v5 = vsel %vm1648_vm3, %v2181_v47, 0.0  ;;  %v2307_v20 = vmul.f32 %v2181_v47, %v2181_v47  ;;  %2409 = vst.msk [vmem:[%s3798_s14 + $0xd0] sm:$0xff] %vm1648_vm3, %v2181_v47 }
 0x34c   : > { %v2262_v28 = vadd.f32 %v2261_v5, %v2260_v16  ;;  %v2366_v15 = vsel %vm1648_vm3, %v2308_v26, 0.0 }
 0x34d   : > { %v2364_v9 = vsel %vm1648_vm3, %v2307_v20, 0.0 }
 0x34e   : > { %v2365_v32 = vadd.f32 %v2364_v9, %v2363_v40  ;;  %v2264_v63 = vadd.f32 %v2263_v3, %v2262_v28 }
 0x350   : > { %v2367_v59 = vadd.f32 %v2366_v15, %v2365_v32 }
 0x361   : > { %v2639_v45 = vpop.f32.mrb[12].mxu1 }
 0x362   : > { %2412 = vst.msk [vmem:[%s3798_s14 + $0xe8] sm:$0xff] %vm1648_vm3, %v2639_v45  ;;  %v2191_v1 = vpop.f32.mrb[13].mxu1  ;;  %v2310_v61 = vmul.f32 %v2639_v45, %v2639_v45  ;;  %v2267_v4 = vsel %vm1648_vm3, %v2639_v45, 0.0 }
 0x363   : > { %v2265_v31 = vsel %vm1648_vm3, %v2191_v1, 0.0  ;;  %v2309_v52 = vmul.f32 %v2191_v1, %v2191_v1  ;;  %2411 = vst.msk [vmem:[%s3798_s14 + $0xe0] sm:$0xff] %vm1648_vm3, %v2191_v1 }
 0x364   : > { %v2266_v57 = vadd.f32 %v2265_v31, %v2264_v63  ;;  %v2370_v35 = vsel %vm1648_vm3, %v2310_v61, 0.0 }
 0x365   : > { %v2368_v10 = vsel %vm1648_vm3, %v2309_v52, 0.0 }
 0x366   : > { %v2369_v11 = vadd.f32 %v2368_v10, %v2367_v59  ;;  %v2268_v51 = vadd.f32 %v2267_v4, %v2266_v57 }
 0x368   : > { %v2371_v6 = vadd.f32 %v2370_v35, %v2369_v11 }
 0x374   : > { %v2642_v30 = vpop.f32.mrb[14].mxu1 }
 0x375   : > { %2414 = vst.msk [vmem:[%s3798_s14 + $0xf8] sm:$0xff] %vm1648_vm3, %v2642_v30  ;;  %v2201_v48 = vpop.f32.mrb[15].mxu1  ;;  %v2312_v56 = vmul.f32 %v2642_v30, %v2642_v30  ;;  %v2271_v54 = vsel %vm1648_vm3, %v2642_v30, 0.0 }
 0x376   : > { %v2269_v14 = vsel %vm1648_vm3, %v2201_v48, 0.0  ;;  %v2311_v53 = vmul.f32 %v2201_v48, %v2201_v48  ;;  %2413 = vst.msk [vmem:[%s3798_s14 + $0xf0] sm:$0xff] %vm1648_vm3, %v2201_v48 }
 0x377   : > { %v2270_v58 = vadd.f32 %v2269_v14, %v2268_v51  ;;  %v2374_v50 = vsel %vm1648_vm3, %v2312_v56, 0.0 }
 0x378   : > { %v2372_v39 = vsel %vm1648_vm3, %v2311_v53, 0.0 }
 0x379   : > { %v2272_v62 = vadd.f32 %v2271_v54, %v2270_v58  ;;  %v2373_v43 = vadd.f32 %v2372_v39, %v2371_v6 }
 0x37b   : > { %v2273_v22 = vrot.slane %v2272_v62, 4  ;;  %v2375_v0 = vadd.f32 %v2374_v50, %v2373_v43 }
 0x37d   : > { %v2274_v29 = vadd.f32 %v2273_v22, %v2272_v62  ;;  %v2376_v8 = vrot.slane %v2375_v0, 4 }
 0x37f   : > { %v2275_v38 = vrot.slane %v2274_v29, 2  ;;  %v2377_v2 = vadd.f32 %v2376_v8, %v2375_v0 }
 0x381   : > { %v2276_v60 = vadd.f32 %v2275_v38, %v2274_v29  ;;  %v2378_v19 = vrot.slane %v2377_v2, 2 }
 0x383   : > { %v2277_v42 = vrot.slane %v2276_v60, 1  ;;  %v2379_v12 = vadd.f32 %v2378_v19, %v2377_v2 }
 0x385   : > { %v2278_v27 = vadd.f32 %v2277_v42, %v2276_v60  ;;  %v2380_v23 = vrot.slane %v2379_v12, 1 }
 0x387   : > { %2280 = vst.msk [vmem:[%s181_s18] sm:$0x1] %vm2279_vm11, %v2278_v27  ;;  %v2381_v24 = vadd.f32 %v2380_v23, %v2379_v12 }
 0x389   : > { %2382 = vst.msk [vmem:[%s181_s18 + $0x1] sm:$0x1] %vm2279_vm11, %v2381_v24 }
 0x38a PF: > { %s14_s12 = sadd.s32 1, %s2680_s12  }
 0x38b   : > { %p11_p4 = scmp.ge.s32.totalorder %s14_s12, 4  }
 0x38d   :  { %13 = sbr.rel (!%p11_p4) target bundleno = 1 (0x1), region = 72 }

// kernel: residual_block_forward.6
= control target key start
LH: loop header
LB: loop body
LE: loop exit
PB: predicated region body
PF: predicated region fallthrough
CT: control target
= control target key end

     0   :  { %s2734_s12 = smov 0   ;;  %s4111_s0 = inlined_call_operand.vmem [shape: f32[2,16,16,8], index: 0, kind: input, shape index: {}]   ;;  %s4112_s1 = inlined_call_operand.vmem [shape: f32[72,8], index: 1, kind: input, shape index: {}]   ;;  %s4113_s2 = inlined_call_operand.vmem [shape: f32[2,256,8], index: 2, kind: output, shape index: {0}]   ;;  %s4114_s3 = inlined_call_operand.vmem [shape: f32[2,2,8], index: 3, kind: output, shape index: {1}]  }
   0x1 LB: > { %s2501_s13 = sadd.s32 4294967295, %s2703_s12   ;;  %p2505_p0 = scmp.ge.s32.totalorder %s2703_s12, 1  ;;  %s2703_s12 = sphi %s2734_s12, %s14_s12  }
   0x2   : > { %p140_p1 = scmp.lt.s32.totalorder %s2703_s12, 3 }
   0x4   : > { %p141_p2 = pnand %p2505_p0, %p140_p1 }
   0x6   : > { %144 = sbr.rel (%p141_p2) target bundleno = 906 (0x38a), region = 28 }
   0xd   : > { %vm182_vm0 = vcmask 64512   ;;  %vm185_vm1 = vcmask 58368   ;;  %p2744_p3 = scmp.lt.s32.totalorder %s2501_s13, 1  ;;  %v2705_v0 = vmov 0.0   ;;  %s2706_s19 = smov 8   ;;  %vm1648_vm2 = vcmask 130048  }
   0xe   : > { %183 = vst.msk [vmem:[#allocation2] sm:$0xff] %vm182_vm0, %v2705_v0  ;;  %184 = vst.msk [vmem:[#allocation2 + $0x8] sm:$0xff] %vm182_vm0, %v2705_v0  ;;  %s2707_s20 = smov 16   ;;  %s2708_s21 = smov 24   ;;  %vm1681_vm3 = vcmask 195584   ;;  %vm1714_vm4 = vcmask 261120  }
   0xf   : > { %187 = vst.msk [vmem:[#allocation2 + $0x18] sm:$0xff] %vm182_vm0, %v2705_v0  ;;  %188 = vst.msk [vmem:[#allocation2 + $0x20] sm:$0xff] %vm182_vm0, %v2705_v0  ;;  %s4221_s13 = smov (!%p2744_p3, %s2501_s13), 1  ;;  %s2709_s7 = smov 32   ;;  %vm1747_vm5 = vcmask 326656   ;;  %vm1780_vm6 = vcmask 392192  }
  0x10   : > { %190 = vst.msk [vmem:[#allocation2 + $0x30] sm:$0xff] %vm182_vm0, %v2705_v0  ;;  %191 = vst.msk [vmem:[#allocation2 + $0x38] sm:$0xff] %vm182_vm0, %v2705_v0  ;;  %s2545_s15 = sshll.u32 %s4221_s13, 8  ;;  %s2710_s14 = smov 40   ;;  %vm1813_vm7 = vcmask 457728   ;;  %vm1846_vm8 = vcmask 523264  }
  0x11   : > { %193 = vst.msk [vmem:[#allocation2 + $0x48] sm:$0xff] %vm182_vm0, %v2705_v0  ;;  %194 = vst.msk [vmem:[#allocation2 + $0x50] sm:$0xff] %vm182_vm0, %v2705_v0  ;;  %s2814_s18 = scalar_lea.vmem %s4111_s0, %s2545_s15  ;;  %s2711_s16 = smov 48   ;;  %vm1888_vm9 = vcmask 588800   ;;  %vm2279_vm10 = vcmask 57344  }
  0x12   : > { %196 = vst.msk [vmem:[#allocation2 + $0x60] sm:$0xff] %vm182_vm0, %v2705_v0  ;;  %197 = vst.msk [vmem:[#allocation2 + $0x68] sm:$0xff] %vm182_vm0, %v2705_v0  ;;  %v238_v1 = vld [vmem:[%s2814_s18] sm:$0xff]  ;;  %v240_v2 = vld [vmem:[%s2814_s18 + $0x10] sm:$0xff]  ;;  %s2713_s22 = smov 64   ;;  %s3825_s23 = scalar_lea.vmem %s4113_s2, %s2545_s15 }
  0x13   : > { %199 = vst.msk [vmem:[#allocation2 + $0x78] sm:$0xff] %vm182_vm0, %v2705_v0  ;;  %200 = vst.msk [vmem:[#allocation2 + $0x80] sm:$0xff] %vm182_vm0, %v2705_v0  ;;  %v239_v3 = vld [vmem:[%s2814_s18 + $0x8] sm:$0xff]  ;;  %v242_v4 = vld [vmem:[%s2814_s18 + $0x20] sm:$0xff]  ;;  %s2510_s15 = sshll.u32 %s4221_s13, 1 }
  0x14   : > { %202 = vst.msk [vmem:[#allocation2 + $0x90] sm:$0xff] %vm182_vm0, %v2705_v0  ;;  %203 = vst.msk [vmem:[#allocation2 + $0x98] sm:$0xff] %vm182_vm0, %v2705_v0  ;;  %v241_v5 = vld [vmem:[%s2814_s18 + $0x18] sm:$0xff]  ;;  %v244_v6 = vld [vmem:[%s2814_s18 + $0x30] sm:$0xff]  ;;  %s181_s26 = scalar_lea.vmem %s4114_s3, %s2510_s15 }
  0x15   : > { %205 = vst.msk [vmem:[#allocation2 + $0xa8] sm:$0xff] %vm182_vm0, %v2705_v0  ;;  %206 = vst.msk [vmem:[#allocation2 + $0xb0] sm:$0xff] %vm182_vm0, %v2705_v0  ;;  %v335_v7 = vld [vmem:[#allocation2 + $0x1] sm:$0xff]  ;;  %v245_v11 = vld [vmem:[%s2814_s18 + $0x38] sm:$0xff] }
  0x16   : > { %208 = vst.msk [vmem:[#allocation2 + $0xc0] sm:$0xff] %vm182_vm0, %v2705_v0  ;;  %209 = vst.msk [vmem:[#allocation2 + $0xc8] sm:$0xff] %vm182_vm0, %v2705_v0  ;;  %v243_v9 = vld [vmem:[%s2814_s18 + $0x28] sm:$0xff]  ;;  %624 = vrot.lane.b32.xlu0 %v335_v7, %s2706_s19  ;;  %v246_v10 = vld [vmem:[%s2814_s18 + $0x40] sm:$0xff] }
  0x17   : > { %211 = vst.msk [vmem:[#allocation2 + $0xd8] sm:$0xff] %vm182_vm0, %v2705_v0  ;;  %212 = vst.msk [vmem:[#allocation2 + $0xe0] sm:$0xff] %vm182_vm0, %v2705_v0  ;;  %v248_v12 = vld [vmem:[%s2814_s18 + $0x50] sm:$0xff]  ;;  %v247_v13 = vld [vmem:[%s2814_s18 + $0x48] sm:$0xff] }
  0x18   : > { %214 = vst.msk [vmem:[#allocation2 + $0xf0] sm:$0xff] %vm182_vm0, %v2705_v0  ;;  %215 = vst.msk [vmem:[#allocation2 + $0xf8] sm:$0xff] %vm182_vm0, %v2705_v0  ;;  %v250_v14 = vld [vmem:[%s2814_s18 + $0x60] sm:$0xff]  ;;  %v249_v15 = vld [vmem:[%s2814_s18 + $0x58] sm:$0xff] }
  0x19   : > { %217 = vst.msk [vmem:[#allocation2 + $0x108] sm:$0xff] %vm182_vm0, %v2705_v0  ;;  %218 = vst.msk [vmem:[#allocation2 + $0x110] sm:$0xff] %vm182_vm0, %v2705_v0  ;;  %v252_v16 = vld [vmem:[%s2814_s18 + $0x70] sm:$0xff]  ;;  %v251_v17 = vld [vmem:[%s2814_s18 + $0x68] sm:$0xff] }
  0x1a   : > { %220 = vst.msk [vmem:[#allocation2 + $0x120] sm:$0xff] %vm182_vm0, %v2705_v0  ;;  %221 = vst.msk [vmem:[#allocation2 + $0x128] sm:$0xff] %vm182_vm0, %v2705_v0  ;;  %v254_v18 = vld [vmem:[%s2814_s18 + $0x80] sm:$0xff]  ;;  %v253_v19 = vld [vmem:[%s2814_s18 + $0x78] sm:$0xff] }
  0x1b   : > { %223 = vst.msk [vmem:[#allocation2 + $0x138] sm:$0xff] %vm182_vm0, %v2705_v0  ;;  %224 = vst.msk [vmem:[#allocation2 + $0x140] sm:$0xff] %vm182_vm0, %v2705_v0  ;;  %v256_v20 = vld [vmem:[%s2814_s18 + $0x90] sm:$0xff]  ;;  %v255_v21 = vld [vmem:[%s2814_s18 + $0x88] sm:$0xff] }
  0x1c   : > { %226 = vst.msk [vmem:[#allocation2 + $0x150] sm:$0xff] %vm182_vm0, %v2705_v0  ;;  %227 = vst.msk [vmem:[#allocation2 + $0x158] sm:$0xff] %vm182_vm0, %v2705_v0  ;;  %v258_v22 = vld [vmem:[%s2814_s18 + $0xa0] sm:$0xff]  ;;  %v257_v23 = vld [vmem:[%s2814_s18 + $0x98] sm:$0xff] }
  0x1d   : > { %229 = vst.msk [vmem:[#allocation2 + $0x168] sm:$0xff] %vm182_vm0, %v2705_v0  ;;  %230 = vst.msk [vmem:[#allocation2 + $0x170] sm:$0xff] %vm182_vm0, %v2705_v0  ;;  %v260_v24 = vld [vmem:[%s2814_s18 + $0xb0] sm:$0xff]  ;;  %v259_v28 = vld [vmem:[%s2814_s18 + $0xa8] sm:$0xff] }
  0x1e   : > { %232 = vst.msk [vmem:[#allocation2 + $0x180] sm:$0xff] %vm182_vm0, %v2705_v0  ;;  %233 = vst.msk [vmem:[#allocation2 + $0x188] sm:$0xff] %vm182_vm0, %v2705_v0  ;;  %v262_v29 = vld [vmem:[%s2814_s18 + $0xc0] sm:$0xff]  ;;  %v261_v33 = vld [vmem:[%s2814_s18 + $0xb8] sm:$0xff] }
  0x1f   : > { %235 = vst.msk [vmem:[#allocation2 + $0x198] sm:$0xff] %vm182_vm0, %v2705_v0  ;;  %236 = vst.msk [vmem:[#allocation2 + $0x1a0] sm:$0xff] %vm182_vm0, %v2705_v0  ;;  %v264_v34 = vld [vmem:[%s2814_s18 + $0xd0] sm:$0xff]  ;;  %v263_v35 = vld [vmem:[%s2814_s18 + $0xc8] sm:$0xff] }
  0x20   : > { %186 = vst.msk [vmem:[#allocation2 + $0x10] sm:$0x3] %vm185_vm1, %v2705_v0  ;;  %189 = vst.msk [vmem:[#allocation2 + $0x28] sm:$0x3] %vm185_vm1, %v2705_v0  ;;  %v266_v36 = vld [vmem:[%s2814_s18 + $0xe0] sm:$0xff]  ;;  %v265_v37 = vld [vmem:[%s2814_s18 + $0xd8] sm:$0xff] }
  0x21   : > { %192 = vst.msk [vmem:[#allocation2 + $0x40] sm:$0x3] %vm185_vm1, %v2705_v0  ;;  %195 = vst.msk [vmem:[#allocation2 + $0x58] sm:$0x3] %vm185_vm1, %v2705_v0  ;;  %v267_v39 = vld [vmem:[%s2814_s18 + $0xe8] sm:$0xff] }
  0x22   : > { %198 = vst.msk [vmem:[#allocation2 + $0x70] sm:$0x3] %vm185_vm1, %v2705_v0  ;;  %201 = vst.msk [vmem:[#allocation2 + $0x88] sm:$0x3] %vm185_vm1, %v2705_v0  ;;  %v367_v62 = vld [vmem:[#allocation2 + $0x2] sm:$0xff] }
  0x23   : > { %204 = vst.msk [vmem:[#allocation2 + $0xa0] sm:$0x3] %vm185_vm1, %v2705_v0  ;;  %207 = vst.msk [vmem:[#allocation2 + $0xb8] sm:$0x3] %vm185_vm1, %v2705_v0 }
  0x24   : > { %210 = vst.msk [vmem:[#allocation2 + $0xd0] sm:$0x3] %vm185_vm1, %v2705_v0  ;;  %213 = vst.msk [vmem:[#allocation2 + $0xe8] sm:$0x3] %vm185_vm1, %v2705_v0 }
  0x25   : > { %216 = vst.msk [vmem:[#allocation2 + $0x100] sm:$0x3] %vm185_vm1, %v2705_v0  ;;  %219 = vst.msk [vmem:[#allocation2 + $0x118] sm:$0x3] %vm185_vm1, %v2705_v0 }
  0x26   : > { %222 = vst.msk [vmem:[#allocation2 + $0x130] sm:$0x3] %vm185_vm1, %v2705_v0  ;;  %225 = vst.msk [vmem:[#allocation2 + $0x148] sm:$0x3] %vm185_vm1, %v2705_v0 }
  0x27   : > { %228 = vst.msk [vmem:[#allocation2 + $0x160] sm:$0x3] %vm185_vm1, %v2705_v0  ;;  %231 = vst.msk [vmem:[#allocation2 + $0x178] sm:$0x3] %vm185_vm1, %v2705_v0  ;;  %v336_v8 = vld [vmem:[#allocation2 + $0x9] sm:$0xff] }
  0x28   : > { %234 = vst.msk [vmem:[#allocation2 + $0x190] sm:$0x3] %vm185_vm1, %v2705_v0  ;;  %237 = vst.msk [vmem:[#allocation2 + $0x1a8] sm:$0x3] %vm185_vm1, %v2705_v0  ;;  %626 = vrot.lane.b32.xlu0 %v336_v8, %s2706_s19 }
  0x29   : > { %271 = vst.msk [vmem:[#allocation2 + $0x19] sm:$0xff] %vm182_vm0, %v238_v1  ;;  %273 = vst.msk [vmem:[#allocation2 + $0x31] sm:$0xff] %vm182_vm0, %v240_v2  ;;  %v368_v1 = vld [vmem:[#allocation2 + $0xa] sm:$0xff] }
  0x2a   : > { %272 = vst.msk [vmem:[#allocation2 + $0x21] sm:$0xff] %vm182_vm0, %v239_v3  ;;  %275 = vst.msk [vmem:[#allocation2 + $0x49] sm:$0xff] %vm182_vm0, %v242_v4 }
  0x2b   : > { %274 = vst.msk [vmem:[#allocation2 + $0x39] sm:$0xff] %vm182_vm0, %v241_v5  ;;  %277 = vst.msk [vmem:[#allocation2 + $0x61] sm:$0xff] %vm182_vm0, %v244_v6 }
  0x2c   : > { %276 = vst.msk [vmem:[#allocation2 + $0x51] sm:$0xff] %vm182_vm0, %v243_v9  ;;  %279 = vst.msk [vmem:[#allocation2 + $0x79] sm:$0xff] %vm182_vm0, %v246_v10 }
  0x2d   : > { %278 = vst.msk [vmem:[#allocation2 + $0x69] sm:$0xff] %vm182_vm0, %v245_v11  ;;  %281 = vst.msk [vmem:[#allocation2 + $0x91] sm:$0xff] %vm182_vm0, %v248_v12 }
  0x2e   : > { %280 = vst.msk [vmem:[#allocation2 + $0x81] sm:$0xff] %vm182_vm0, %v247_v13  ;;  %283 = vst.msk [vmem:[#allocation2 + $0xa9] sm:$0xff] %vm182_vm0, %v250_v14 }
  0x2f   : > { %282 = vst.msk [vmem:[#allocation2 + $0x99] sm:$0xff] %vm182_vm0, %v249_v15  ;;  %285 = vst.msk [vmem:[#allocation2 + $0xc1] sm:$0xff] %vm182_vm0, %v252_v16 }
  0x30   : > { %284 = vst.msk [vmem:[#allocation2 + $0xb1] sm:$0xff] %vm182_vm0, %v251_v17  ;;  %287 = vst.msk [vmem:[#allocation2 + $0xd9] sm:$0xff] %vm182_vm0, %v254_v18  ;;  %v2859_v25 = vld [vmem:[#allocation2 + $0x19] sm:$0xff]  ;;  %v2861_v26 = vld [vmem:[#allocation2 + $0x31] sm:$0xff] }
  0x31   : > { %286 = vst.msk [vmem:[#allocation2 + $0xc9] sm:$0xff] %vm182_vm0, %v253_v19  ;;  %289 = vst.msk [vmem:[#allocation2 + $0xf1] sm:$0xff] %vm182_vm0, %v256_v20  ;;  %628 = vrot.lane.b32.xlu1 %v2859_v25, %s2706_s19  ;;  %v2868_v27 = vld [vmem:[#allocation2 + $0x21] sm:$0xff]  ;;  %632 = vrot.lane.b32.xlu0 %v2861_v26, %s2706_s19  ;;  %v2876_v30 = vld [vmem:[#allocation2 + $0x49] sm:$0xff] }
  0x32   : > { %288 = vst.msk [vmem:[#allocation2 + $0xe1] sm:$0xff] %vm182_vm0, %v255_v21  ;;  %291 = vst.msk [vmem:[#allocation2 + $0x109] sm:$0xff] %vm182_vm0, %v258_v22  ;;  %v2880_v31 = vld [vmem:[#allocation2 + $0x39] sm:$0xff]  ;;  %v2884_v32 = vld [vmem:[#allocation2 + $0x61] sm:$0xff] }
  0x33   : > { %290 = vst.msk [vmem:[#allocation2 + $0xf9] sm:$0xff] %vm182_vm0, %v257_v23  ;;  %293 = vst.msk [vmem:[#allocation2 + $0x121] sm:$0xff] %vm182_vm0, %v260_v24  ;;  %v2896_v38 = vld [vmem:[#allocation2 + $0x51] sm:$0xff]  ;;  %v2904_v40 = vld [vmem:[#allocation2 + $0x79] sm:$0xff] }
  0x34   : > { %292 = vst.msk [vmem:[#allocation2 + $0x111] sm:$0xff] %vm182_vm0, %v259_v28  ;;  %295 = vst.msk [vmem:[#allocation2 + $0x139] sm:$0xff] %vm182_vm0, %v262_v29  ;;  %v2908_v41 = vld [vmem:[#allocation2 + $0x69] sm:$0xff]  ;;  %v2912_v42 = vld [vmem:[#allocation2 + $0x91] sm:$0xff] }
  0x35   : > { %630 = vrot.lane.b32.xlu1 %v2868_v27, %s2706_s19  ;;  %636 = vrot.lane.b32.xlu0 %v2876_v30, %s2706_s19  ;;  %294 = vst.msk [vmem:[#allocation2 + $0x129] sm:$0xff] %vm182_vm0, %v261_v33  ;;  %297 = vst.msk [vmem:[#allocation2 + $0x151] sm:$0xff] %vm182_vm0, %v264_v34  ;;  %v2916_v43 = vld [vmem:[#allocation2 + $0x81] sm:$0xff]  ;;  %v2920_v44 = vld [vmem:[#allocation2 + $0xa9] sm:$0xff] }
  0x36   : > { %296 = vst.msk [vmem:[#allocation2 + $0x141] sm:$0xff] %vm182_vm0, %v263_v35  ;;  %299 = vst.msk [vmem:[#allocation2 + $0x169] sm:$0xff] %vm182_vm0, %v266_v36  ;;  %v2924_v45 = vld [vmem:[#allocation2 + $0x99] sm:$0xff]  ;;  %v351_v46 = vld [vmem:[#allocation2 + $0xc1] sm:$0xff] }
  0x37   : > { %298 = vst.msk [vmem:[#allocation2 + $0x159] sm:$0xff] %vm182_vm0, %v265_v37  ;;  %300 = vst.msk [vmem:[#allocation2 + $0x171] sm:$0xff] %vm182_vm0, %v267_v39  ;;  %v2930_v47 = vld [vmem:[#allocation2 + $0xb1] sm:$0xff]  ;;  %v353_v48 = vld [vmem:[#allocation2 + $0xd9] sm:$0xff] }
  0x38   : > { %v352_v49 = vld [vmem:[#allocation2 + $0xc9] sm:$0xff]  ;;  %v355_v50 = vld [vmem:[#allocation2 + $0xf1] sm:$0xff]  ;;  %v2950_v0 = vld [vmem:[#allocation2 + $0x1a] sm:$0xff] }
  0x39   : > { %634 = vrot.lane.b32.xlu1 %v2880_v31, %s2706_s19  ;;  %640 = vrot.lane.b32.xlu0 %v2884_v32, %s2706_s19  ;;  %v354_v51 = vld [vmem:[#allocation2 + $0xe1] sm:$0xff]  ;;  %v357_v52 = vld [vmem:[#allocation2 + $0x109] sm:$0xff]  ;;  %v2955_v2 = vld [vmem:[#allocation2 + $0x32] sm:$0xff] }
  0x3a   : > { %v356_v53 = vld [vmem:[#allocation2 + $0xf9] sm:$0xff]  ;;  %v359_v54 = vld [vmem:[#allocation2 + $0x121] sm:$0xff]  ;;  %v2962_v4 = vld [vmem:[#allocation2 + $0x4a] sm:$0xff] }
  0x3b   : > { %v358_v55 = vld [vmem:[#allocation2 + $0x111] sm:$0xff]  ;;  %v361_v56 = vld [vmem:[#allocation2 + $0x139] sm:$0xff]  ;;  %v2958_v3 = vld [vmem:[#allocation2 + $0x22] sm:$0xff] }
  0x3c   : > { %v360_v57 = vld [vmem:[#allocation2 + $0x129] sm:$0xff]  ;;  %v363_v58 = vld [vmem:[#allocation2 + $0x151] sm:$0xff]  ;;  %v2966_v5 = vld [vmem:[#allocation2 + $0x3a] sm:$0xff] }
  0x3d   : > { %638 = vrot.lane.b32.xlu1 %v2896_v38, %s2706_s19  ;;  %644 = vrot.lane.b32.xlu0 %v2904_v40, %s2706_s19  ;;  %v362_v59 = vld [vmem:[#allocation2 + $0x141] sm:$0xff]  ;;  %v365_v60 = vld [vmem:[#allocation2 + $0x169] sm:$0xff]  ;;  %v2974_v7 = vld [vmem:[#allocation2 + $0x52] sm:$0xff] }
  0x3e   : > { %v364_v61 = vld [vmem:[#allocation2 + $0x159] sm:$0xff]  ;;  %v366_v63 = vld [vmem:[#allocation2 + $0x171] sm:$0xff]  ;;  %v2970_v6 = vld [vmem:[#allocation2 + $0x62] sm:$0xff] }
  0x3f   : > { %v2978_v8 = vld [vmem:[#allocation2 + $0x7a] sm:$0xff]  ;;  %v2982_v9 = vld [vmem:[#allocation2 + $0x6a] sm:$0xff]  ;;  %v2986_v10 = vld [vmem:[#allocation2 + $0x92] sm:$0xff] }
  0x40   : > { %v2990_v11 = vld [vmem:[#allocation2 + $0x82] sm:$0xff]  ;;  %v2994_v12 = vld [vmem:[#allocation2 + $0xaa] sm:$0xff]  ;;  %v2998_v13 = vld [vmem:[#allocation2 + $0x9a] sm:$0xff] }
  0x41   : > { %642 = vrot.lane.b32.xlu1 %v2908_v41, %s2706_s19  ;;  %648 = vrot.lane.b32.xlu0 %v2912_v42, %s2706_s19  ;;  %v3002_v14 = vld [vmem:[#allocation2 + $0xc2] sm:$0xff]  ;;  %v3006_v15 = vld [vmem:[#allocation2 + $0xb2] sm:$0xff]  ;;  %v3010_v16 = vld [vmem:[#allocation2 + $0xda] sm:$0xff] }
  0x42   : > { %v3014_v17 = vld [vmem:[#allocation2 + $0xca] sm:$0xff]  ;;  %v387_v18 = vld [vmem:[#allocation2 + $0xf2] sm:$0xff]  ;;  %v3020_v19 = vld [vmem:[#allocation2 + $0xe2] sm:$0xff] }
  0x43   : > { %v389_v20 = vld [vmem:[#allocation2 + $0x10a] sm:$0xff]  ;;  %v388_v21 = vld [vmem:[#allocation2 + $0xfa] sm:$0xff]  ;;  %v391_v22 = vld [vmem:[#allocation2 + $0x122] sm:$0xff] }
  0x44   : > { %v390_v23 = vld [vmem:[#allocation2 + $0x112] sm:$0xff]  ;;  %v393_v24 = vld [vmem:[#allocation2 + $0x13a] sm:$0xff]  ;;  %v392_v29 = vld [vmem:[#allocation2 + $0x12a] sm:$0xff] }
  0x45   : > { %646 = vrot.lane.b32.xlu1 %v2916_v43, %s2706_s19  ;;  %652 = vrot.lane.b32.xlu0 %v2920_v44, %s2706_s19  ;;  %v395_v33 = vld [vmem:[#allocation2 + $0x152] sm:$0xff]  ;;  %v394_v35 = vld [vmem:[#allocation2 + $0x142] sm:$0xff]  ;;  %v397_v37 = vld [vmem:[#allocation2 + $0x16a] sm:$0xff] }
  0x49   : > { %650 = vrot.lane.b32.xlu1 %v2924_v45, %s2706_s19  ;;  %656 = vrot.lane.b32.xlu0 %v351_v46, %s2706_s19  ;;  %v396_v46 = vld [vmem:[#allocation2 + $0x15a] sm:$0xff] }
  0x4d   : > { %654 = vrot.lane.b32.xlu1 %v2930_v47, %s2706_s19  ;;  %660 = vrot.lane.b32.xlu0 %v353_v48, %s2706_s19 }
  0x51   : > { %658 = vrot.lane.b32.xlu1 %v352_v49, %s2706_s19  ;;  %664 = vrot.lane.b32.xlu0 %v355_v50, %s2706_s19  ;;  %v3047_v50 = vld [vmem:[#allocation2 + $0x18] sm:$0xff] }
  0x55   : > { %662 = vrot.lane.b32.xlu1 %v354_v51, %s2706_s19  ;;  %668 = vrot.lane.b32.xlu0 %v357_v52, %s2706_s19  ;;  %v398_v51 = vld [vmem:[#allocation2 + $0x172] sm:$0xff] }
  0x59   : > { %666 = vrot.lane.b32.xlu1 %v356_v53, %s2706_s19  ;;  %672 = vrot.lane.b32.xlu0 %v359_v54, %s2706_s19  ;;  %v3056_v54 = vld [vmem:[#allocation2 + $0x30] sm:$0xff] }
  0x5d   : > { %670 = vrot.lane.b32.xlu1 %v358_v55, %s2706_s19  ;;  %676 = vrot.lane.b32.xlu0 %v361_v56, %s2706_s19  ;;  %v3062_v56 = vld [vmem:[#allocation2 + $0x20] sm:$0xff] }
  0x61   : > { %674 = vrot.lane.b32.xlu1 %v360_v57, %s2706_s19  ;;  %680 = vrot.lane.b32.xlu0 %v363_v58, %s2706_s19  ;;  %v3068_v58 = vld [vmem:[#allocation2 + $0x48] sm:$0xff] }
  0x65   : > { %678 = vrot.lane.b32.xlu1 %v362_v59, %s2706_s19  ;;  %684 = vrot.lane.b32.xlu0 %v365_v60, %s2706_s19  ;;  %v3074_v60 = vld [vmem:[#allocation2 + $0x38] sm:$0xff] }
  0x69   : > { %682 = vrot.lane.b32.xlu1 %v364_v61, %s2706_s19  ;;  %752 = vrot.lane.b32.xlu0 %v367_v62, %s2707_s20  ;;  %v3080_v62 = vld [vmem:[#allocation2 + $0x60] sm:$0xff] }
  0x6d   : > { %686 = vrot.lane.b32.xlu1 %v366_v63, %s2706_s19  ;;  %756 = vrot.lane.b32.xlu0 %v2950_v0, %s2707_s20 }
  0x71   : > { %754 = vrot.lane.b32.xlu1 %v368_v1, %s2707_s20  ;;  %760 = vrot.lane.b32.xlu0 %v2955_v2, %s2707_s20  ;;  %v3086_v1 = vld [vmem:[#allocation2 + $0x50] sm:$0xff] }
  0x75   : > { %758 = vrot.lane.b32.xlu1 %v2958_v3, %s2707_s20  ;;  %764 = vrot.lane.b32.xlu0 %v2962_v4, %s2707_s20 }
  0x79   : > { %762 = vrot.lane.b32.xlu1 %v2966_v5, %s2707_s20  ;;  %768 = vrot.lane.b32.xlu0 %v2970_v6, %s2707_s20 }
  0x7d   : > { %766 = vrot.lane.b32.xlu1 %v2974_v7, %s2707_s20  ;;  %772 = vrot.lane.b32.xlu0 %v2978_v8, %s2707_s20 }
  0x81   : > { %770 = vrot.lane.b32.xlu1 %v2982_v9, %s2707_s20  ;;  %776 = vrot.lane.b32.xlu0 %v2986_v10, %s2707_s20 }
  0x85   : > { %774 = vrot.lane.b32.xlu1 %v2990_v11, %s2707_s20  ;;  %780 = vrot.lane.b32.xlu0 %v2994_v12, %s2707_s20 }
  0x88   : > { %v3028_v28 = vpop.permute.xlu0 %624 }
  0x89   : > { %778 = vrot.lane.b32.xlu1 %v2998_v13, %s2707_s20  ;;  %784 = vrot.lane.b32.xlu0 %v3002_v14, %s2707_s20 }
  0x8d   : > { %782 = vrot.lane.b32.xlu1 %v3006_v15, %s2707_s20  ;;  %788 = vrot.lane.b32.xlu0 %v3010_v16, %s2707_s20 }
  0x91   : > { %786 = vrot.lane.b32.xlu1 %v3014_v17, %s2707_s20  ;;  %792 = vrot.lane.b32.xlu0 %v387_v18, %s2707_s20 }
  0x95   : > { %790 = vrot.lane.b32.xlu1 %v3020_v19, %s2707_s20  ;;  %796 = vrot.lane.b32.xlu0 %v389_v20, %s2707_s20  ;;  %v3092_v20 = vld [vmem:[#allocation2 + $0x78] sm:$0xff] }
  0x99   : > { %794 = vrot.lane.b32.xlu1 %v388_v21, %s2707_s20  ;;  %800 = vrot.lane.b32.xlu0 %v391_v22, %s2707_s20  ;;  %v3098_v22 = vld [vmem:[#allocation2 + $0x68] sm:$0xff] }
  0x9a   : > { %v3032_v34 = vpop.permute.xlu0 %626 }
  0x9d   : > { %798 = vrot.lane.b32.xlu1 %v390_v23, %s2707_s20  ;;  %804 = vrot.lane.b32.xlu0 %v393_v24, %s2707_s20  ;;  %v3104_v24 = vld [vmem:[#allocation2 + $0x90] sm:$0xff] }
  0x9e   : > { %4125 = vst [vmem:[#allocation8_spill] sm:$0xff] %v3104_v24 }
  0xa1   : > { %802 = vrot.lane.b32.xlu1 %v392_v29, %s2707_s20  ;;  %808 = vrot.lane.b32.xlu0 %v395_v33, %s2707_s20  ;;  %v1879_v29 = vld [vmem:[%s4112_s1] sm:$0xff]  ;;  %v1880_v33 = vld [vmem:[%s4112_s1 + $0x8] sm:$0xff] }
  0xa3   : > { %v3036_v36 = vpop.permute.xlu1 %628  ;;  %v3038_v39 = vpop.permute.xlu0 %632 }
  0xa5   : > { %806 = vrot.lane.b32.xlu1 %v394_v35, %s2707_s20  ;;  %812 = vrot.lane.b32.xlu0 %v397_v37, %s2707_s20  ;;  %v2654_v37 = vpack.c.bf16 %v1880_v33, %v1879_v29 }
  0xa7   : > { %v3042_v48 = vpop.permute.xlu1 %630  ;;  %v3044_v49 = vpop.permute.xlu0 %636  ;;  %2655 = vmatprep.subr.bf16.mxu0 %v2654_v37  ;;  %2670 = vmatprep.subr.bf16.mxu1 %v2654_v37 }
  0xa8   : > { %2657 = vmatpush3.bf16.msra.mxu0 %v2654_v37  ;;  %2675 = vmatpush3.bf16.msra.mxu1 %v2654_v37  ;;  %v3150_v37 = vld [vmem:[#allocation2 + $0xb0] sm:$0xff] }
  0xa9   : > { %810 = vrot.lane.b32.xlu1 %v396_v46, %s2707_s20  ;;  %880 = vrot.lane.b32.xlu0 %v3047_v50, %s2708_s21  ;;  %v3116_v46 = vld [vmem:[#allocation2 + $0x80] sm:$0xff]  ;;  %4133 = vst [vmem:[#allocation16_spill] sm:$0xff] %v3150_v37 }
  0xab   : > { %v3051_v52 = vpop.permute.xlu1 %634  ;;  %v3053_v53 = vpop.permute.xlu0 %640 }
  0xad   : > { %814 = vrot.lane.b32.xlu1 %v398_v51, %s2707_s20  ;;  %884 = vrot.lane.b32.xlu0 %v3056_v54, %s2708_s21  ;;  %s2712_s20 = smov 56  }
  0xaf   : > { %v3060_v55 = vpop.permute.xlu1 %638  ;;  %v3064_v57 = vpop.permute.xlu0 %644 }
  0xb1   : > { %882 = vrot.lane.b32.xlu1 %v3062_v56, %s2708_s21  ;;  %888 = vrot.lane.b32.xlu0 %v3068_v58, %s2708_s21 }
  0xb3   : > { %v3072_v59 = vpop.permute.xlu1 %642  ;;  %v3076_v61 = vpop.permute.xlu0 %648 }
  0xb4   : > { %4120 = vst [vmem:[#allocation3_spill] sm:$0xff] %v3076_v61  ;;  %v1883_v61 = vld [vmem:[%s4112_s1 + $0x20] sm:$0xff] }
  0xb5   : > { %886 = vrot.lane.b32.xlu1 %v3074_v60, %s2708_s21  ;;  %892 = vrot.lane.b32.xlu0 %v3080_v62, %s2708_s21 }
  0xb7   : > { %v3084_v63 = vpop.permute.xlu1 %646  ;;  %v3088_v18 = vpop.permute.xlu0 %652 }
  0xb8   : > { %4121 = vst [vmem:[#allocation4_spill] sm:$0xff] %v3084_v63  ;;  %4122 = vst [vmem:[#allocation5_spill] sm:$0xff] %v3088_v18  ;;  %v1881_v18 = vld [vmem:[%s4112_s1 + $0x10] sm:$0xff]  ;;  %v1884_v63 = vld [vmem:[%s4112_s1 + $0x28] sm:$0xff] }
  0xb9   : > { %890 = vrot.lane.b32.xlu1 %v3086_v1, %s2708_s21  ;;  %896 = vrot.lane.b32.xlu0 %v3092_v20, %s2708_s21 }
  0xbb   : > { %v3096_v21 = vpop.permute.xlu1 %650  ;;  %v3100_v23 = vpop.permute.xlu0 %656 }
  0xbc   : > { %4123 = vst [vmem:[#allocation6_spill] sm:$0xff] %v3096_v21  ;;  %4124 = vst [vmem:[#allocation7_spill] sm:$0xff] %v3100_v23  ;;  %v3122_v23 = vld [vmem:[#allocation2 + $0xa8] sm:$0xff] }
  0xbd   : > { %894 = vrot.lane.b32.xlu1 %v3098_v22, %s2708_s21  ;;  %900 = vrot.lane.b32.xlu0 %v3104_v24, %s2708_s21  ;;  %4128 = vst [vmem:[#allocation11_spill] sm:$0xff] %v3122_v23 }
  0xbf   : > { %v3114_v35 = vpop.permute.xlu1 %654  ;;  %v3118_v51 = vpop.permute.xlu0 %660 }
  0xc0   : > { %4126 = vst [vmem:[#allocation9_spill] sm:$0xff] %v3114_v35  ;;  %4127 = vst [vmem:[#allocation10_spill] sm:$0xff] %v3118_v51  ;;  %v1882_v35 = vld [vmem:[%s4112_s1 + $0x18] sm:$0xff] }
  0xc1   : > { %898 = vrot.lane.b32.xlu1 %v3116_v46, %s2708_s21  ;;  %904 = vrot.lane.b32.xlu0 %v3122_v23, %s2708_s21  ;;  %v2658_v33 = vpack.c.bf16 %v1882_v35, %v1881_v18  ;;  %v3134_v51 = vld [vmem:[#allocation2 + $0x98] sm:$0xff]  ;;  %v2662_v35 = vpack.c.bf16 %v1884_v63, %v1883_v61 }
  0xc2   : > { %4130 = vst [vmem:[#allocation13_spill] sm:$0xff] %v3134_v51 }
  0xc3   : > { %v3132_v29 = vpop.permute.xlu1 %658  ;;  %v3136_v21 = vpop.permute.xlu0 %664  ;;  %2659 = vmatprep.subr.bf16.mxu0 %v2658_v33  ;;  %2671 = vmatprep.subr.bf16.mxu1 %v2658_v33 }
  0xc4   : > { %4129 = vst [vmem:[#allocation12_spill] sm:$0xff] %v3132_v29  ;;  %4131 = vst [vmem:[#allocation14_spill] sm:$0xff] %v3136_v21  ;;  %2661 = vmatpush3.bf16.msra.mxu0 %v2658_v33  ;;  %2676 = vmatpush3.bf16.msra.mxu1 %v2658_v33  ;;  %v1885_v29 = vld [vmem:[%s4112_s1 + $0x30] sm:$0xff] }
  0xc5   : > { %902 = vrot.lane.b32.xlu1 %v3134_v51, %s2708_s21  ;;  %1008 = vrot.lane.b32.xlu0 %v2859_v25, %s2709_s7  ;;  %v1886_v25 = vld [vmem:[%s4112_s1 + $0x38] sm:$0xff] }
  0xc6   : > { %2663 = vmatprep.subr.bf16.mxu0 %v2662_v35  ;;  %2672 = vmatprep.subr.bf16.mxu1 %v2662_v35  ;;  %v2666_v63 = vpack.c.bf16 %v1886_v25, %v1885_v29 }
  0xc7   : > { %v3148_v18 = vpop.permute.xlu1 %662  ;;  %v3152_v21 = vpop.permute.xlu0 %668 }
  0xc8   : > { %4132 = vst [vmem:[#allocation15_spill] sm:$0xff] %v3148_v18  ;;  %4134 = vst [vmem:[#allocation17_spill] sm:$0xff] %v3152_v21  ;;  %2665 = vmatpush3.bf16.msra.mxu0 %v2662_v35  ;;  %2677 = vmatpush3.bf16.msra.mxu1 %v2662_v35 }
  0xc9   : > { %906 = vrot.lane.b32.xlu1 %v3150_v37, %s2708_s21  ;;  %1136 = vrot.lane.b32.xlu0 %v2950_v0, %s2710_s14  ;;  %v1887_v0 = vld [vmem:[%s4112_s1 + $0x40] sm:$0xff] }
  0xca   : > { %2667 = vmatprep.subr.bf16.mxu0 %v2666_v63  ;;  %2673 = vmatprep.subr.bf16.mxu1 %v2666_v63 }
  0xcb   : > { %v3164_v61 = vpop.permute.xlu1 %666  ;;  %v3166_v33 = vpop.permute.xlu0 %672 }
  0xcc   : > { %4135 = vst [vmem:[#allocation18_spill] sm:$0xff] %v3164_v61  ;;  %4136 = vst [vmem:[#allocation19_spill] sm:$0xff] %v3166_v33  ;;  %2669 = vmatpush3.bf16.msra.mxu0 %v2666_v63  ;;  %2678 = vmatpush3.bf16.msra.mxu1 %v2666_v63 }
  0xcd   : > { %1010 = vrot.lane.b32.xlu1 %v2868_v27, %s2709_s7  ;;  %1264 = vrot.lane.b32.xlu0 %v3056_v54, %s2711_s16 }
  0xce   : > { %2604 = vmatprep.subr.mxu0 %v1887_v0  ;;  %2674 = vmatprep.subr.mxu1 %v1887_v0 }
  0xcf   : > { %v3172_v21 = vpop.permute.xlu1 %670  ;;  %v3177_v29 = vpop.permute.xlu0 %676 }
  0xd0   : > { %4137 = vst [vmem:[#allocation20_spill] sm:$0xff] %v3172_v21  ;;  %4138 = vst [vmem:[#allocation21_spill] sm:$0xff] %v3177_v29  ;;  %2605 = vmatpush3.msra.mxu0 %v1887_v0  ;;  %2679 = vmatpush3.msra.mxu1 %v1887_v0 }
  0xd1   : > { %1138 = vrot.lane.b32.xlu1 %v2958_v3, %s2710_s14  ;;  %1392 = vrot.lane.b32.xlu0 %v2861_v26, %s2712_s20 }
  0xd3   : > { %v3183_v27 = vpop.permute.xlu1 %674  ;;  %v3185_v35 = vpop.permute.xlu0 %680 }
  0xd4   : > { %4139 = vst [vmem:[#allocation22_spill] sm:$0xff] %v3183_v27  ;;  %4140 = vst [vmem:[#allocation23_spill] sm:$0xff] %v3185_v35 }
  0xd5   : > { %1266 = vrot.lane.b32.xlu1 %v3074_v60, %s2711_s16  ;;  %1394 = vrot.lane.b32.xlu0 %v2880_v31, %s2712_s20 }
  0xd7   : > { %v3191_v25 = vpop.permute.xlu1 %678  ;;  %v3193_v63 = vpop.permute.xlu0 %684 }
  0xd8   : > { %4141 = vst [vmem:[#allocation24_spill] sm:$0xff] %v3191_v25  ;;  %4142 = vst [vmem:[#allocation25_spill] sm:$0xff] %v3193_v63 }
  0xd9   : > { %1012 = vrot.lane.b32.xlu1 %v2861_v26, %s2709_s7  ;;  %1014 = vrot.lane.b32.xlu0 %v2880_v31, %s2709_s7 }
  0xdb   : > { %v3199_v3 = vpop.permute.xlu1 %682  ;;  %v3201_v0 = vpop.permute.xlu0 %752 }
  0xdc   : > { %4143 = vst [vmem:[#allocation26_spill] sm:$0xff] %v3199_v3 }
  0xdd   : > { %1520 = vrot.lane.b32.xlu1 %v2955_v2, %s2713_s22  ;;  %1522 = vrot.lane.b32.xlu0 %v2966_v5, %s2713_s22 }
  0xdf   : > { %v3207_v35 = vpop.permute.xlu1 %686  ;;  %v3209_v63 = vpop.permute.xlu0 %756 }
  0xe0   : > { %4144 = vst [vmem:[#allocation27_spill] sm:$0xff] %v3207_v35 }
  0xe1   : > { %1140 = vrot.lane.b32.xlu1 %v2955_v2, %s2710_s14  ;;  %1268 = vrot.lane.b32.xlu0 %v3068_v58, %s2711_s16 }
  0xe3   : > { %v3215_v26 = vpop.permute.xlu1 %754  ;;  %v3217_v31 = vpop.permute.xlu0 %760 }
  0xe5   : > { %1142 = vrot.lane.b32.xlu1 %v2966_v5, %s2710_s14  ;;  %1396 = vrot.lane.b32.xlu0 %v2876_v30, %s2712_s20 }
  0xe7   : > { %v3223_v3 = vpop.permute.xlu1 %758  ;;  %v3225_v35 = vpop.permute.xlu0 %764 }
  0xe9   : > { %1270 = vrot.lane.b32.xlu1 %v3086_v1, %s2711_s16  ;;  %1398 = vrot.lane.b32.xlu0 %v2896_v38, %s2712_s20 }
  0xeb   : > { %v3231_v2 = vpop.permute.xlu1 %762  ;;  %v3233_v25 = vpop.permute.xlu0 %768 }
  0xed   : > { %1016 = vrot.lane.b32.xlu1 %v2876_v30, %s2709_s7  ;;  %1018 = vrot.lane.b32.xlu0 %v2896_v38, %s2709_s7 }
  0xef   : > { %v3239_v5 = vpop.permute.xlu1 %766  ;;  %v3241_v29 = vpop.permute.xlu0 %772 }
  0xf1   : > { %1524 = vrot.lane.b32.xlu1 %v2962_v4, %s2713_s22  ;;  %1526 = vrot.lane.b32.xlu0 %v2974_v7, %s2713_s22 }
  0xf3   : > { %v3247_v27 = vpop.permute.xlu1 %770  ;;  %v3249_v33 = vpop.permute.xlu0 %776 }
  0xf4   : > { %4145 = vst [vmem:[#allocation28_spill] sm:$0xff] %v3249_v33 }
  0xf5   : > { %1144 = vrot.lane.b32.xlu1 %v2962_v4, %s2710_s14  ;;  %1272 = vrot.lane.b32.xlu0 %v3080_v62, %s2711_s16 }
  0xf7   : > { %v3255_v30 = vpop.permute.xlu1 %774  ;;  %v3257_v38 = vpop.permute.xlu0 %780 }
  0xf8   : > { %4146 = vst [vmem:[#allocation29_spill] sm:$0xff] %v3255_v30  ;;  %4147 = vst [vmem:[#allocation30_spill] sm:$0xff] %v3257_v38 }
  0xf9   : > { %1146 = vrot.lane.b32.xlu1 %v2974_v7, %s2710_s14  ;;  %1400 = vrot.lane.b32.xlu0 %v2884_v32, %s2712_s20 }
  0xfb   : > { %v3263_v21 = vpop.permute.xlu1 %778  ;;  %v3265_v61 = vpop.permute.xlu0 %784 }
  0xfc   : > { %4148 = vst [vmem:[#allocation31_spill] sm:$0xff] %v3263_v21  ;;  %4149 = vst [vmem:[#allocation32_spill] sm:$0xff] %v3265_v61 }
  0xfd   : > { %1274 = vrot.lane.b32.xlu1 %v3098_v22, %s2711_s16  ;;  %1402 = vrot.lane.b32.xlu0 %v2908_v41, %s2712_s20 }
  0xff   : > { %v3271_v4 = vpop.permute.xlu1 %782  ;;  %v3273_v18 = vpop.permute.xlu0 %788 }
 0x100   : > { %4150 = vst [vmem:[#allocation33_spill] sm:$0xff] %v3271_v4  ;;  %4151 = vst [vmem:[#allocation34_spill] sm:$0xff] %v3273_v18 }
 0x101   : > { %1020 = vrot.lane.b32.xlu1 %v2884_v32, %s2709_s7  ;;  %1022 = vrot.lane.b32.xlu0 %v2908_v41, %s2709_s7 }
 0x103   : > { %v3279_v7 = vpop.permute.xlu1 %786  ;;  %v3281_v38 = vpop.permute.xlu0 %792 }
 0x104   : > { %4152 = vst [vmem:[#allocation35_spill] sm:$0xff] %v3279_v7  ;;  %4153 = vst [vmem:[#allocation36_spill] sm:$0xff] %v3281_v38 }
 0x105   : > { %1528 = vrot.lane.b32.xlu1 %v2970_v6, %s2713_s22  ;;  %1530 = vrot.lane.b32.xlu0 %v2982_v9, %s2713_s22 }
 0x107   : > { %v3287_v61 = vpop.permute.xlu1 %790  ;;  %v3289_v4 = vpop.permute.xlu0 %796 }
 0x108   : > { %4154 = vst [vmem:[#allocation37_spill] sm:$0xff] %v3287_v61  ;;  %4155 = vst [vmem:[#allocation38_spill] sm:$0xff] %v3289_v4 }
 0x109   : > { %1148 = vrot.lane.b32.xlu1 %v2970_v6, %s2710_s14  ;;  %1276 = vrot.lane.b32.xlu0 %v3092_v20, %s2711_s16 }
 0x10b   : > { %v3295_v32 = vpop.permute.xlu1 %794  ;;  %v3297_v41 = vpop.permute.xlu0 %800 }
 0x10c   : > { %4156 = vst [vmem:[#allocation39_spill] sm:$0xff] %v3295_v32  ;;  %4157 = vst [vmem:[#allocation40_spill] sm:$0xff] %v3297_v41 }
 0x10d   : > { %1150 = vrot.lane.b32.xlu1 %v2982_v9, %s2710_s14  ;;  %1404 = vrot.lane.b32.xlu0 %v2904_v40, %s2712_s20 }
 0x10f   : > { %v3303_v38 = vpop.permute.xlu1 %798  ;;  %v3305_v61 = vpop.permute.xlu0 %804 }
 0x110   : > { %4158 = vst [vmem:[#allocation41_spill] sm:$0xff] %v3303_v38  ;;  %4159 = vst [vmem:[#allocation42_spill] sm:$0xff] %v3305_v61 }
 0x111   : > { %1278 = vrot.lane.b32.xlu1 %v3116_v46, %s2711_s16  ;;  %1406 = vrot.lane.b32.xlu0 %v2916_v43, %s2712_s20 }
 0x113   : > { %v3311_v6 = vpop.permute.xlu1 %802  ;;  %v3313_v4 = vpop.permute.xlu0 %808 }
 0x114   : > { %4160 = vst [vmem:[#allocation43_spill] sm:$0xff] %v3311_v6  ;;  %4161 = vst [vmem:[#allocation44_spill] sm:$0xff] %v3313_v4 }
 0x115   : > { %1024 = vrot.lane.b32.xlu1 %v2904_v40, %s2709_s7  ;;  %1026 = vrot.lane.b32.xlu0 %v2916_v43, %s2709_s7 }
 0x117   : > { %v3319_v9 = vpop.permute.xlu1 %806  ;;  %v3321_v41 = vpop.permute.xlu0 %812 }
 0x118   : > { %4162 = vst [vmem:[#allocation45_spill] sm:$0xff] %v3319_v9  ;;  %4163 = vst [vmem:[#allocation46_spill] sm:$0xff] %v3321_v41 }
 0x119   : > { %1532 = vrot.lane.b32.xlu1 %v2978_v8, %s2713_s22  ;;  %1534 = vrot.lane.b32.xlu0 %v2990_v11, %s2713_s22 }
 0x11b   : > { %v3327_v61 = vpop.permute.xlu1 %810  ;;  %v881_v6 = vpop.permute.xlu0 %880 }
 0x11c   : > { %4164 = vst [vmem:[#allocation47_spill] sm:$0xff] %v3327_v61 }
 0x11d   : > { %1152 = vrot.lane.b32.xlu1 %v2978_v8, %s2710_s14  ;;  %1280 = vrot.lane.b32.xlu0 %v3104_v24, %s2711_s16 }
 0x11f   : > { %v3333_v40 = vpop.permute.xlu1 %814  ;;  %v3335_v43 = vpop.permute.xlu0 %884 }
 0x120   : > { %4165 = vst [vmem:[#allocation48_spill] sm:$0xff] %v3333_v40 }
 0x121   : > { %1154 = vrot.lane.b32.xlu1 %v2990_v11, %s2710_s14  ;;  %1408 = vrot.lane.b32.xlu0 %v2912_v42, %s2712_s20 }
 0x123   : > { %v883_v41 = vpop.permute.xlu1 %882  ;;  %v3341_v4 = vpop.permute.xlu0 %888 }
 0x125   : > { %1282 = vrot.lane.b32.xlu1 %v3134_v51, %s2711_s16  ;;  %1410 = vrot.lane.b32.xlu0 %v2924_v45, %s2712_s20  ;;  %v3397_v51 = vld [vmem:[#allocation2 + $0xc0] sm:$0xff] }
 0x127   : > { %v3347_v8 = vpop.permute.xlu1 %886  ;;  %v3349_v40 = vpop.permute.xlu0 %892 }
 0x129   : > { %1028 = vrot.lane.b32.xlu1 %v2912_v42, %s2709_s7  ;;  %1030 = vrot.lane.b32.xlu0 %v2924_v45, %s2709_s7 }
 0x12b   : > { %v3355_v11 = vpop.permute.xlu1 %890  ;;  %v3357_v61 = vpop.permute.xlu0 %896 }
 0x12d   : > { %1536 = vrot.lane.b32.xlu1 %v2986_v10, %s2713_s22  ;;  %1538 = vrot.lane.b32.xlu0 %v2998_v13, %s2713_s22 }
 0x12f   : > { %v3363_v9 = vpop.permute.xlu1 %894  ;;  %v3365_v38 = vpop.permute.xlu0 %900 }
 0x130   : > { %4166 = vst [vmem:[#allocation49_spill] sm:$0xff] %v3365_v38 }
 0x131   : > { %1156 = vrot.lane.b32.xlu1 %v2986_v10, %s2710_s14  ;;  %1284 = vrot.lane.b32.xlu0 %v3122_v23, %s2711_s16 }
 0x133   : > { %v3371_v42 = vpop.permute.xlu1 %898  ;;  %v3373_v45 = vpop.permute.xlu0 %904 }
 0x134   : > { %4167 = vst [vmem:[#allocation50_spill] sm:$0xff] %v3373_v45  ;;  %v304_v45 = vld [vmem:[#allocation2 + $0x8] sm:$0xff] }
 0x135   : > { %1158 = vrot.lane.b32.xlu1 %v2998_v13, %s2710_s14  ;;  %1412 = vrot.lane.b32.xlu0 %v2920_v44, %s2712_s20  ;;  %v1617_v33 = vsel %vm182_vm0, %v304_v45, %v3032_v34 }
 0x136   : > { %v1650_v30 = vsel %vm1648_vm2, %v1617_v33, %v3215_v26 }
 0x137   : > { %v3379_v32 = vpop.permute.xlu1 %902  ;;  %v1009_v18 = vpop.permute.xlu0 %1008 }
 0x138   : > { %4168 = vst [vmem:[#allocation51_spill] sm:$0xff] %v3379_v32 }
 0x139   : > { %1286 = vrot.lane.b32.xlu1 %v3150_v37, %s2711_s16  ;;  %1414 = vrot.lane.b32.xlu0 %v2930_v47, %s2712_s20 }
 0x13b   : > { %v3385_v10 = vpop.permute.xlu1 %906  ;;  %v1137_v7 = vpop.permute.xlu0 %1136 }
 0x13c   : > { %4169 = vst [vmem:[#allocation52_spill] sm:$0xff] %v3385_v10  ;;  %v303_v10 = vld [vmem:[#allocation2] sm:$0xff] }
 0x13d   : > { %1032 = vrot.lane.b32.xlu1 %v2920_v44, %s2709_s7  ;;  %1034 = vrot.lane.b32.xlu0 %v2930_v47, %s2709_s7  ;;  %v1616_v47 = vsel %vm182_vm0, %v303_v10, %v3028_v28  ;;  %v1683_v28 = vsel %vm1681_vm3, %v1650_v30, %v883_v41 }
 0x13e   : > { %v1649_v32 = vsel %vm1648_vm2, %v1616_v47, %v3201_v0 }
 0x13f   : > { %v1011_v13 = vpop.permute.xlu1 %1010  ;;  %v1265_v23 = vpop.permute.xlu0 %1264  ;;  %v1682_v38 = vsel %vm1681_vm3, %v1649_v32, %v881_v6  ;;  %v540_v32 = vld [vmem:[#allocation2 + $0xc1] sm:$0xff] }
 0x140   : > { %v1716_v45 = vsel %vm1714_vm4, %v1683_v28, %v1011_v13 }
 0x141   : > { %1540 = vrot.lane.b32.xlu1 %v2994_v12, %s2713_s22  ;;  %1542 = vrot.lane.b32.xlu0 %v3006_v15, %s2713_s22 }
 0x143   : > { %v1139_v37 = vpop.permute.xlu1 %1138  ;;  %v1393_v21 = vpop.permute.xlu0 %1392 }
 0x144   : > { %v1749_v10 = vsel %vm1747_vm5, %v1716_v45, %v1139_v37  ;;  %v541_v37 = vld [vmem:[#allocation2 + $0xc9] sm:$0xff]  ;;  %v1619_v45 = vsel %vm182_vm0, %v3062_v56, %v3042_v48 }
 0x145   : > { %1160 = vrot.lane.b32.xlu1 %v2994_v12, %s2710_s14  ;;  %1288 = vrot.lane.b32.xlu0 %v3397_v51, %s2711_s16  ;;  %v3407_v12 = vld [vmem:[#allocation2 + $0xc8] sm:$0xff] }
 0x147   : > { %v1267_v44 = vpop.permute.xlu1 %1266  ;;  %v1395_v24 = vpop.permute.xlu0 %1394 }
 0x148   : > { %v1782_v30 = vsel %vm1780_vm6, %v1749_v10, %v1267_v44 }
 0x149   : > { %1162 = vrot.lane.b32.xlu1 %v3006_v15, %s2710_s14  ;;  %1290 = vrot.lane.b32.xlu0 %v3407_v12, %s2711_s16  ;;  %v1715_v15 = vsel %vm1714_vm4, %v1682_v38, %v1009_v18  ;;  %v1815_v41 = vsel %vm1813_vm7, %v1782_v30, %v1395_v24  ;;  %v1618_v24 = vsel %vm182_vm0, %v3047_v50, %v3036_v36 }
 0x14a   : > { %v1748_v0 = vsel %vm1747_vm5, %v1715_v15, %v1137_v7  ;;  %v1651_v15 = vsel %vm1648_vm2, %v1618_v24, %v3209_v63  ;;  %v1652_v36 = vsel %vm1648_vm2, %v1619_v45, %v3223_v3  ;;  %v3467_v3 = vld [vmem:[#allocation2 + $0xe0] sm:$0xff] }
 0x14b   : > { %v1013_v34 = vpop.permute.xlu1 %1012  ;;  %v1015_v33 = vpop.permute.xlu0 %1014  ;;  %v1781_v26 = vsel %vm1780_vm6, %v1748_v0, %v1265_v23  ;;  %v1684_v0 = vsel %vm1681_vm3, %v1651_v15, %v3335_v43  ;;  %v1685_v63 = vsel %vm1681_vm3, %v1652_v36, %v3347_v8 }
 0x14c   : > { %v1814_v18 = vsel %vm1813_vm7, %v1781_v26, %v1393_v21  ;;  %v3453_v26 = vld [vmem:[#allocation2 + $0xd8] sm:$0xff]  ;;  %v1717_v50 = vsel %vm1714_vm4, %v1684_v0, %v1013_v34  ;;  %v1718_v56 = vsel %vm1714_vm4, %v1685_v63, %v1015_v33 }
 0x14d   : > { %908 = vrot.lane.b32.xlu1 %v3397_v51, %s2708_s21  ;;  %910 = vrot.lane.b32.xlu0 %v3407_v12, %s2708_s21  ;;  %v479_v0 = vld [vmem:[#allocation2 + $0xda] sm:$0xff] }
 0x14f   : > { %v1521_v38 = vpop.permute.xlu1 %1520  ;;  %v1523_v6 = vpop.permute.xlu0 %1522 }
 0x150   : > { %v1847_v7 = vsel %vm1846_vm8, %v1814_v18, %v1521_v38  ;;  %v1848_v23 = vsel %vm1846_vm8, %v1815_v41, %v1523_v6  ;;  %v543_v6 = vld [vmem:[#allocation2 + $0xe1] sm:$0xff] }
 0x151   : > { %1416 = vrot.lane.b32.xlu1 %v540_v32, %s2712_s20  ;;  %2606 = vmatprep.mubr.msk.f32.mxu0 %vm1888_vm9, %v1847_v7 }
 0x152   : > { %1418 = vrot.lane.b32.xlu0 %v541_v37, %s2712_s20  ;;  %2607 = vmatmul.mubr.msk.f32.vlgmr.msra.gmra.mrb[0].mxu0 %vm1888_vm9, %v1848_v23 }
 0x153   : > { %v1141_v21 = vpop.permute.xlu1 %1140  ;;  %v1269_v13 = vpop.permute.xlu0 %1268 }
 0x154   : > { %v1750_v30 = vsel %vm1747_vm5, %v1717_v50, %v1141_v21 }
 0x155   : > { %1036 = vrot.lane.b32.xlu1 %v540_v32, %s2709_s7  ;;  %v1783_v34 = vsel %vm1780_vm6, %v1750_v30, %v1269_v13 }
 0x156   : > { %1038 = vrot.lane.b32.xlu0 %v541_v37, %s2709_s7  ;;  %v542_v37 = vld [vmem:[#allocation2 + $0xd9] sm:$0xff] }
 0x157   : > { %v1143_v44 = vpop.permute.xlu1 %1142  ;;  %v1397_v47 = vpop.permute.xlu0 %1396 }
 0x158   : > { %v1816_v32 = vsel %vm1813_vm7, %v1783_v34, %v1397_v47 }
 0x159   : > { %1544 = vrot.lane.b32.xlu1 %v3002_v14, %s2713_s22 }
 0x15a   : > { %1546 = vrot.lane.b32.xlu0 %v3014_v17, %s2713_s22 }
 0x15b   : > { %v1271_v28 = vpop.permute.xlu1 %1270  ;;  %v1399_v10 = vpop.permute.xlu0 %1398 }
 0x15d   : > { %1164 = vrot.lane.b32.xlu1 %v3002_v14, %s2710_s14  ;;  %v1751_v14 = vsel %vm1747_vm5, %v1718_v56, %v1143_v44  ;;  %v1620_v44 = vsel %vm182_vm0, %v3056_v54, %v3038_v39 }
 0x15e   : > { %1292 = vrot.lane.b32.xlu0 %v3453_v26, %s2711_s16  ;;  %v1784_v8 = vsel %vm1780_vm6, %v1751_v14, %v1271_v28  ;;  %v1653_v24 = vsel %vm1648_vm2, %v1620_v44, %v3217_v31  ;;  %v1621_v28 = vsel %vm182_vm0, %v3074_v60, %v3051_v52  ;;  %v3521_v14 = vld [vmem:[#allocation2 + $0xf8] sm:$0xff] }
 0x15f   : > { %v1017_v48 = vpop.permute.xlu1 %1016  ;;  %v1019_v43 = vpop.permute.xlu0 %1018  ;;  %v1817_v38 = vsel %vm1813_vm7, %v1784_v8, %v1399_v10  ;;  %v1686_v15 = vsel %vm1681_vm3, %v1653_v24, %v3341_v4  ;;  %v1654_v39 = vsel %vm1648_vm2, %v1621_v28, %v3231_v2  ;;  %v3510_v2 = vld [vmem:[#allocation2 + $0xf0] sm:$0xff] }
 0x160   : > { %v1719_v54 = vsel %vm1714_vm4, %v1686_v15, %v1017_v48  ;;  %v1687_v31 = vsel %vm1681_vm3, %v1654_v39, %v3355_v11  ;;  %v480_v11 = vld [vmem:[#allocation2 + $0xe2] sm:$0xff]  ;;  %v576_v44 = vld [vmem:[#allocation2 + $0xf2] sm:$0xff] }
 0x161   : > { %1166 = vrot.lane.b32.xlu1 %v3014_v17, %s2710_s14  ;;  %v1720_v60 = vsel %vm1714_vm4, %v1687_v31, %v1019_v43  ;;  %v3566_v31 = vld [vmem:[#allocation2 + $0x108] sm:$0xff] }
 0x162   : > { %1294 = vrot.lane.b32.xlu0 %v3467_v3, %s2711_s16 }
 0x163   : > { %v1525_v18 = vpop.permute.xlu1 %1524  ;;  %v1527_v7 = vpop.permute.xlu0 %1526 }
 0x164   : > { %v1849_v33 = vsel %vm1846_vm8, %v1816_v32, %v1525_v18  ;;  %v1850_v17 = vsel %vm1846_vm8, %v1817_v38, %v1527_v7  ;;  %v544_v32 = vld [vmem:[#allocation2 + $0xf1] sm:$0xff]  ;;  %v545_v38 = vld [vmem:[#allocation2 + $0xf9] sm:$0xff] }
 0x165   : > { %912 = vrot.lane.b32.xlu1 %v3453_v26, %s2708_s21  ;;  %2609 = vmatprep.mubr.msk.f32.mxu0 %vm1888_vm9, %v1849_v33  ;;  %v268_v18 = vld [vmem:[%s2814_s18 + $0xf0] sm:$0xff] }
 0x166   : > { %914 = vrot.lane.b32.xlu0 %v3467_v3, %s2708_s21  ;;  %2610 = vmatmul.mubr.msk.f32.gmra.mrb[2].mxu0 %vm1888_vm9, %v1850_v17  ;;  %301 = vst.msk [vmem:[#allocation2 + $0x181] sm:$0xff] %vm182_vm0, %v268_v18  ;;  %v269_v17 = vld [vmem:[%s2814_s18 + $0xf8] sm:$0xff]  ;;  %v578_v18 = vld [vmem:[#allocation2 + $0x10a] sm:$0xff] }
 0x167   : > { %v1145_v41 = vpop.permute.xlu1 %1144  ;;  %v1273_v23 = vpop.permute.xlu0 %1272  ;;  %302 = vst.msk [vmem:[#allocation2 + $0x189] sm:$0xff] %vm182_vm0, %v269_v17 }
 0x168   : > { %v1752_v10 = vsel %vm1747_vm5, %v1719_v54, %v1145_v41 }
 0x169   : > { %1420 = vrot.lane.b32.xlu1 %v542_v37, %s2712_s20  ;;  %v1785_v36 = vsel %vm1780_vm6, %v1752_v10, %v1273_v23  ;;  %v1623_v23 = vsel %vm182_vm0, %v3086_v1, %v3060_v55 }
 0x16a   : > { %1422 = vrot.lane.b32.xlu0 %v543_v6, %s2712_s20 }
 0x16b   : > { %v1147_v21 = vpop.permute.xlu1 %1146  ;;  %v1401_v13 = vpop.permute.xlu0 %1400 }
 0x16c   : > { %v1753_v4 = vsel %vm1747_vm5, %v1720_v60, %v1147_v21  ;;  %v1818_v63 = vsel %vm1813_vm7, %v1785_v36, %v1401_v13 }
 0x16d   : > { %1040 = vrot.lane.b32.xlu1 %v542_v37, %s2709_s7  ;;  %v1622_v37 = vsel %vm182_vm0, %v3068_v58, %v3044_v49  ;;  %v1656_v49 = vsel %vm1648_vm2, %v1623_v23, %v3239_v5 }
 0x16e   : > { %1042 = vrot.lane.b32.xlu0 %v543_v6, %s2709_s7  ;;  %v1655_v6 = vsel %vm1648_vm2, %v1622_v37, %v3225_v35 }
 0x16f   : > { %v1275_v47 = vpop.permute.xlu1 %1274  ;;  %v1403_v45 = vpop.permute.xlu0 %1402  ;;  %v1688_v21 = vsel %vm1681_vm3, %v1655_v6, %v3349_v40  ;;  %v577_v40 = vld [vmem:[#allocation2 + $0xfa] sm:$0xff] }
 0x170   : > { %v1786_v50 = vsel %vm1780_vm6, %v1753_v4, %v1275_v47  ;;  %v1689_v47 = vsel %vm1681_vm3, %v1656_v49, %v3363_v9  ;;  %v3573_v4 = vld [vmem:[#allocation2 + $0x110] sm:$0xff] }
 0x171   : > { %1548 = vrot.lane.b32.xlu1 %v3010_v16, %s2713_s22  ;;  %v1819_v48 = vsel %vm1813_vm7, %v1786_v50, %v1403_v45  ;;  %v546_v50 = vld [vmem:[#allocation2 + $0x109] sm:$0xff] }
 0x172   : > { %1550 = vrot.lane.b32.xlu0 %v3020_v19, %s2713_s22 }
 0x173   : > { %v1021_v52 = vpop.permute.xlu1 %1020  ;;  %v1023_v16 = vpop.permute.xlu0 %1022 }
 0x174   : > { %v1721_v58 = vsel %vm1714_vm4, %v1688_v21, %v1021_v52  ;;  %v1722_v1 = vsel %vm1714_vm4, %v1689_v47, %v1023_v16  ;;  %v3614_v21 = vld [vmem:[#allocation2 + $0x120] sm:$0xff] }
 0x175   : > { %1168 = vrot.lane.b32.xlu1 %v479_v0, %s2710_s14 }
 0x176   : > { %1296 = vrot.lane.b32.xlu0 %v3510_v2, %s2711_s16 }
 0x177   : > { %v1529_v19 = vpop.permute.xlu1 %1528  ;;  %v1531_v56 = vpop.permute.xlu0 %1530 }
 0x178   : > { %v1851_v30 = vsel %vm1846_vm8, %v1818_v63, %v1529_v19  ;;  %v1852_v43 = vsel %vm1846_vm8, %v1819_v48, %v1531_v56  ;;  %v1625_v48 = vsel %vm182_vm0, %v3098_v22, %v3072_v59 }
 0x179   : > { %1170 = vrot.lane.b32.xlu1 %v480_v11, %s2710_s14  ;;  %2612 = vmatprep.mubr.msk.f32.mxu0 %vm1888_vm9, %v1851_v30  ;;  %v1624_v11 = vsel %vm182_vm0, %v3080_v62, %v3053_v53  ;;  %v547_v30 = vld [vmem:[#allocation2 + $0x111] sm:$0xff]  ;;  %v1658_v53 = vsel %vm1648_vm2, %v1625_v48, %v3247_v27 }
 0x17a   : > { %1298 = vrot.lane.b32.xlu0 %v3521_v14, %s2711_s16  ;;  %2613 = vmatmul.mubr.msk.f32.gmra.mrb[4].mxu0 %vm1888_vm9, %v1852_v43  ;;  %v1657_v19 = vsel %vm1648_vm2, %v1624_v11, %v3233_v25 }
 0x17b   : > { %v1149_v34 = vpop.permute.xlu1 %1148  ;;  %v1277_v8 = vpop.permute.xlu0 %1276  ;;  %v1690_v56 = vsel %vm1681_vm3, %v1657_v19, %v3357_v61 }
 0x17c   : > { %v1754_v35 = vsel %vm1747_vm5, %v1721_v58, %v1149_v34  ;;  %v1691_v34 = vsel %vm1681_vm3, %v1658_v53, %v3371_v42  ;;  %v3619_v58 = vld [vmem:[#allocation2 + $0x128] sm:$0xff] }
 0x17d   : > { %916 = vrot.lane.b32.xlu1 %v3510_v2, %s2708_s21  ;;  %v1787_v5 = vsel %vm1780_vm6, %v1754_v35, %v1277_v8 }
 0x17e   : > { %918 = vrot.lane.b32.xlu0 %v3521_v14, %s2708_s21 }
 0x17f   : > { %v1151_v33 = vpop.permute.xlu1 %1150  ;;  %v1405_v7 = vpop.permute.xlu0 %1404 }
 0x180   : > { %v1755_v24 = vsel %vm1747_vm5, %v1722_v1, %v1151_v33  ;;  %v1820_v45 = vsel %vm1813_vm7, %v1787_v5, %v1405_v7  ;;  %v579_v7 = vld [vmem:[#allocation2 + $0x112] sm:$0xff]  ;;  %v4172_v5 = vld [vmem:[#allocation29_spill] sm:$0xff] }
 0x181   : > { %1424 = vrot.lane.b32.xlu1 %v544_v32, %s2712_s20 }
 0x182   : > { %1426 = vrot.lane.b32.xlu0 %v545_v38, %s2712_s20 }
 0x183   : > { %v1279_v41 = vpop.permute.xlu1 %1278  ;;  %v1407_v13 = vpop.permute.xlu0 %1406 }
 0x184   : > { %v1788_v15 = vsel %vm1780_vm6, %v1755_v24, %v1279_v41 }
 0x185   : > { %1044 = vrot.lane.b32.xlu1 %v544_v32, %s2709_s7  ;;  %v1821_v54 = vsel %vm1813_vm7, %v1788_v15, %v1407_v13  ;;  %v548_v15 = vld [vmem:[#allocation2 + $0x121] sm:$0xff] }
 0x186   : > { %1046 = vrot.lane.b32.xlu0 %v545_v38, %s2709_s7 }
 0x187   : > { %v1025_v55 = vpop.permute.xlu1 %1024  ;;  %v1027_v28 = vpop.permute.xlu0 %1026 }
 0x188   : > { %v1723_v62 = vsel %vm1714_vm4, %v1690_v56, %v1025_v55  ;;  %v1724_v59 = vsel %vm1714_vm4, %v1691_v34, %v1027_v28  ;;  %v4170_v55 = vld [vmem:[#allocation4_spill] sm:$0xff]  ;;  %v581_v56 = vld [vmem:[#allocation2 + $0x12a] sm:$0xff] }
 0x189   : > { %1552 = vrot.lane.b32.xlu1 %v576_v44, %s2713_s22  ;;  %v1627_v1 = vsel %vm182_vm0, %v3116_v46, %v4170_v55 }
 0x18a   : > { %1554 = vrot.lane.b32.xlu0 %v577_v40, %s2713_s22 }
 0x18b   : > { %v1533_v9 = vpop.permute.xlu1 %1532  ;;  %v1535_v0 = vpop.permute.xlu0 %1534 }
 0x18c   : > { %v1853_v39 = vsel %vm1846_vm8, %v1820_v45, %v1533_v9  ;;  %v1854_v10 = vsel %vm1846_vm8, %v1821_v54, %v1535_v0  ;;  %v4173_v45 = vld [vmem:[#allocation51_spill] sm:$0xff] }
 0x18d   : > { %1172 = vrot.lane.b32.xlu1 %v576_v44, %s2710_s14  ;;  %2615 = vmatprep.mubr.msk.f32.mxu0 %vm1888_vm9, %v1853_v39  ;;  %v1626_v44 = vsel %vm182_vm0, %v3092_v20, %v3064_v57  ;;  %v1660_v57 = vsel %vm1648_vm2, %v1627_v1, %v4172_v5  ;;  %v549_v54 = vld [vmem:[#allocation2 + $0x129] sm:$0xff] }
 0x18e   : > { %1300 = vrot.lane.b32.xlu0 %v3566_v31, %s2711_s16  ;;  %2616 = vmatmul.mubr.msk.f32.gmra.mrb[6].mxu0 %vm1888_vm9, %v1854_v10  ;;  %v1659_v35 = vsel %vm1648_vm2, %v1626_v44, %v3241_v29  ;;  %v1693_v29 = vsel %vm1681_vm3, %v1660_v57, %v4173_v45  ;;  %v4181_v44 = vld [vmem:[#allocation52_spill] sm:$0xff] }
 0x18f   : > { %v1153_v52 = vpop.permute.xlu1 %1152  ;;  %v1281_v60 = vpop.permute.xlu0 %1280 }
 0x190   : > { %v1756_v25 = vsel %vm1747_vm5, %v1723_v62, %v1153_v52  ;;  %v518_v62 = vld [vmem:[#allocation2 + $0x138] sm:$0xff] }
 0x191   : > { %1174 = vrot.lane.b32.xlu1 %v577_v40, %s2710_s14  ;;  %v1789_v32 = vsel %vm1780_vm6, %v1756_v25, %v1281_v60  ;;  %v4171_v40 = vld [vmem:[#allocation49_spill] sm:$0xff] }
 0x192   : > { %1302 = vrot.lane.b32.xlu0 %v3573_v4, %s2711_s16  ;;  %v1692_v24 = vsel %vm1681_vm3, %v1659_v35, %v4171_v40  ;;  %v551_v40 = vld [vmem:[#allocation2 + $0x141] sm:$0xff] }
 0x193   : > { %v1155_v16 = vpop.permute.xlu1 %1154  ;;  %v1409_v36 = vpop.permute.xlu0 %1408 }
 0x194   : > { %v1757_v22 = vsel %vm1747_vm5, %v1724_v59, %v1155_v16  ;;  %v1822_v33 = vsel %vm1813_vm7, %v1789_v32, %v1409_v36 }
 0x195   : > { %920 = vrot.lane.b32.xlu1 %v3566_v31, %s2708_s21 }
 0x196   : > { %922 = vrot.lane.b32.xlu0 %v3573_v4, %s2708_s21 }
 0x197   : > { %v1283_v63 = vpop.permute.xlu1 %1282  ;;  %v1411_v43 = vpop.permute.xlu0 %1410 }
 0x198   : > { %v1790_v27 = vsel %vm1780_vm6, %v1757_v22, %v1283_v63  ;;  %v4174_v22 = vld [vmem:[#allocation3_spill] sm:$0xff] }
 0x199   : > { %1428 = vrot.lane.b32.xlu1 %v546_v50, %s2712_s20  ;;  %v1823_v17 = vsel %vm1813_vm7, %v1790_v27, %v1411_v43 }
 0x19a   : > { %1430 = vrot.lane.b32.xlu0 %v547_v30, %s2712_s20 }
 0x19b   : > { %v1029_v8 = vpop.permute.xlu1 %1028  ;;  %v1031_v61 = vpop.permute.xlu0 %1030 }
 0x19c   : > { %v1725_v20 = vsel %vm1714_vm4, %v1692_v24, %v1029_v8  ;;  %v1726_v39 = vsel %vm1714_vm4, %v1693_v29, %v1031_v61  ;;  %v519_v8 = vld [vmem:[#allocation2 + $0x140] sm:$0xff]  ;;  %v4175_v61 = vld [vmem:[#allocation8_spill] sm:$0xff] }
 0x19d   : > { %1048 = vrot.lane.b32.xlu1 %v546_v50, %s2709_s7  ;;  %v1628_v32 = vsel %vm182_vm0, %v4175_v61, %v4174_v22  ;;  %v4187_v61 = vld [vmem:[#allocation33_spill] sm:$0xff] }
 0x19e   : > { %1050 = vrot.lane.b32.xlu0 %v547_v30, %s2709_s7  ;;  %v580_v30 = vld [vmem:[#allocation2 + $0x122] sm:$0xff] }
 0x19f   : > { %v1537_v42 = vpop.permute.xlu1 %1536  ;;  %v1539_v37 = vpop.permute.xlu0 %1538 }
 0x1a0   : > { %v1855_v38 = vsel %vm1846_vm8, %v1822_v33, %v1537_v42  ;;  %v1856_v41 = vsel %vm1846_vm8, %v1823_v17, %v1539_v37  ;;  %v4177_v42 = vld [vmem:[#allocation6_spill] sm:$0xff] }
 0x1a1   : > { %1556 = vrot.lane.b32.xlu1 %v578_v18, %s2713_s22  ;;  %2618 = vmatprep.mubr.msk.f32.mxu0 %vm1888_vm9, %v1855_v38  ;;  %v4178_v38 = vld [vmem:[#allocation13_spill] sm:$0xff]  ;;  %v4179_v17 = vld [vmem:[#allocation50_spill] sm:$0xff] }
 0x1a2   : > { %1558 = vrot.lane.b32.xlu0 %v579_v7, %s2713_s22  ;;  %2619 = vmatmul.mubr.msk.f32.gmra.mrb[8].mxu0 %vm1888_vm9, %v1856_v41 }
 0x1a3   : > { %v1157_v6 = vpop.permute.xlu1 %1156  ;;  %v1285_v23 = vpop.permute.xlu0 %1284 }
 0x1a4   : > { %v1758_v9 = vsel %vm1747_vm5, %v1725_v20, %v1157_v6  ;;  %v4180_v6 = vld [vmem:[#allocation31_spill] sm:$0xff] }
 0x1a5   : > { %1176 = vrot.lane.b32.xlu1 %v578_v18, %s2710_s14  ;;  %v1791_v52 = vsel %vm1780_vm6, %v1758_v9, %v1285_v23  ;;  %v4176_v18 = vld [vmem:[#allocation28_spill] sm:$0xff] }
 0x1a6   : > { %1304 = vrot.lane.b32.xlu0 %v3614_v21, %s2711_s16  ;;  %v1661_v33 = vsel %vm1648_vm2, %v1628_v32, %v4176_v18  ;;  %v552_v18 = vld [vmem:[#allocation2 + $0x151] sm:$0xff] }
 0x1a7   : > { %v1159_v13 = vpop.permute.xlu1 %1158  ;;  %v1413_v49 = vpop.permute.xlu0 %1412  ;;  %v1694_v37 = vsel %vm1681_vm3, %v1661_v33, %v4179_v17  ;;  %v553_v17 = vld [vmem:[#allocation2 + $0x159] sm:$0xff] }
 0x1a8   : > { %v1759_v0 = vsel %vm1747_vm5, %v1726_v39, %v1159_v13  ;;  %v1824_v16 = vsel %vm1813_vm7, %v1791_v52, %v1413_v49  ;;  %v550_v49 = vld [vmem:[#allocation2 + $0x139] sm:$0xff] }
 0x1a9   : > { %1178 = vrot.lane.b32.xlu1 %v579_v7, %s2710_s14  ;;  %v1629_v7 = vsel %vm182_vm0, %v4178_v38, %v4177_v42  ;;  %v582_v39 = vld [vmem:[#allocation2 + $0x13a] sm:$0xff] }
 0x1aa   : > { %1306 = vrot.lane.b32.xlu0 %v3619_v58, %s2711_s16  ;;  %v1662_v23 = vsel %vm1648_vm2, %v1629_v7, %v4180_v6 }
 0x1ab   : > { %v1287_v47 = vpop.permute.xlu1 %1286  ;;  %v1415_v28 = vpop.permute.xlu0 %1414 }
 0x1ac   : > { %v1792_v60 = vsel %vm1780_vm6, %v1759_v0, %v1287_v47  ;;  %v1695_v47 = vsel %vm1681_vm3, %v1662_v23, %v4181_v44  ;;  %v583_v0 = vld [vmem:[#allocation2 + $0x142] sm:$0xff] }
 0x1ad   : > { %924 = vrot.lane.b32.xlu1 %v3614_v21, %s2708_s21  ;;  %v1825_v11 = vsel %vm1813_vm7, %v1792_v60, %v1415_v28  ;;  %v520_v60 = vld [vmem:[#allocation2 + $0x150] sm:$0xff] }
 0x1ae   : > { %926 = vrot.lane.b32.xlu0 %v3619_v58, %s2708_s21 }
 0x1af   : > { %v1033_v46 = vpop.permute.xlu1 %1032  ;;  %v1035_v10 = vpop.permute.xlu0 %1034 }
 0x1b0   : > { %v1727_v13 = vsel %vm1714_vm4, %v1694_v37, %v1033_v46  ;;  %v1728_v1 = vsel %vm1714_vm4, %v1695_v47, %v1035_v10 }
 0x1b1   : > { %1432 = vrot.lane.b32.xlu1 %v548_v15, %s2712_s20 }
 0x1b2   : > { %1434 = vrot.lane.b32.xlu0 %v549_v54, %s2712_s20 }
 0x1b3   : > { %v1541_v36 = vpop.permute.xlu1 %1540  ;;  %v1543_v63 = vpop.permute.xlu0 %1542 }
 0x1b4   : > { %v1857_v50 = vsel %vm1846_vm8, %v1824_v16, %v1541_v36  ;;  %v1858_v19 = vsel %vm1846_vm8, %v1825_v11, %v1543_v63  ;;  %v4182_v63 = vld [vmem:[#allocation5_spill] sm:$0xff] }
 0x1b5   : > { %1052 = vrot.lane.b32.xlu1 %v548_v15, %s2709_s7  ;;  %2621 = vmatprep.mubr.msk.f32.mxu0 %vm1888_vm9, %v1857_v50  ;;  %v521_v50 = vld [vmem:[#allocation2 + $0x158] sm:$0xff] }
 0x1b6   : > { %1054 = vrot.lane.b32.xlu0 %v549_v54, %s2709_s7  ;;  %2622 = vmatmul.mubr.msk.f32.gmra.mrb[10].mxu0 %vm1888_vm9, %v1858_v19  ;;  %v4183_v19 = vld [vmem:[#allocation11_spill] sm:$0xff] }
 0x1b7   : > { %v1161_v48 = vpop.permute.xlu1 %1160  ;;  %v1289_v43 = vpop.permute.xlu0 %1288 }
 0x1b8   : > { %v1760_v35 = vsel %vm1747_vm5, %v1727_v13, %v1161_v48 }
 0x1b9   : > { %1560 = vrot.lane.b32.xlu1 %v580_v30, %s2713_s22  ;;  %v1793_v5 = vsel %vm1780_vm6, %v1760_v35, %v1289_v43  ;;  %v584_v35 = vld [vmem:[#allocation2 + $0x152] sm:$0xff] }
 0x1ba   : > { %1562 = vrot.lane.b32.xlu0 %v581_v56, %s2713_s22 }
 0x1bb   : > { %v1163_v53 = vpop.permute.xlu1 %1162  ;;  %v1291_v34 = vpop.permute.xlu0 %1290 }
 0x1bc   : > { %v1761_v24 = vsel %vm1747_vm5, %v1728_v1, %v1163_v53  ;;  %v4185_v53 = vld [vmem:[#allocation9_spill] sm:$0xff] }
 0x1bd   : > { %1180 = vrot.lane.b32.xlu1 %v580_v30, %s2710_s14  ;;  %v1794_v15 = vsel %vm1780_vm6, %v1761_v24, %v1291_v34  ;;  %v1630_v30 = vsel %vm182_vm0, %v4183_v19, %v4182_v63  ;;  %v585_v1 = vld [vmem:[#allocation2 + $0x15a] sm:$0xff] }
 0x1be   : > { %1308 = vrot.lane.b32.xlu0 %v518_v62, %s2711_s16 }
 0x1bf   : > { %v909_v25 = vpop.permute.xlu1 %908  ;;  %v911_v59 = vpop.permute.xlu0 %910 }
 0x1c1   : > { %1182 = vrot.lane.b32.xlu1 %v581_v56, %s2710_s14  ;;  %v4184_v56 = vld [vmem:[#allocation30_spill] sm:$0xff] }
 0x1c2   : > { %1310 = vrot.lane.b32.xlu0 %v519_v8, %s2711_s16  ;;  %v1663_v43 = vsel %vm1648_vm2, %v1630_v30, %v4184_v56 }
 0x1c3   : > { %v1417_v27 = vpop.permute.xlu1 %1416 }
 0x1c4   : > { %v1419_v41 = vpop.permute.xlu0 %1418  ;;  %v1826_v57 = vsel %vm1813_vm7, %v1793_v5, %v1417_v27 }
 0x1c5   : > { %928 = vrot.lane.b32.xlu1 %v518_v62, %s2708_s21  ;;  %v1827_v29 = vsel %vm1813_vm7, %v1794_v15, %v1419_v41  ;;  %v4186_v62 = vld [vmem:[#allocation16_spill] sm:$0xff] }
 0x1c6   : > { %930 = vrot.lane.b32.xlu0 %v519_v8, %s2708_s21  ;;  %v1631_v34 = vsel %vm182_vm0, %v4186_v62, %v4185_v53  ;;  %v1696_v8 = vsel %vm1681_vm3, %v1663_v43, %v909_v25 }
 0x1c7   : > { %v1037_v55 = vpop.permute.xlu1 %1036  ;;  %v1664_v32 = vsel %vm1648_vm2, %v1631_v34, %v4187_v61 }
 0x1c8   : > { %v1039_v28 = vpop.permute.xlu0 %1038  ;;  %v1729_v27 = vsel %vm1714_vm4, %v1696_v8, %v1037_v55  ;;  %v1697_v33 = vsel %vm1681_vm3, %v1664_v32, %v911_v59  ;;  %v586_v32 = vld [vmem:[#allocation2 + $0x16a] sm:$0xff] }
 0x1c9   : > { %1436 = vrot.lane.b32.xlu1 %v550_v49, %s2712_s20  ;;  %v1730_v7 = vsel %vm1714_vm4, %v1697_v33, %v1039_v28  ;;  %v522_v28 = vld [vmem:[#allocation2 + $0x168] sm:$0xff] }
 0x1ca   : > { %1438 = vrot.lane.b32.xlu0 %v551_v40, %s2712_s20 }
 0x1cb   : > { %v1545_v20 = vpop.permute.xlu1 %1544 }
 0x1cc   : > { %v1859_v45 = vsel %vm1846_vm8, %v1826_v57, %v1545_v20  ;;  %v1547_v9 = vpop.permute.xlu0 %1546  ;;  %v523_v20 = vld [vmem:[#allocation2 + $0x170] sm:$0xff] }
 0x1cd   : > { %1056 = vrot.lane.b32.xlu1 %v550_v49, %s2709_s7  ;;  %2624 = vmatprep.mubr.msk.f32.mxu0 %vm1888_vm9, %v1859_v45  ;;  %v1860_v46 = vsel %vm1846_vm8, %v1827_v29, %v1547_v9  ;;  %v4188_v45 = vld [vmem:[#allocation7_spill] sm:$0xff] }
 0x1ce   : > { %1058 = vrot.lane.b32.xlu0 %v551_v40, %s2709_s7  ;;  %2625 = vmatmul.mubr.msk.f32.gmra.mrb[12].mxu0 %vm1888_vm9, %v1860_v46  ;;  %v1632_v29 = vsel %vm182_vm0, %v3397_v51, %v4188_v45  ;;  %v4189_v46 = vld [vmem:[#allocation32_spill] sm:$0xff] }
 0x1cf   : > { %v1165_v54 = vpop.permute.xlu1 %1164 }
 0x1d0   : > { %v1293_v10 = vpop.permute.xlu0 %1292  ;;  %v1762_v42 = vsel %vm1747_vm5, %v1729_v27, %v1165_v54  ;;  %v4190_v54 = vld [vmem:[#allocation12_spill] sm:$0xff] }
 0x1d1   : > { %1564 = vrot.lane.b32.xlu1 %v582_v39, %s2713_s22  ;;  %v1795_v41 = vsel %vm1780_vm6, %v1762_v42, %v1293_v10 }
 0x1d2   : > { %1566 = vrot.lane.b32.xlu0 %v583_v0, %s2713_s22 }
 0x1d3   : > { %v1167_v52 = vpop.permute.xlu1 %1166 }
 0x1d4   : > { %v1295_v16 = vpop.permute.xlu0 %1294  ;;  %v1763_v25 = vsel %vm1747_vm5, %v1730_v7, %v1167_v52 }
 0x1d5   : > { %1184 = vrot.lane.b32.xlu1 %v582_v39, %s2710_s14  ;;  %v1796_v23 = vsel %vm1780_vm6, %v1763_v25, %v1295_v16  ;;  %v1665_v39 = vsel %vm1648_vm2, %v1632_v29, %v4189_v46  ;;  %v525_v25 = vld [vmem:[#allocation2 + $0x188] sm:$0xff] }
 0x1d6   : > { %1312 = vrot.lane.b32.xlu0 %v520_v60, %s2711_s16 }
 0x1d7   : > { %v913_v36 = vpop.permute.xlu1 %912 }
 0x1d8   : > { %v915_v11 = vpop.permute.xlu0 %914  ;;  %v1698_v10 = vsel %vm1681_vm3, %v1665_v39, %v913_v36 }
 0x1d9   : > { %1186 = vrot.lane.b32.xlu1 %v583_v0, %s2710_s14  ;;  %v1633_v0 = vsel %vm182_vm0, %v3407_v12, %v4190_v54 }
 0x1da   : > { %1314 = vrot.lane.b32.xlu0 %v521_v50, %s2711_s16 }
 0x1db   : > { %v1421_v48 = vpop.permute.xlu1 %1420 }
 0x1dc   : > { %v1423_v22 = vpop.permute.xlu0 %1422  ;;  %v1828_v6 = vsel %vm1813_vm7, %v1795_v41, %v1421_v48  ;;  %v555_v48 = vld [vmem:[#allocation2 + $0x171] sm:$0xff]  ;;  %v4192_v41 = vld [vmem:[#allocation10_spill] sm:$0xff] }
 0x1dd   : > { %932 = vrot.lane.b32.xlu1 %v520_v60, %s2708_s21  ;;  %v1829_v49 = vsel %vm1813_vm7, %v1796_v23, %v1423_v22  ;;  %v4191_v60 = vld [vmem:[#allocation35_spill] sm:$0xff]  ;;  %v4193_v23 = vld [vmem:[#allocation34_spill] sm:$0xff] }
 0x1de   : > { %934 = vrot.lane.b32.xlu0 %v521_v50, %s2708_s21  ;;  %v1666_v16 = vsel %vm1648_vm2, %v1633_v0, %v4191_v60  ;;  %v554_v50 = vld [vmem:[#allocation2 + $0x169] sm:$0xff] }
 0x1df   : > { %v1041_v38 = vpop.permute.xlu1 %1040  ;;  %v1699_v63 = vsel %vm1681_vm3, %v1666_v16, %v915_v11  ;;  %v589_v16 = vld [vmem:[#allocation2 + $0x18a] sm:$0xff] }
 0x1e0   : > { %v1043_v37 = vpop.permute.xlu0 %1042  ;;  %v1731_v51 = vsel %vm1714_vm4, %v1698_v10, %v1041_v38  ;;  %v524_v38 = vld [vmem:[#allocation2 + $0x180] sm:$0xff] }
 0x1e1   : > { %1440 = vrot.lane.b32.xlu1 %v552_v18, %s2712_s20  ;;  %v1732_v12 = vsel %vm1714_vm4, %v1699_v63, %v1043_v37  ;;  %v526_v63 = vld [vmem:[#allocation2 + $0x198] sm:$0xff] }
 0x1e2   : > { %1442 = vrot.lane.b32.xlu0 %v553_v17, %s2712_s20 }
 0x1e3   : > { %v1549_v59 = vpop.permute.xlu1 %1548 }
 0x1e4   : > { %v1861_v13 = vsel %vm1846_vm8, %v1828_v6, %v1549_v59  ;;  %v1551_v44 = vpop.permute.xlu0 %1550  ;;  %v1634_v6 = vsel %vm182_vm0, %v3453_v26, %v4192_v41 }
 0x1e5   : > { %1060 = vrot.lane.b32.xlu1 %v552_v18, %s2709_s7  ;;  %2627 = vmatprep.mubr.msk.f32.mxu0 %vm1888_vm9, %v1861_v13  ;;  %v1862_v47 = vsel %vm1846_vm8, %v1829_v49, %v1551_v44  ;;  %v587_v18 = vld [vmem:[#allocation2 + $0x172] sm:$0xff]  ;;  %v1667_v13 = vsel %vm1648_vm2, %v1634_v6, %v4193_v23 }
 0x1e6   : > { %1062 = vrot.lane.b32.xlu0 %v553_v17, %s2709_s7  ;;  %2628 = vmatmul.mubr.msk.f32.gmra.mrb[14].mxu0 %vm1888_vm9, %v1862_v47  ;;  %v4194_v49 = vld [vmem:[#allocation15_spill] sm:$0xff] }
 0x1e7   : > { %v1169_v55 = vpop.permute.xlu1 %1168  ;;  %v1635_v44 = vsel %vm182_vm0, %v3467_v3, %v4194_v49 }
 0x1e8   : > { %v1297_v40 = vpop.permute.xlu0 %1296  ;;  %v1764_v19 = vsel %vm1747_vm5, %v1731_v51, %v1169_v55  ;;  %v4195_v55 = vld [vmem:[#allocation37_spill] sm:$0xff] }
 0x1e9   : > { %1568 = vrot.lane.b32.xlu1 %v584_v35, %s2713_s22  ;;  %v1797_v43 = vsel %vm1780_vm6, %v1764_v19, %v1297_v40  ;;  %v556_v40 = vld [vmem:[#allocation2 + $0x181] sm:$0xff] }
 0x1ea   : > { %1570 = vrot.lane.b32.xlu0 %v585_v1, %s2713_s22 }
 0x1eb   : > { %v1171_v24 = vpop.permute.xlu1 %1170 }
 0x1ec   : > { %v1299_v5 = vpop.permute.xlu0 %1298  ;;  %v1765_v36 = vsel %vm1747_vm5, %v1732_v12, %v1171_v24  ;;  %v558_v12 = vld [vmem:[#allocation2 + $0x199] sm:$0xff] }
 0x1ed   : > { %1188 = vrot.lane.b32.xlu1 %v584_v35, %s2710_s14  ;;  %v1798_v62 = vsel %vm1780_vm6, %v1765_v36, %v1299_v5  ;;  %v527_v36 = vld [vmem:[#allocation2 + $0x1a0] sm:$0xff] }
 0x1ee   : > { %1316 = vrot.lane.b32.xlu0 %v522_v28, %s2711_s16 }
 0x1ef   : > { %v917_v57 = vpop.permute.xlu1 %916 }
 0x1f0   : > { %v919_v15 = vpop.permute.xlu0 %918  ;;  %v1700_v47 = vsel %vm1681_vm3, %v1667_v13, %v917_v57 }
 0x1f1   : > { %1190 = vrot.lane.b32.xlu1 %v585_v1, %s2710_s14  ;;  %v1668_v1 = vsel %vm1648_vm2, %v1635_v44, %v4195_v55  ;;  %v591_v55 = vld [vmem:[#allocation2 + $0x1a2] sm:$0xff] }
 0x1f2   : > { %1318 = vrot.lane.b32.xlu0 %v523_v20, %s2711_s16  ;;  %v1701_v24 = vsel %vm1681_vm3, %v1668_v1, %v919_v15 }
 0x1f3   : > { %v1425_v9 = vpop.permute.xlu1 %1424 }
 0x1f4   : > { %v1427_v52 = vpop.permute.xlu0 %1426  ;;  %v1830_v53 = vsel %vm1813_vm7, %v1797_v43, %v1425_v9 }
 0x1f5   : > { %936 = vrot.lane.b32.xlu1 %v522_v28, %s2708_s21  ;;  %v1831_v8 = vsel %vm1813_vm7, %v1798_v62, %v1427_v52  ;;  %v588_v52 = vld [vmem:[#allocation2 + $0x182] sm:$0xff] }
 0x1f6   : > { %938 = vrot.lane.b32.xlu0 %v523_v20, %s2708_s21  ;;  %v557_v20 = vld [vmem:[#allocation2 + $0x189] sm:$0xff] }
 0x1f7   : > { %v1045_v30 = vpop.permute.xlu1 %1044 }
 0x1f8   : > { %v1047_v56 = vpop.permute.xlu0 %1046  ;;  %v1733_v26 = vsel %vm1714_vm4, %v1700_v47, %v1045_v30 }
 0x1f9   : > { %1444 = vrot.lane.b32.xlu1 %v554_v50, %s2712_s20  ;;  %v1734_v3 = vsel %vm1714_vm4, %v1701_v24, %v1047_v56  ;;  %v4196_v56 = vld [vmem:[#allocation14_spill] sm:$0xff] }
 0x1fa   : > { %1446 = vrot.lane.b32.xlu0 %v555_v48, %s2712_s20  ;;  %v1636_v43 = vsel %vm182_vm0, %v3510_v2, %v4196_v56 }
 0x1fb   : > { %v1553_v11 = vpop.permute.xlu1 %1552 }
 0x1fc   : > { %v1863_v34 = vsel %vm1846_vm8, %v1830_v53, %v1553_v11  ;;  %v1555_v22 = vpop.permute.xlu0 %1554  ;;  %v4197_v11 = vld [vmem:[#allocation36_spill] sm:$0xff] }
 0x1fd   : > { %1064 = vrot.lane.b32.xlu1 %v554_v50, %s2709_s7  ;;  %2630 = vmatprep.mubr.msk.f32.mxu1 %vm1888_vm9, %v1863_v34  ;;  %v1864_v61 = vsel %vm1846_vm8, %v1831_v8, %v1555_v22  ;;  %v1669_v62 = vsel %vm1648_vm2, %v1636_v43, %v4197_v11  ;;  %v590_v34 = vld [vmem:[#allocation2 + $0x19a] sm:$0xff]  ;;  %v4198_v8 = vld [vmem:[#allocation18_spill] sm:$0xff] }
 0x1fe   : > { %1066 = vrot.lane.b32.xlu0 %v555_v48, %s2709_s7  ;;  %2631 = vmatmul.mubr.msk.f32.vlgmr.msra.gmra.mrb[0].mxu1 %vm1888_vm9, %v1864_v61  ;;  %v1637_v22 = vsel %vm182_vm0, %v3521_v14, %v4198_v8  ;;  %v4203_v43 = vld [vmem:[#allocation41_spill] sm:$0xff] }
 0x1ff   : > { %v1173_v27 = vpop.permute.xlu1 %1172 }
 0x200   : > { %v1301_v33 = vpop.permute.xlu0 %1300  ;;  %v1766_v28 = vsel %vm1747_vm5, %v1733_v26, %v1173_v27 }
 0x201   : > { %1572 = vrot.lane.b32.xlu1 %v586_v32, %s2713_s22  ;;  %v1799_v29 = vsel %vm1780_vm6, %v1766_v28, %v1301_v33 }
 0x202   : > { %1574 = vrot.lane.b32.xlu0 %v587_v18, %s2713_s22 }
 0x203   : > { %v1175_v42 = vpop.permute.xlu1 %1174 }
 0x204   : > { %v1303_v7 = vpop.permute.xlu0 %1302  ;;  %v1767_v57 = vsel %vm1747_vm5, %v1734_v3, %v1175_v42  ;;  %v559_v42 = vld [vmem:[#allocation2 + $0x1a1] sm:$0xff] }
 0x205   : > { %1192 = vrot.lane.b32.xlu1 %v586_v32, %s2710_s14  ;;  %v1800_v46 = vsel %vm1780_vm6, %v1767_v57, %v1303_v7  ;;  %v4199_v32 = vld [vmem:[#allocation39_spill] sm:$0xff] }
 0x206   : > { %1320 = vrot.lane.b32.xlu0 %v524_v38, %s2711_s16  ;;  %v1670_v27 = vsel %vm1648_vm2, %v1637_v22, %v4199_v32 }
 0x207   : > { %v921_v17 = vpop.permute.xlu1 %920 }
 0x208   : > { %v3771_v37 = vpop.permute.xlu0 %922  ;;  %v1702_v2 = vsel %vm1681_vm3, %v1669_v62, %v921_v17 }
 0x209   : > { %1194 = vrot.lane.b32.xlu1 %v587_v18, %s2710_s14 }
 0x20a   : > { %1322 = vrot.lane.b32.xlu0 %v525_v25, %s2711_s16 }
 0x20b   : > { %v1429_v59 = vpop.permute.xlu1 %1428 }
 0x20c   : > { %v1431_v35 = vpop.permute.xlu0 %1430  ;;  %v1832_v9 = vsel %vm1813_vm7, %v1799_v29, %v1429_v59 }
 0x20d   : > { %940 = vrot.lane.b32.xlu1 %v524_v38, %s2708_s21  ;;  %v1833_v54 = vsel %vm1813_vm7, %v1800_v46, %v1431_v35  ;;  %v1703_v38 = vsel %vm1681_vm3, %v1670_v27, %v3771_v37 }
 0x20e   : > { %942 = vrot.lane.b32.xlu0 %v525_v25, %s2708_s21 }
 0x20f   : > { %v1049_v5 = vpop.permute.xlu1 %1048 }
 0x210   : > { %v1051_v45 = vpop.permute.xlu0 %1050  ;;  %v1735_v18 = vsel %vm1714_vm4, %v1702_v2, %v1049_v5 }
 0x211   : > { %1448 = vrot.lane.b32.xlu1 %v556_v40, %s2712_s20  ;;  %v1736_v6 = vsel %vm1714_vm4, %v1703_v38, %v1051_v45 }
 0x212   : > { %1450 = vrot.lane.b32.xlu0 %v557_v20, %s2712_s20 }
 0x213   : > { %v1557_v15 = vpop.permute.xlu1 %1556 }
 0x214   : > { %v1865_v39 = vsel %vm1846_vm8, %v1832_v9, %v1557_v15  ;;  %v1559_v0 = vpop.permute.xlu0 %1558 }
 0x215   : > { %1068 = vrot.lane.b32.xlu1 %v556_v40, %s2709_s7  ;;  %2633 = vmatprep.mubr.msk.f32.mxu1 %vm1888_vm9, %v1865_v39  ;;  %v1866_v10 = vsel %vm1846_vm8, %v1833_v54, %v1559_v0  ;;  %v4200_v54 = vld [vmem:[#allocation17_spill] sm:$0xff] }
 0x216   : > { %1070 = vrot.lane.b32.xlu0 %v557_v20, %s2709_s7  ;;  %2634 = vmatmul.mubr.msk.f32.gmra.mrb[2].mxu1 %vm1888_vm9, %v1866_v10  ;;  %v1638_v0 = vsel %vm182_vm0, %v3566_v31, %v4200_v54 }
 0x217   : > { %v1177_v60 = vpop.permute.xlu1 %1176 }
 0x218   : > { %v1305_v51 = vpop.permute.xlu0 %1304  ;;  %v1768_v7 = vsel %vm1747_vm5, %v1735_v18, %v1177_v60  ;;  %v4201_v60 = vld [vmem:[#allocation38_spill] sm:$0xff] }
 0x219   : > { %1576 = vrot.lane.b32.xlu1 %v588_v52, %s2713_s22  ;;  %v1801_v47 = vsel %vm1780_vm6, %v1768_v7, %v1305_v51 }
 0x21a   : > { %1578 = vrot.lane.b32.xlu0 %v589_v16, %s2713_s22 }
 0x21b   : > { %v1179_v50 = vpop.permute.xlu1 %1178 }
 0x21c   : > { %v1307_v19 = vpop.permute.xlu0 %1306  ;;  %v1769_v37 = vsel %vm1747_vm5, %v1736_v6, %v1179_v50 }
 0x21d   : > { %1196 = vrot.lane.b32.xlu1 %v588_v52, %s2710_s14  ;;  %v1802_v24 = vsel %vm1780_vm6, %v1769_v37, %v1307_v19  ;;  %v4202_v19 = vld [vmem:[#allocation20_spill] sm:$0xff] }
 0x21e   : > { %1324 = vrot.lane.b32.xlu0 %v526_v63, %s2711_s16 }
 0x21f   : > { %v3809_v30 = vpop.permute.xlu1 %924 }
 0x220   : > { %v3811_v48 = vpop.permute.xlu0 %926 }
 0x221   : > { %1198 = vrot.lane.b32.xlu1 %v589_v16, %s2710_s14  ;;  %v1671_v16 = vsel %vm1648_vm2, %v1638_v0, %v4201_v60  ;;  %v4207_v60 = vld [vmem:[#allocation43_spill] sm:$0xff] }
 0x222   : > { %1452 = vrot.lane.b32.xlu0 %v558_v12, %s2712_s20  ;;  %v1639_v12 = vsel %vm182_vm0, %v3573_v4, %v4202_v19  ;;  %v1704_v31 = vsel %vm1681_vm3, %v1671_v16, %v3809_v30 }
 0x223   : > { %v1433_v53 = vpop.permute.xlu1 %1432 }
 0x224   : > { %v1435_v61 = vpop.permute.xlu0 %1434  ;;  %v1834_v1 = vsel %vm1813_vm7, %v1801_v47, %v1433_v53  ;;  %v1672_v53 = vsel %vm1648_vm2, %v1639_v12, %v4203_v43 }
 0x225   : > { %1326 = vrot.lane.b32.xlu1 %v527_v36, %s2711_s16  ;;  %v2608_v33 = vpop.f32.mrb[0].mxu0  ;;  %v1835_v5 = vsel %vm1813_vm7, %v1802_v24, %v1435_v61  ;;  %v1705_v8 = vsel %vm1681_vm3, %v1672_v53, %v3811_v48 }
 0x226   : > { %v2211_v14 = vsel %vm182_vm0, %v2608_v33, 0.0  ;;  %v2282_v25 = vmul.f32 %v2608_v33, %v2608_v33  ;;  %2384 = vst.msk [vmem:[%s3825_s23 + $0x8] sm:$0xff] %vm182_vm0, %v2608_v33  ;;  %1580 = vrot.lane.b32.xlu0 %v590_v34, %s2713_s22  ;;  %v2051_v17 = vpop.f32.mrb[1].mxu0 }
 0x227   : > { %v1053_v41 = vpop.permute.xlu1 %1052  ;;  %v2210_v59 = vsel %vm182_vm0, %v2051_v17, 0.0  ;;  %v2281_v23 = vmul.f32 %v2051_v17, %v2051_v17  ;;  %2383 = vst.msk [vmem:[%s3825_s23] sm:$0xff] %vm182_vm0, %v2051_v17 }
 0x228   : > { %v2314_v13 = vsel %vm182_vm0, %v2282_v25, 0.0  ;;  %v2212_v49 = vadd.f32 %v2211_v14, %v2210_v59  ;;  %v1055_v44 = vpop.permute.xlu0 %1054  ;;  %v1737_v11 = vsel %vm1714_vm4, %v1704_v31, %v1053_v41 }
 0x229   : > { %1454 = vrot.lane.b32.xlu1 %v559_v42, %s2712_s20  ;;  %v2313_v35 = vsel %vm182_vm0, %v2281_v23, 0.0  ;;  %v1738_v30 = vsel %vm1714_vm4, %v1705_v8, %v1055_v44 }
 0x22a   : > { %v2315_v26 = vadd.f32 %v2314_v13, %v2313_v35 }
 0x22b   : > { %v1561_v40 = vpop.permute.xlu1 %1560 }
 0x22c   : > { %v1867_v28 = vsel %vm1846_vm8, %v1834_v1, %v1561_v40  ;;  %v1563_v3 = vpop.permute.xlu0 %1562 }
 0x22d   : > { %1582 = vrot.lane.b32.xlu1 %v591_v55, %s2713_s22  ;;  %2636 = vmatprep.mubr.msk.f32.mxu1 %vm1888_vm9, %v1867_v28  ;;  %v1868_v20 = vsel %vm1846_vm8, %v1835_v5, %v1563_v3  ;;  %v4204_v28 = vld [vmem:[#allocation19_spill] sm:$0xff] }
 0x22e   : > { %2637 = vmatmul.mubr.msk.f32.gmra.mrb[4].mxu1 %vm1888_vm9, %v1868_v20  ;;  %v1640_v5 = vsel %vm182_vm0, %v3614_v21, %v4204_v28 }
 0x22f   : > { %v1181_v57 = vpop.permute.xlu1 %1180 }
 0x230   : > { %v1309_v45 = vpop.permute.xlu0 %1308  ;;  %v1770_v22 = vsel %vm1747_vm5, %v1737_v11, %v1181_v57 }
 0x231   : > { %v1803_v42 = vsel %vm1780_vm6, %v1770_v22, %v1309_v45  ;;  %v4205_v45 = vld [vmem:[#allocation40_spill] sm:$0xff] }
 0x233   : > { %v1183_v29 = vpop.permute.xlu1 %1182 }
 0x234   : > { %v1311_v9 = vpop.permute.xlu0 %1310  ;;  %v1771_v27 = vsel %vm1747_vm5, %v1738_v30, %v1183_v29  ;;  %v1673_v29 = vsel %vm1648_vm2, %v1640_v5, %v4205_v45 }
 0x235   : > { %v1804_v48 = vsel %vm1780_vm6, %v1771_v27, %v1311_v9 }
 0x237   : > { %v3859_v15 = vpop.permute.xlu1 %928 }
 0x238   : > { %v3861_v46 = vpop.permute.xlu0 %930  ;;  %v1706_v0 = vsel %vm1681_vm3, %v1673_v29, %v3859_v15 }
 0x239   : > { %v2611_v39 = vpop.f32.mrb[2].mxu0 }
 0x23a   : > { %2386 = vst.msk [vmem:[%s3825_s23 + $0x18] sm:$0xff] %vm182_vm0, %v2611_v39  ;;  %v2061_v52 = vpop.f32.mrb[3].mxu0  ;;  %v2284_v51 = vmul.f32 %v2611_v39, %v2611_v39  ;;  %v2215_v62 = vsel %vm182_vm0, %v2611_v39, 0.0  ;;  %v4206_v39 = vld [vmem:[#allocation22_spill] sm:$0xff] }
 0x23b   : > { %v1437_v10 = vpop.permute.xlu1 %1436  ;;  %v2213_v50 = vsel %vm182_vm0, %v2061_v52, 0.0  ;;  %v2283_v63 = vmul.f32 %v2061_v52, %v2061_v52  ;;  %2385 = vst.msk [vmem:[%s3825_s23 + $0x10] sm:$0xff] %vm182_vm0, %v2061_v52  ;;  %v1641_v54 = vsel %vm182_vm0, %v3619_v58, %v4206_v39 }
 0x23c   : > { %v2214_v36 = vadd.f32 %v2213_v50, %v2212_v49  ;;  %v1439_v56 = vpop.permute.xlu0 %1438  ;;  %v2318_v32 = vsel %vm182_vm0, %v2284_v51, 0.0  ;;  %v1836_v38 = vsel %vm1813_vm7, %v1803_v42, %v1437_v10  ;;  %v1674_v21 = vsel %vm1648_vm2, %v1641_v54, %v4207_v60 }
 0x23d   : > { %v2316_v34 = vsel %vm182_vm0, %v2283_v63, 0.0  ;;  %v1837_v25 = vsel %vm1813_vm7, %v1804_v48, %v1439_v56  ;;  %v1707_v51 = vsel %vm1681_vm3, %v1674_v21, %v3861_v46  ;;  %v329_v48 = vld [vmem:[#allocation2 + $0x138] sm:$0xff] }
 0x23e   : > { %v2317_v4 = vadd.f32 %v2316_v34, %v2315_v26  ;;  %v2216_v61 = vadd.f32 %v2215_v62, %v2214_v36 }
 0x23f   : > { %v1057_v2 = vpop.permute.xlu1 %1056 }
 0x240   : > { %v1059_v18 = vpop.permute.xlu0 %1058  ;;  %v2319_v33 = vadd.f32 %v2318_v32, %v2317_v4  ;;  %v1739_v16 = vsel %vm1714_vm4, %v1706_v0, %v1057_v2 }
 0x241   : > { %v1740_v19 = vsel %vm1714_vm4, %v1707_v51, %v1059_v18 }
 0x243   : > { %v1565_v7 = vpop.permute.xlu1 %1564 }
 0x244   : > { %v1869_v14 = vsel %vm1846_vm8, %v1836_v38, %v1565_v7  ;;  %v1567_v17 = vpop.permute.xlu0 %1566 }
 0x245   : > { %2639 = vmatprep.mubr.msk.f32.mxu1 %vm1888_vm9, %v1869_v14  ;;  %v1870_v41 = vsel %vm1846_vm8, %v1837_v25, %v1567_v17 }
 0x246   : > { %2640 = vmatmul.mubr.msk.f32.gmra.mrb[6].mxu1 %vm1888_vm9, %v1870_v41  ;;  %v330_v41 = vld [vmem:[#allocation2 + $0x140] sm:$0xff] }
 0x247   : > { %v1185_v6 = vpop.permute.xlu1 %1184 }
 0x248   : > { %v1313_v59 = vpop.permute.xlu0 %1312  ;;  %v1772_v50 = vsel %vm1747_vm5, %v1739_v16, %v1185_v6  ;;  %v4208_v6 = vld [vmem:[#allocation21_spill] sm:$0xff] }
 0x249   : > { %v1805_v15 = vsel %vm1780_vm6, %v1772_v50, %v1313_v59  ;;  %v1642_v59 = vsel %vm182_vm0, %v329_v48, %v4208_v6 }
 0x24b   : > { %v1187_v23 = vpop.permute.xlu1 %1186 }
 0x24c   : > { %v1315_v37 = vpop.permute.xlu0 %1314  ;;  %v1773_v58 = vsel %vm1747_vm5, %v1740_v19, %v1187_v23 }
 0x24d   : > { %v2614_v13 = vpop.f32.mrb[4].mxu0  ;;  %v1806_v56 = vsel %vm1780_vm6, %v1773_v58, %v1315_v37  ;;  %v4209_v37 = vld [vmem:[#allocation42_spill] sm:$0xff] }
 0x24e   : > { %2388 = vst.msk [vmem:[%s3825_s23 + $0x28] sm:$0xff] %vm182_vm0, %v2614_v13  ;;  %v2071_v44 = vpop.f32.mrb[5].mxu0  ;;  %v2286_v47 = vmul.f32 %v2614_v13, %v2614_v13  ;;  %v2219_v40 = vsel %vm182_vm0, %v2614_v13, 0.0  ;;  %v1675_v13 = vsel %vm1648_vm2, %v1642_v59, %v4209_v37 }
 0x24f   : > { %v3899_v49 = vpop.permute.xlu1 %932  ;;  %v2217_v35 = vsel %vm182_vm0, %v2071_v44, 0.0  ;;  %v2285_v55 = vmul.f32 %v2071_v44, %v2071_v44  ;;  %2387 = vst.msk [vmem:[%s3825_s23 + $0x20] sm:$0xff] %vm182_vm0, %v2071_v44  ;;  %v4210_v44 = vld [vmem:[#allocation24_spill] sm:$0xff] }
 0x250   : > { %v2218_v1 = vadd.f32 %v2217_v35, %v2216_v61  ;;  %v935_v26 = vpop.permute.xlu0 %934  ;;  %v2322_v9 = vsel %vm182_vm0, %v2286_v47, 0.0  ;;  %v1643_v47 = vsel %vm182_vm0, %v330_v41, %v4210_v44  ;;  %v1708_v35 = vsel %vm1681_vm3, %v1675_v13, %v3899_v49 }
 0x251   : > { %v2320_v24 = vsel %vm182_vm0, %v2285_v55, 0.0 }
 0x252   : > { %v2321_v3 = vadd.f32 %v2320_v24, %v2319_v33  ;;  %v2220_v57 = vadd.f32 %v2219_v40, %v2218_v1  ;;  %v4211_v1 = vld [vmem:[#allocation45_spill] sm:$0xff] }
 0x253   : > { %v1441_v20 = vpop.permute.xlu1 %1440  ;;  %v1676_v40 = vsel %vm1648_vm2, %v1643_v47, %v4211_v1 }
 0x254   : > { %v1443_v10 = vpop.permute.xlu0 %1442  ;;  %v2323_v52 = vadd.f32 %v2322_v9, %v2321_v3  ;;  %v1838_v31 = vsel %vm1813_vm7, %v1805_v15, %v1441_v20  ;;  %v1709_v28 = vsel %vm1681_vm3, %v1676_v40, %v935_v26 }
 0x255   : > { %v1839_v46 = vsel %vm1813_vm7, %v1806_v56, %v1443_v10 }
 0x257   : > { %v1061_v63 = vpop.permute.xlu1 %1060 }
 0x258   : > { %v1063_v12 = vpop.permute.xlu0 %1062  ;;  %v1741_v24 = vsel %vm1714_vm4, %v1708_v35, %v1061_v63 }
 0x259   : > { %v1742_v20 = vsel %vm1714_vm4, %v1709_v28, %v1063_v12 }
 0x25b   : > { %v1569_v36 = vpop.permute.xlu1 %1568 }
 0x25c   : > { %v1871_v43 = vsel %vm1846_vm8, %v1838_v31, %v1569_v36  ;;  %v1571_v53 = vpop.permute.xlu0 %1570 }
 0x25d   : > { %2642 = vmatprep.mubr.msk.f32.mxu1 %vm1888_vm9, %v1871_v43  ;;  %v1872_v11 = vsel %vm1846_vm8, %v1839_v46, %v1571_v53 }
 0x25e   : > { %2643 = vmatmul.mubr.msk.f32.gmra.mrb[8].mxu1 %vm1888_vm9, %v1872_v11  ;;  %v331_v11 = vld [vmem:[#allocation2 + $0x150] sm:$0xff] }
 0x25f   : > { %v1189_v62 = vpop.permute.xlu1 %1188 }
 0x260   : > { %v1317_v34 = vpop.permute.xlu0 %1316  ;;  %v1774_v5 = vsel %vm1747_vm5, %v1741_v24, %v1189_v62  ;;  %v332_v62 = vld [vmem:[#allocation2 + $0x158] sm:$0xff] }
 0x261   : > { %v2617_v8 = vpop.f32.mrb[6].mxu0  ;;  %v1807_v29 = vsel %vm1780_vm6, %v1774_v5, %v1317_v34  ;;  %v333_v5 = vld [vmem:[#allocation2 + $0x168] sm:$0xff] }
 0x262   : > { %2390 = vst.msk [vmem:[%s3825_s23 + $0x38] sm:$0xff] %vm182_vm0, %v2617_v8  ;;  %v2081_v4 = vpop.f32.mrb[7].mxu0  ;;  %v2288_v2 = vmul.f32 %v2617_v8, %v2617_v8  ;;  %v2223_v18 = vsel %vm182_vm0, %v2617_v8, 0.0  ;;  %v4212_v8 = vld [vmem:[#allocation23_spill] sm:$0xff] }
 0x263   : > { %v1191_v22 = vpop.permute.xlu1 %1190  ;;  %v2221_v61 = vsel %vm182_vm0, %v2081_v4, 0.0  ;;  %v2287_v30 = vmul.f32 %v2081_v4, %v2081_v4  ;;  %2389 = vst.msk [vmem:[%s3825_s23 + $0x30] sm:$0xff] %vm182_vm0, %v2081_v4 }
 0x264   : > { %v2222_v32 = vadd.f32 %v2221_v61, %v2220_v57  ;;  %v1319_v27 = vpop.permute.xlu0 %1318  ;;  %v2326_v14 = vsel %vm182_vm0, %v2288_v2, 0.0  ;;  %v1775_v57 = vsel %vm1747_vm5, %v1742_v20, %v1191_v22  ;;  %v1644_v22 = vsel %vm182_vm0, %v331_v11, %v4212_v8  ;;  %v4213_v2 = vld [vmem:[#allocation26_spill] sm:$0xff] }
 0x265   : > { %v2324_v33 = vsel %vm182_vm0, %v2287_v30, 0.0  ;;  %v1808_v39 = vsel %vm1780_vm6, %v1775_v57, %v1319_v27  ;;  %v1645_v61 = vsel %vm182_vm0, %v332_v62, %v4213_v2  ;;  %v4214_v30 = vld [vmem:[#allocation44_spill] sm:$0xff]  ;;  %v4215_v27 = vld [vmem:[#allocation47_spill] sm:$0xff] }
 0x266   : > { %v2325_v42 = vadd.f32 %v2324_v33, %v2323_v52  ;;  %v2224_v7 = vadd.f32 %v2223_v18, %v2222_v32  ;;  %v1677_v32 = vsel %vm1648_vm2, %v1644_v22, %v4214_v30  ;;  %v1678_v18 = vsel %vm1648_vm2, %v1645_v61, %v4215_v27 }
 0x267   : > { %v937_v38 = vpop.permute.xlu1 %936 }
 0x268   : > { %v939_v25 = vpop.permute.xlu0 %938  ;;  %v2327_v17 = vadd.f32 %v2326_v14, %v2325_v42  ;;  %v1710_v33 = vsel %vm1681_vm3, %v1677_v32, %v937_v38 }
 0x26b   : > { %v1445_v23 = vpop.permute.xlu1 %1444 }
 0x26c   : > { %v1447_v55 = vpop.permute.xlu0 %1446  ;;  %v1840_v49 = vsel %vm1813_vm7, %v1807_v29, %v1445_v23 }
 0x26d   : > { %v1841_v26 = vsel %vm1813_vm7, %v1808_v39, %v1447_v55  ;;  %v4216_v39 = vld [vmem:[#allocation25_spill] sm:$0xff] }
 0x26f   : > { %v1065_v3 = vpop.permute.xlu1 %1064 }
 0x270   : > { %v1067_v45 = vpop.permute.xlu0 %1066  ;;  %v1743_v48 = vsel %vm1714_vm4, %v1710_v33, %v1065_v3 }
 0x273   : > { %v1573_v9 = vpop.permute.xlu1 %1572 }
 0x274   : > { %v1873_v54 = vsel %vm1846_vm8, %v1840_v49, %v1573_v9  ;;  %v1575_v0 = vpop.permute.xlu0 %1574 }
 0x275   : > { %2645 = vmatprep.mubr.msk.f32.mxu1 %vm1888_vm9, %v1873_v54  ;;  %v1874_v10 = vsel %vm1846_vm8, %v1841_v26, %v1575_v0  ;;  %v2620_v52 = vpop.f32.mrb[8].mxu0  ;;  %v1646_v54 = vsel %vm182_vm0, %v333_v5, %v4216_v39 }
 0x276   : > { %2392 = vst.msk [vmem:[%s3825_s23 + $0x48] sm:$0xff] %vm182_vm0, %v2620_v52  ;;  %2646 = vmatmul.mubr.msk.f32.gmra.mrb[10].mxu1 %vm1888_vm9, %v1874_v10  ;;  %v2091_v21 = vpop.f32.mrb[9].mxu0  ;;  %v2290_v16 = vmul.f32 %v2620_v52, %v2620_v52  ;;  %v2227_v58 = vsel %vm182_vm0, %v2620_v52, 0.0  ;;  %v4217_v10 = vld [vmem:[#allocation46_spill] sm:$0xff] }
 0x277   : > { %v1193_v60 = vpop.permute.xlu1 %1192  ;;  %v2225_v51 = vsel %vm182_vm0, %v2091_v21, 0.0  ;;  %v2289_v50 = vmul.f32 %v2091_v21, %v2091_v21  ;;  %2391 = vst.msk [vmem:[%s3825_s23 + $0x40] sm:$0xff] %vm182_vm0, %v2091_v21  ;;  %v1679_v52 = vsel %vm1648_vm2, %v1646_v54, %v4217_v10 }
 0x278   : > { %v2226_v63 = vadd.f32 %v2225_v51, %v2224_v7  ;;  %v1321_v19 = vpop.permute.xlu0 %1320  ;;  %v2330_v56 = vsel %vm182_vm0, %v2290_v16, 0.0  ;;  %v1711_v7 = vsel %vm1681_vm3, %v1678_v18, %v939_v25 }
 0x279   : > { %v2328_v12 = vsel %vm182_vm0, %v2289_v50, 0.0  ;;  %v1744_v14 = vsel %vm1714_vm4, %v1711_v7, %v1067_v45 }
 0x27a   : > { %v2329_v15 = vadd.f32 %v2328_v12, %v2327_v17  ;;  %v2228_v36 = vadd.f32 %v2227_v58, %v2226_v63  ;;  %v1776_v17 = vsel %vm1747_vm5, %v1743_v48, %v1193_v60  ;;  %v334_v63 = vld [vmem:[#allocation2 + $0x170] sm:$0xff] }
 0x27b   : > { %v1195_v31 = vpop.permute.xlu1 %1194  ;;  %v1809_v23 = vsel %vm1780_vm6, %v1776_v17, %v1321_v19  ;;  %v4218_v12 = vld [vmem:[#allocation27_spill] sm:$0xff] }
 0x27c   : > { %v1323_v43 = vpop.permute.xlu0 %1322  ;;  %v2331_v46 = vadd.f32 %v2330_v56, %v2329_v15  ;;  %v1777_v6 = vsel %vm1747_vm5, %v1744_v14, %v1195_v31  ;;  %v1647_v15 = vsel %vm182_vm0, %v334_v63, %v4218_v12  ;;  %v4219_v56 = vld [vmem:[#allocation48_spill] sm:$0xff] }
 0x27d   : > { %v1810_v13 = vsel %vm1780_vm6, %v1777_v6, %v1323_v43  ;;  %v1680_v43 = vsel %vm1648_vm2, %v1647_v15, %v4219_v56 }
 0x27f   : > { %v941_v53 = vpop.permute.xlu1 %940 }
 0x280   : > { %v943_v34 = vpop.permute.xlu0 %942  ;;  %v1712_v60 = vsel %vm1681_vm3, %v1679_v52, %v941_v53 }
 0x281   : > { %v1713_v53 = vsel %vm1681_vm3, %v1680_v43, %v943_v34 }
 0x283   : > { %v1449_v4 = vpop.permute.xlu1 %1448 }
 0x284   : > { %v1451_v42 = vpop.permute.xlu0 %1450  ;;  %v1842_v38 = vsel %vm1813_vm7, %v1809_v23, %v1449_v4 }
 0x285   : > { %v1843_v40 = vsel %vm1813_vm7, %v1810_v13, %v1451_v42 }
 0x287   : > { %v1069_v41 = vpop.permute.xlu1 %1068 }
 0x288   : > { %v1071_v59 = vpop.permute.xlu0 %1070  ;;  %v1745_v16 = vsel %vm1714_vm4, %v1712_v60, %v1069_v41 }
 0x289   : > { %v2623_v37 = vpop.f32.mrb[10].mxu0  ;;  %v1746_v62 = vsel %vm1714_vm4, %v1713_v53, %v1071_v59 }
 0x28a   : > { %2394 = vst.msk [vmem:[%s3825_s23 + $0x58] sm:$0xff] %vm182_vm0, %v2623_v37  ;;  %v2101_v44 = vpop.f32.mrb[11].mxu0  ;;  %v2292_v47 = vmul.f32 %v2623_v37, %v2623_v37  ;;  %v2231_v3 = vsel %vm182_vm0, %v2623_v37, 0.0 }
 0x28b   : > { %v1577_v25 = vpop.permute.xlu1 %1576  ;;  %v2229_v55 = vsel %vm182_vm0, %v2101_v44, 0.0  ;;  %v2291_v1 = vmul.f32 %v2101_v44, %v2101_v44  ;;  %2393 = vst.msk [vmem:[%s3825_s23 + $0x50] sm:$0xff] %vm182_vm0, %v2101_v44 }
 0x28c   : > { %v1875_v35 = vsel %vm1846_vm8, %v1842_v38, %v1577_v25  ;;  %v2230_v24 = vadd.f32 %v2229_v55, %v2228_v36  ;;  %v1579_v28 = vpop.permute.xlu0 %1578  ;;  %v2334_v9 = vsel %vm182_vm0, %v2292_v47, 0.0 }
 0x28d   : > { %2648 = vmatprep.mubr.msk.f32.mxu1 %vm1888_vm9, %v1875_v35  ;;  %v2332_v20 = vsel %vm182_vm0, %v2291_v1, 0.0  ;;  %v1876_v57 = vsel %vm1846_vm8, %v1843_v40, %v1579_v28 }
 0x28e   : > { %v2333_v45 = vadd.f32 %v2332_v20, %v2331_v46  ;;  %2649 = vmatmul.mubr.msk.f32.gmra.mrb[12].mxu1 %vm1888_vm9, %v1876_v57  ;;  %v2232_v49 = vadd.f32 %v2231_v3, %v2230_v24 }
 0x28f   : > { %v1197_v29 = vpop.permute.xlu1 %1196 }
 0x290   : > { %v1325_v26 = vpop.permute.xlu0 %1324  ;;  %v2335_v0 = vadd.f32 %v2334_v9, %v2333_v45  ;;  %v1778_v51 = vsel %vm1747_vm5, %v1745_v16, %v1197_v29 }
 0x291   : > { %v1811_v58 = vsel %vm1780_vm6, %v1778_v51, %v1325_v26 }
 0x293   : > { %v1199_v21 = vpop.permute.xlu1 %1198 }
 0x294   : > { %v1453_v50 = vpop.permute.xlu0 %1452  ;;  %v1779_v8 = vsel %vm1747_vm5, %v1746_v62, %v1199_v21 }
 0x295   : > { %v1844_v31 = vsel %vm1813_vm7, %v1811_v58, %v1453_v50 }
 0x297   : > { %v1327_v19 = vpop.permute.xlu1 %1326 }
 0x298   : > { %v1581_v36 = vpop.permute.xlu0 %1580  ;;  %v1812_v22 = vsel %vm1780_vm6, %v1779_v8, %v1327_v19 }
 0x299   : > { %v1877_v46 = vsel %vm1846_vm8, %v1844_v31, %v1581_v36 }
 0x29a   : > { %2651 = vmatprep.mubr.msk.f32.mxu1 %vm1888_vm9, %v1877_v46 }
 0x29b   : > { %v1455_v11 = vpop.permute.xlu1 %1454 }
 0x29c   : > { %v1845_v4 = vsel %vm1813_vm7, %v1812_v22, %v1455_v11 }
 0x29f   : > { %v1583_v2 = vpop.permute.xlu1 %1582 }
 0x2a0   : > { %v1878_v61 = vsel %vm1846_vm8, %v1845_v4, %v1583_v2 }
 0x2a1   : > { %2652 = vmatmul.mubr.msk.f32.gmra.mrb[14].mxu1 %vm1888_vm9, %v1878_v61  ;;  %v2626_v30 = vpop.f32.mrb[12].mxu0 }
 0x2a2   : > { %2396 = vst.msk [vmem:[%s3825_s23 + $0x68] sm:$0xff] %vm182_vm0, %v2626_v30  ;;  %v2111_v34 = vpop.f32.mrb[13].mxu0  ;;  %v2294_v32 = vmul.f32 %v2626_v30, %v2626_v30  ;;  %v2235_v42 = vsel %vm182_vm0, %v2626_v30, 0.0 }
 0x2a3   : > { %v2233_v27 = vsel %vm182_vm0, %v2111_v34, 0.0  ;;  %v2293_v18 = vmul.f32 %v2111_v34, %v2111_v34  ;;  %2395 = vst.msk [vmem:[%s3825_s23 + $0x60] sm:$0xff] %vm182_vm0, %v2111_v34 }
 0x2a4   : > { %v2234_v33 = vadd.f32 %v2233_v27, %v2232_v49  ;;  %v2338_v17 = vsel %vm182_vm0, %v2294_v32, 0.0 }
 0x2a5   : > { %v2336_v7 = vsel %vm182_vm0, %v2293_v18, 0.0 }
 0x2a6   : > { %v2337_v48 = vadd.f32 %v2336_v7, %v2335_v0  ;;  %v2236_v14 = vadd.f32 %v2235_v42, %v2234_v33 }
 0x2a8   : > { %v2339_v41 = vadd.f32 %v2338_v17, %v2337_v48 }
 0x2b9   : > { %v2629_v6 = vpop.f32.mrb[14].mxu0 }
 0x2ba   : > { %2398 = vst.msk [vmem:[%s3825_s23 + $0x78] sm:$0xff] %vm182_vm0, %v2629_v6  ;;  %v2121_v59 = vpop.f32.mrb[15].mxu0  ;;  %v2296_v23 = vmul.f32 %v2629_v6, %v2629_v6  ;;  %v2239_v25 = vsel %vm182_vm0, %v2629_v6, 0.0 }
 0x2bb   : > { %v2237_v37 = vsel %vm182_vm0, %v2121_v59, 0.0  ;;  %v2295_v13 = vmul.f32 %v2121_v59, %v2121_v59  ;;  %2397 = vst.msk [vmem:[%s3825_s23 + $0x70] sm:$0xff] %vm182_vm0, %v2121_v59 }
 0x2bc   : > { %v2238_v38 = vadd.f32 %v2237_v37, %v2236_v14  ;;  %v2342_v55 = vsel %vm182_vm0, %v2296_v23, 0.0 }
 0x2bd   : > { %v2340_v44 = vsel %vm182_vm0, %v2295_v13, 0.0 }
 0x2be   : > { %v2240_v47 = vadd.f32 %v2239_v25, %v2238_v38  ;;  %v2341_v35 = vadd.f32 %v2340_v44, %v2339_v41 }
 0x2c0   : > { %v2343_v1 = vadd.f32 %v2342_v55, %v2341_v35 }
 0x2d1   : > { %v2632_v40 = vpop.f32.mrb[0].mxu1 }
 0x2d2   : > { %2400 = vst.msk [vmem:[%s3825_s23 + $0x88] sm:$0xff] %vm182_vm0, %v2632_v40  ;;  %v2131_v24 = vpop.f32.mrb[1].mxu1  ;;  %v2298_v28 = vmul.f32 %v2632_v40, %v2632_v40  ;;  %v2243_v57 = vsel %vm182_vm0, %v2632_v40, 0.0 }
 0x2d3   : > { %v2241_v5 = vsel %vm182_vm0, %v2131_v24, 0.0  ;;  %v2297_v3 = vmul.f32 %v2131_v24, %v2131_v24  ;;  %2399 = vst.msk [vmem:[%s3825_s23 + $0x80] sm:$0xff] %vm182_vm0, %v2131_v24 }
 0x2d4   : > { %v2242_v20 = vadd.f32 %v2241_v5, %v2240_v47  ;;  %v2346_v9 = vsel %vm182_vm0, %v2298_v28, 0.0 }
 0x2d5   : > { %v2344_v45 = vsel %vm182_vm0, %v2297_v3, 0.0 }
 0x2d6   : > { %v2345_v29 = vadd.f32 %v2344_v45, %v2343_v1  ;;  %v2244_v49 = vadd.f32 %v2243_v57, %v2242_v20 }
 0x2d8   : > { %v2347_v39 = vadd.f32 %v2346_v9, %v2345_v29 }
 0x2e9   : > { %v2635_v54 = vpop.f32.mrb[2].mxu1 }
 0x2ea   : > { %2402 = vst.msk [vmem:[%s3825_s23 + $0x98] sm:$0xff] %vm182_vm0, %v2635_v54  ;;  %v2141_v26 = vpop.f32.mrb[3].mxu1  ;;  %v2300_v0 = vmul.f32 %v2635_v54, %v2635_v54  ;;  %v2247_v21 = vsel %vm182_vm0, %v2635_v54, 0.0 }
 0x2eb   : > { %v2245_v10 = vsel %vm182_vm0, %v2141_v26, 0.0  ;;  %v2299_v52 = vmul.f32 %v2141_v26, %v2141_v26  ;;  %2401 = vst.msk [vmem:[%s3825_s23 + $0x90] sm:$0xff] %vm182_vm0, %v2141_v26 }
 0x2ec   : > { %v2246_v60 = vadd.f32 %v2245_v10, %v2244_v49  ;;  %v2350_v63 = vsel %vm182_vm0, %v2300_v0, 0.0 }
 0x2ed   : > { %v2348_v16 = vsel %vm182_vm0, %v2299_v52, 0.0 }
 0x2ee   : > { %v2349_v51 = vadd.f32 %v2348_v16, %v2347_v39  ;;  %v2248_v50 = vadd.f32 %v2247_v21, %v2246_v60 }
 0x2f0   : > { %v2351_v19 = vadd.f32 %v2350_v63, %v2349_v51 }
 0x301   : > { %v2638_v58 = vpop.f32.mrb[4].mxu1 }
 0x302   : > { %2404 = vst.msk [vmem:[%s3825_s23 + $0xa8] sm:$0xff] %vm182_vm0, %v2638_v58  ;;  %v2151_v12 = vpop.f32.mrb[5].mxu1  ;;  %v2302_v15 = vmul.f32 %v2638_v58, %v2638_v58  ;;  %v2251_v43 = vsel %vm182_vm0, %v2638_v58, 0.0 }
 0x303   : > { %v2249_v31 = vsel %vm182_vm0, %v2151_v12, 0.0  ;;  %v2301_v36 = vmul.f32 %v2151_v12, %v2151_v12  ;;  %2403 = vst.msk [vmem:[%s3825_s23 + $0xa0] sm:$0xff] %vm182_vm0, %v2151_v12 }
 0x304   : > { %v2250_v56 = vadd.f32 %v2249_v31, %v2248_v50  ;;  %v2354_v62 = vsel %vm182_vm0, %v2302_v15, 0.0 }
 0x305   : > { %v2352_v46 = vsel %vm182_vm0, %v2301_v36, 0.0 }
 0x306   : > { %v2353_v53 = vadd.f32 %v2352_v46, %v2351_v19  ;;  %v2252_v11 = vadd.f32 %v2251_v43, %v2250_v56 }
 0x308   : > { %v2355_v8 = vadd.f32 %v2354_v62, %v2353_v53 }
 0x319   : > { %v2641_v22 = vpop.f32.mrb[6].mxu1 }
 0x31a   : > { %2406 = vst.msk [vmem:[%s3825_s23 + $0xb8] sm:$0xff] %vm182_vm0, %v2641_v22  ;;  %v2161_v4 = vpop.f32.mrb[7].mxu1  ;;  %v2304_v2 = vmul.f32 %v2641_v22, %v2641_v22  ;;  %v2255_v32 = vsel %vm182_vm0, %v2641_v22, 0.0 }
 0x31b   : > { %v2253_v61 = vsel %vm182_vm0, %v2161_v4, 0.0  ;;  %v2303_v30 = vmul.f32 %v2161_v4, %v2161_v4  ;;  %2405 = vst.msk [vmem:[%s3825_s23 + $0xb0] sm:$0xff] %vm182_vm0, %v2161_v4 }
 0x31c   : > { %v2254_v34 = vadd.f32 %v2253_v61, %v2252_v11  ;;  %v2358_v42 = vsel %vm182_vm0, %v2304_v2, 0.0 }
 0x31d   : > { %v2356_v27 = vsel %vm182_vm0, %v2303_v30, 0.0 }
 0x31e   : > { %v2357_v18 = vadd.f32 %v2356_v27, %v2355_v8  ;;  %v2256_v33 = vadd.f32 %v2255_v32, %v2254_v34 }
 0x320   : > { %v2359_v7 = vadd.f32 %v2358_v42, %v2357_v18 }
 0x331   : > { %v2644_v48 = vpop.f32.mrb[8].mxu1 }
 0x332   : > { %2408 = vst.msk [vmem:[%s3825_s23 + $0xc8] sm:$0xff] %vm182_vm0, %v2644_v48  ;;  %v2171_v14 = vpop.f32.mrb[9].mxu1  ;;  %v2306_v17 = vmul.f32 %v2644_v48, %v2644_v48  ;;  %v2259_v23 = vsel %vm182_vm0, %v2644_v48, 0.0 }
 0x333   : > { %v2257_v41 = vsel %vm182_vm0, %v2171_v14, 0.0  ;;  %v2305_v6 = vmul.f32 %v2171_v14, %v2171_v14  ;;  %2407 = vst.msk [vmem:[%s3825_s23 + $0xc0] sm:$0xff] %vm182_vm0, %v2171_v14 }
 0x334   : > { %v2258_v59 = vadd.f32 %v2257_v41, %v2256_v33  ;;  %v2362_v25 = vsel %vm182_vm0, %v2306_v17, 0.0 }
 0x335   : > { %v2360_v37 = vsel %vm182_vm0, %v2305_v6, 0.0 }
 0x336   : > { %v2361_v13 = vadd.f32 %v2360_v37, %v2359_v7  ;;  %v2260_v38 = vadd.f32 %v2259_v23, %v2258_v59 }
 0x338   : > { %v2363_v44 = vadd.f32 %v2362_v25, %v2361_v13 }
 0x349   : > { %v2647_v47 = vpop.f32.mrb[10].mxu1 }
 0x34a   : > { %2410 = vst.msk [vmem:[%s3825_s23 + $0xd8] sm:$0xff] %vm182_vm0, %v2647_v47  ;;  %v2181_v35 = vpop.f32.mrb[11].mxu1  ;;  %v2308_v55 = vmul.f32 %v2647_v47, %v2647_v47  ;;  %v2263_v28 = vsel %vm182_vm0, %v2647_v47, 0.0 }
 0x34b   : > { %v2261_v1 = vsel %vm182_vm0, %v2181_v35, 0.0  ;;  %v2307_v40 = vmul.f32 %v2181_v35, %v2181_v35  ;;  %2409 = vst.msk [vmem:[%s3825_s23 + $0xd0] sm:$0xff] %vm182_vm0, %v2181_v35 }
 0x34c   : > { %v2262_v24 = vadd.f32 %v2261_v1, %v2260_v38  ;;  %v2366_v57 = vsel %vm182_vm0, %v2308_v55, 0.0 }
 0x34d   : > { %v2364_v5 = vsel %vm182_vm0, %v2307_v40, 0.0 }
 0x34e   : > { %v2365_v3 = vadd.f32 %v2364_v5, %v2363_v44  ;;  %v2264_v20 = vadd.f32 %v2263_v28, %v2262_v24 }
 0x350   : > { %v2367_v45 = vadd.f32 %v2366_v57, %v2365_v3 }
 0x361   : > { %v2650_v29 = vpop.f32.mrb[12].mxu1 }
 0x362   : > { %2412 = vst.msk [vmem:[%s3825_s23 + $0xe8] sm:$0xff] %vm182_vm0, %v2650_v29  ;;  %v2191_v49 = vpop.f32.mrb[13].mxu1  ;;  %v2310_v9 = vmul.f32 %v2650_v29, %v2650_v29  ;;  %v2267_v0 = vsel %vm182_vm0, %v2650_v29, 0.0 }
 0x363   : > { %v2265_v39 = vsel %vm182_vm0, %v2191_v49, 0.0  ;;  %v2309_v54 = vmul.f32 %v2191_v49, %v2191_v49  ;;  %2411 = vst.msk [vmem:[%s3825_s23 + $0xe0] sm:$0xff] %vm182_vm0, %v2191_v49 }
 0x364   : > { %v2266_v26 = vadd.f32 %v2265_v39, %v2264_v20  ;;  %v2370_v21 = vsel %vm182_vm0, %v2310_v9, 0.0 }
 0x365   : > { %v2368_v10 = vsel %vm182_vm0, %v2309_v54, 0.0 }
 0x366   : > { %v2369_v52 = vadd.f32 %v2368_v10, %v2367_v45  ;;  %v2268_v60 = vadd.f32 %v2267_v0, %v2266_v26 }
 0x368   : > { %v2371_v16 = vadd.f32 %v2370_v21, %v2369_v52 }
 0x374   : > { %v2653_v51 = vpop.f32.mrb[14].mxu1 }
 0x375   : > { %2414 = vst.msk [vmem:[%s3825_s23 + $0xf8] sm:$0xff] %vm182_vm0, %v2653_v51  ;;  %v2201_v50 = vpop.f32.mrb[15].mxu1  ;;  %v2312_v63 = vmul.f32 %v2653_v51, %v2653_v51  ;;  %v2271_v15 = vsel %vm182_vm0, %v2653_v51, 0.0 }
 0x376   : > { %v2269_v19 = vsel %vm182_vm0, %v2201_v50, 0.0  ;;  %v2311_v58 = vmul.f32 %v2201_v50, %v2201_v50  ;;  %2413 = vst.msk [vmem:[%s3825_s23 + $0xf0] sm:$0xff] %vm182_vm0, %v2201_v50 }
 0x377   : > { %v2270_v12 = vadd.f32 %v2269_v19, %v2268_v60  ;;  %v2374_v43 = vsel %vm182_vm0, %v2312_v63, 0.0 }
 0x378   : > { %v2372_v31 = vsel %vm182_vm0, %v2311_v58, 0.0 }
 0x379   : > { %v2272_v36 = vadd.f32 %v2271_v15, %v2270_v12  ;;  %v2373_v56 = vadd.f32 %v2372_v31, %v2371_v16 }
 0x37b   : > { %v2273_v46 = vrot.slane %v2272_v36, 4  ;;  %v2375_v53 = vadd.f32 %v2374_v43, %v2373_v56 }
 0x37d   : > { %v2274_v11 = vadd.f32 %v2273_v46, %v2272_v36  ;;  %v2376_v62 = vrot.slane %v2375_v53, 4 }
 0x37f   : > { %v2275_v8 = vrot.slane %v2274_v11, 2  ;;  %v2377_v22 = vadd.f32 %v2376_v62, %v2375_v53 }
 0x381   : > { %v2276_v4 = vadd.f32 %v2275_v8, %v2274_v11  ;;  %v2378_v2 = vrot.slane %v2377_v22, 2 }
 0x383   : > { %v2277_v61 = vrot.slane %v2276_v4, 1  ;;  %v2379_v30 = vadd.f32 %v2378_v2, %v2377_v22 }
 0x385   : > { %v2278_v34 = vadd.f32 %v2277_v61, %v2276_v4  ;;  %v2380_v32 = vrot.slane %v2379_v30, 1 }
 0x387   : > { %2280 = vst.msk [vmem:[%s181_s26] sm:$0x1] %vm2279_vm10, %v2278_v34  ;;  %v2381_v27 = vadd.f32 %v2380_v32, %v2379_v30 }
 0x389   : > { %2382 = vst.msk [vmem:[%s181_s26 + $0x1] sm:$0x1] %vm2279_vm10, %v2381_v27 }
 0x38a PF: > { %s14_s12 = sadd.s32 1, %s2703_s12  }
 0x38b   : > { %p11_p4 = scmp.ge.s32.totalorder %s14_s12, 4  }
 0x38d   :  { %13 = sbr.rel (!%p11_p4) target bundleno = 1 (0x1), region = 72 }

</bundles_post_ra>
